<compile_context>
chip_gen: v7x
topology: tpu7x:2x2x1
jax: 0.10.0
libtpu: 0.0.40
codegen_flags: <defaults>
</compile_context>

<pallas_src>
import functools

import jax
import jax.numpy as jnp
from jax import lax
from jax.experimental import pallas as pl
from jax.experimental.pallas import tpu as pltpu

EPS = 1e-5
VMEM_LIMIT = 32 * 1024 * 1024   # modest explicit scoped-VMEM request (all tiles are small)


def _cdiv(a, b):
    return -(-a // b)


def _round_up(x, m):
    return _cdiv(x, m) * m


def _pick_tile(d, cands=(1024, 512, 256, 128)):
    for t in cands:
        if d % t == 0:
            return t
    return d


# ------------------------------ Pallas kernels ------------------------------ #

def fc_fused_kernel(z_ref, w1_ref, g1_ref, be1_ref, w2_ref, g2_ref, be2_ref, o_ref):
    # Layer 1: Linear -> BN1d(batch stats) -> ReLU.  Recomputed per layer-2
    # N-tile (z and w1 are tiny and resident); Linear biases are dropped because
    # they cancel exactly in (y - mean) of the following batch-stat BN.
    y1 = jnp.dot(z_ref[...].astype(jnp.bfloat16), w1_ref[...],
                 preferred_element_type=jnp.float32)
    m1 = jnp.mean(y1, axis=0, keepdims=True)
    v1 = jnp.mean(y1 * y1, axis=0, keepdims=True) - m1 * m1      # single-pass variance
    h1 = jnp.maximum((y1 - m1) * lax.rsqrt(v1 + EPS) * g1_ref[...] + be1_ref[...], 0.0)

    # Layer 2 (current N tile): Linear -> BN1d -> ReLU.
    y2 = jnp.dot(h1.astype(jnp.bfloat16), w2_ref[...],
                 preferred_element_type=jnp.float32)
    m2 = jnp.mean(y2, axis=0, keepdims=True)
    v2 = jnp.mean(y2 * y2, axis=0, keepdims=True) - m2 * m2
    h2 = jnp.maximum((y2 - m2) * lax.rsqrt(v2 + EPS) * g2_ref[...] + be2_ref[...], 0.0)
    o_ref[...] = h2.astype(o_ref.dtype)


def _matmul_kernel(x_ref, w_ref, o_ref, *, tanh):
    acc = jnp.dot(x_ref[...].astype(jnp.bfloat16), w_ref[...],
                  preferred_element_type=jnp.float32)
    if tanh:
        acc = jnp.tanh(acc)
    o_ref[...] = acc.astype(o_ref.dtype)


def _matmul_bias_kernel(x_ref, w_ref, b_ref, o_ref, *, tanh):
    acc = jnp.dot(x_ref[...].astype(jnp.bfloat16), w_ref[...],
                  preferred_element_type=jnp.float32) + b_ref[...]
    if tanh:
        acc = jnp.tanh(acc)
    o_ref[...] = acc.astype(o_ref.dtype)


def bn2d_relu_block_kernel(y_ref, g_ref, bt_ref, o_ref, *, groups, channels, inv_count):
    # Single-pass BatchNorm2d (training batch stats) + ReLU on a lane-folded
    # (rows, groups*channels) layout that is fully VMEM-resident.  The `groups`
    # lane copies of each channel are folded together with an XLU roll so the
    # statistics stay exact while every load/store is 128-lane dense.
    y = y_ref[...].astype(jnp.float32)
    s = jnp.sum(y, axis=0, keepdims=True)
    q = jnp.sum(y * y, axis=0, keepdims=True)
    tot_s, tot_q = s, q
    for g in range(1, groups):                       # static, tiny (groups == 2)
        tot_s = tot_s + pltpu.roll(s, shift=g * channels, axis=1)
        tot_q = tot_q + pltpu.roll(q, shift=g * channels, axis=1)
    mean = tot_s * inv_count
    var = tot_q * inv_count - mean * mean
    sc = g_ref[...] * lax.rsqrt(var + EPS)
    sh = bt_ref[...] - mean * sc
    o_ref[...] = jnp.maximum(y * sc + sh, 0.0).astype(o_ref.dtype)


def bn2d_relu_twophase_kernel(y_ref, g_ref, bt_ref, o_ref,
                              sum_ref, sq_ref, scale_ref, shift_ref,
                              *, groups, channels, inv_count):
    # Fallback for very large activations: two-phase (phase 0: global sum/sumsq
    # accumulation in VMEM scratch, phase 1: normalize), same lane-folded layout.
    p = pl.program_id(0)
    i = pl.program_id(1)

    @pl.when(jnp.logical_and(p == 0, i == 0))
    def _():
        sum_ref[...] = jnp.zeros_like(sum_ref)
        sq_ref[...] = jnp.zeros_like(sq_ref)

    @pl.when(p == 0)
    def _():
        y = y_ref[...].astype(jnp.float32)
        sum_ref[...] += jnp.sum(y, axis=0, keepdims=True)
        sq_ref[...] += jnp.sum(y * y, axis=0, keepdims=True)

    @pl.when(jnp.logical_and(p == 1, i == 0))
    def _():
        s = sum_ref[...]
        q = sq_ref[...]
        tot_s = s
        tot_q = q
        for g in range(1, groups):
            tot_s = tot_s + pltpu.roll(s, shift=g * channels, axis=1)
            tot_q = tot_q + pltpu.roll(q, shift=g * channels, axis=1)
        mean = tot_s * inv_count
        var = tot_q * inv_count - mean * mean
        sc = g_ref[...] * lax.rsqrt(var + EPS)
        scale_ref[...] = sc
        shift_ref[...] = bt_ref[...] - mean * sc

    @pl.when(p == 1)
    def _():
        y = y_ref[...].astype(jnp.float32)
        o_ref[...] = jnp.maximum(y * scale_ref[...] + shift_ref[...], 0.0
                                 ).astype(o_ref.dtype)


# ------------------------------ Pallas wrappers ------------------------------ #

def fc_fused(z, params, *, out_dtype=jnp.bfloat16):
    # Both fc stages in one pallas_call, gridded over layer-2 N tiles.
    B, Din = z.shape
    D1 = params["w1"].shape[1]
    D2 = params["w2"].shape[1]
    tn = _pick_tile(D2)
    return pl.pallas_call(
        fc_fused_kernel,
        out_shape=jax.ShapeDtypeStruct((B, D2), out_dtype),
        grid=(D2 // tn,),
        in_specs=[
            pl.BlockSpec((B, Din), lambda j: (0, 0)),     # activations resident
            pl.BlockSpec((Din, D1), lambda j: (0, 0)),    # w1 resident
            pl.BlockSpec((1, D1), lambda j: (0, 0)),
            pl.BlockSpec((1, D1), lambda j: (0, 0)),
            pl.BlockSpec((D1, tn), lambda j: (0, j)),     # w2 N-tile
            pl.BlockSpec((1, tn), lambda j: (0, j)),
            pl.BlockSpec((1, tn), lambda j: (0, j)),
        ],
        out_specs=pl.BlockSpec((B, tn), lambda j: (0, j)),
        compiler_params=pltpu.CompilerParams(
            dimension_semantics=("parallel",),
            vmem_limit_bytes=VMEM_LIMIT,
        ),
    )(z, params["w1"], params["g1"], params["be1"],
      params["w2"], params["g2"], params["be2"])


def matmul_fused(lhs, rhs, bias=None, *, tanh=False, out_dtype=jnp.float32,
                 row_tiles=2, tm_max=512):
    # Row-tiled (M, K) @ (K, N) (+ bias) (+ tanh) with weights resident in VMEM.
    # At least `row_tiles` parallel steps (v7x megacore); M tile rounded to 16
    # so output stores stay sublane-dense even for bf16 outputs.
    M, K = lhs.shape
    N = rhs.shape[1]
    n_tiles = max(row_tiles, _cdiv(M, tm_max))
    tm = _round_up(_cdiv(M, n_tiles), 16)
    Mp = n_tiles * tm
    if Mp != M:
        lhs = jnp.pad(lhs, ((0, Mp - M), (0, 0)))

    if bias is None:
        kern = functools.partial(_matmul_kernel, tanh=tanh)
        in_specs = [
            pl.BlockSpec((tm, K), lambda i: (i, 0)),
            pl.BlockSpec((K, N), lambda i: (0, 0)),       # weights fetched once
        ]
        args = (lhs, rhs)
    else:
        kern = functools.partial(_matmul_bias_kernel, tanh=tanh)
        in_specs = [
            pl.BlockSpec((tm, K), lambda i: (i, 0)),
            pl.BlockSpec((K, N), lambda i: (0, 0)),
            pl.BlockSpec((1, N), lambda i: (0, 0)),
        ]
        args = (lhs, rhs, bias)

    out = pl.pallas_call(
        kern,
        out_shape=jax.ShapeDtypeStruct((Mp, N), out_dtype),
        grid=(n_tiles,),
        in_specs=in_specs,
        out_specs=pl.BlockSpec((tm, N), lambda i: (i, 0)),
        compiler_params=pltpu.CompilerParams(
            dimension_semantics=("parallel",),
            vmem_limit_bytes=VMEM_LIMIT,
        ),
    )(*args)
    return out[:M] if Mp != M else out


def bn2d_relu(y, gamma, beta, *, groups=2, out_dtype=jnp.bfloat16,
              single_block_bytes=8 * 1024 * 1024, tr_max=512):
    # y: (B, H, W, C).  Fold `groups` adjacent W-pixels into lanes so every
    # load/store is 128-lane dense; BN statistics stay exact (global, per channel).
    B, H, W, C = y.shape
    if W % groups != 0:
        groups = 1
    Cw = groups * C
    rows = B * H * (W // groups)
    y2 = y.reshape(rows, Cw)
    inv_count = 1.0 / float(B * H * W)
    g_fold = jnp.tile(gamma, (1, groups))
    b_fold = jnp.tile(beta, (1, groups))

    if rows * Cw * 4 <= single_block_bytes:
        # Single-pass, single-block: whole folded tensor resident in VMEM.
        out = pl.pallas_call(
            functools.partial(bn2d_relu_block_kernel, groups=groups, channels=C,
                              inv_count=inv_count),
            out_shape=jax.ShapeDtypeStruct((rows, Cw), out_dtype),
            grid=(1,),
            in_specs=[
                pl.BlockSpec((rows, Cw), lambda i: (0, 0)),
                pl.BlockSpec((1, Cw), lambda i: (0, 0)),
                pl.BlockSpec((1, Cw), lambda i: (0, 0)),
            ],
            out_specs=pl.BlockSpec((rows, Cw), lambda i: (0, 0)),
            compiler_params=pltpu.CompilerParams(
                dimension_semantics=("arbitrary",),
                vmem_limit_bytes=VMEM_LIMIT,
            ),
        )(y2, g_fold, b_fold)
        return out.reshape(B, H, W, C)

    # Fallback: tiled two-phase (stats pass, then normalize pass).
    tr = tr_max
    rows_p = _round_up(rows, tr)
    if rows_p != rows:
        # zero pad rows contribute nothing to sum/sumsq; count uses the true size
        y2 = jnp.pad(y2, ((0, rows_p - rows), (0, 0)))
    n_tiles = rows_p // tr
    out = pl.pallas_call(
        functools.partial(bn2d_relu_twophase_kernel, groups=groups, channels=C,
                          inv_count=inv_count),
        out_shape=jax.ShapeDtypeStruct((rows_p, Cw), out_dtype),
        grid=(2, n_tiles),                       # phase 0: stats, phase 1: normalize
        in_specs=[
            pl.BlockSpec((tr, Cw), lambda p, i: (i, 0)),
            pl.BlockSpec((1, Cw), lambda p, i: (0, 0)),
            pl.BlockSpec((1, Cw), lambda p, i: (0, 0)),
        ],
        # Phase 0 pins the output index at block 0 (never changes -> no garbage
        # write-back); phase 1 walks the blocks and writes the real data.
        out_specs=pl.BlockSpec((tr, Cw), lambda p, i: (i * p, 0)),
        scratch_shapes=[
            pltpu.VMEM((1, Cw), jnp.float32),    # sum
            pltpu.VMEM((1, Cw), jnp.float32),    # sum of squares
            pltpu.VMEM((1, Cw), jnp.float32),    # scale
            pltpu.VMEM((1, Cw), jnp.float32),    # shift
        ],
        compiler_params=pltpu.CompilerParams(
            dimension_semantics=("arbitrary", "arbitrary"),
            vmem_limit_bytes=VMEM_LIMIT,
        ),
    )(y2, g_fold, b_fold)
    if rows_p != rows:
        out = out[:rows]
    return out.reshape(B, H, W, C)


# ----------------- ConvTranspose2d(k=4, s=2, p=1) parity decomposition ----------------- #

def _deconv_parity_matmul(x, rhs, bias, *, tanh, out_dtype):
    # Zero-pad, gather 2x2 patches of the padded input, one matmul
    # (B*(H+1)*(W+1), 4*Cin) @ (4*Cin, 4*Cout) with optional bias (+tanh) fused.
    # TODO(synk): fuse this pad + tap gather (and the parity pixel-shuffle below)
    # into the Pallas matmul via a manual DMA gather / strided store.
    B, H, W, Cin = x.shape
    xp = jnp.pad(x, ((0, 0), (1, 1), (1, 1), (0, 0)))
    patches = jnp.concatenate([
        xp[:, 0:H + 1, 0:W + 1, :],      # tap (a=0, b=0)
        xp[:, 0:H + 1, 1:W + 2, :],      # tap (a=0, b=1)
        xp[:, 1:H + 2, 0:W + 1, :],      # tap (a=1, b=0)
        xp[:, 1:H + 2, 1:W + 2, :],      # tap (a=1, b=1)
    ], axis=-1)                           # (B, H+1, W+1, 4*Cin)
    M = B * (H + 1) * (W + 1)
    lhs = patches.reshape(M, 4 * Cin)
    out = matmul_fused(lhs, rhs, bias, tanh=tanh, out_dtype=out_dtype)
    return out.reshape(B, H + 1, W + 1, rhs.shape[1])


def _parity_shuffle(res, cout):
    # res[b, i, j, (ph*2+pw)*cout + c]  ->  out[b, 2*i'+ph, 2*j'+pw, c]
    B, Gh, Gw, _ = res.shape
    H, W = Gh - 1, Gw - 1
    r = res.reshape(B, Gh, Gw, 4, cout)
    y00 = r[:, 0:H,     0:W,     0, :]
    y01 = r[:, 0:H,     1:W + 1, 1, :]
    y10 = r[:, 1:H + 1, 0:W,     2, :]
    y11 = r[:, 1:H + 1, 1:W + 1, 3, :]
    row0 = jnp.stack([y00, y01], axis=3)          # (B, H, W, 2, C): pw
    row1 = jnp.stack([y10, y11], axis=3)
    y = jnp.stack([row0, row1], axis=2)           # (B, H, 2, W, 2, C): ph, pw
    return y.reshape(B, 2 * H, 2 * W, cout)


def build_parity_rhs(w):
    # w: PyTorch ConvTranspose2d weight (Cin, Cout, 4, 4).
    # RHS row-block = 2x2 patch tap (a, b); column-block = output parity (ph, pw);
    # weight tap kh = 3-2a (ph even) / 2-2a (ph odd), same for kw.
    rows = []
    for a in (0, 1):
        for b in (0, 1):
            cols = []
            for ph in (0, 1):
                for pw in (0, 1):
                    kh = 3 - 2 * a if ph == 0 else 2 - 2 * a
                    kw = 3 - 2 * b if pw == 0 else 2 - 2 * b
                    cols.append(w[:, :, kh, kw])            # (Cin, Cout)
            rows.append(jnp.concatenate(cols, axis=1))      # (Cin, 4*Cout)
    return jnp.concatenate(rows, axis=0)                    # (4*Cin, 4*Cout)


# --------------------------------- forward --------------------------------- #

def generator_forward(z, params, input_size, output_dim):
    B = z.shape[0]
    S4 = input_size // 4

    # fc: Linear -> BN1d -> ReLU, twice, fused into one Pallas kernel.
    # (w2 columns are pre-permuted to (i, j, c) order -> reshape below is free.)
    h2 = fc_fused(z, params)                                         # (B, S4*S4*128) bf16
    feat = h2.reshape(B, S4, S4, 128)                                # NHWC, no transpose

    # deconv1: ConvTranspose2d(128->64, 4, 2, 1) + BN2d + ReLU
    # (conv bias dropped: it cancels exactly in the following batch-stat BN)
    pre1 = _deconv_parity_matmul(feat, params["wd1_mat"], None,
                                 tanh=False, out_dtype=jnp.bfloat16)
    y1 = _parity_shuffle(pre1, 64)                                   # (B, 2S4, 2S4, 64)
    y1 = bn2d_relu(y1, params["g3"], params["be3"], groups=2,
                   out_dtype=jnp.bfloat16)

    # deconv2: ConvTranspose2d(64->output_dim, 4, 2, 1) + Tanh (fused into matmul).
    pre2 = _deconv_parity_matmul(y1, params["wd2_mat"], params["bd2_mat"],
                                 tanh=True, out_dtype=jnp.float32)
    out = _parity_shuffle(pre2, output_dim)                          # (B, S, S, Cout)
    if output_dim == 1:
        return out.reshape(B, 1, input_size, input_size)             # layout-free NCHW
    return out.transpose(0, 3, 1, 2)                                 # NCHW


# --------------------------- deterministic params --------------------------- #

def _permute_fc2_cols(m, S4):
    # Columns ordered (c, i, j) (PyTorch .view(-1,128,S4,S4)) -> (i, j, c) so the
    # fc output reshapes directly to channels-last feature maps.
    lead = m.shape[0]
    return m.reshape(lead, 128, S4, S4).transpose(0, 2, 3, 1).reshape(lead, 128 * S4 * S4)


def init_params(key, input_dim, input_size, output_dim):
    S4 = input_size // 4
    d_fc2 = 128 * S4 * S4
    ks = jax.random.split(key, 7)
    std = 0.02  # utils.initialize_weights: N(0, 0.02) weights, zero biases

    w1 = std * jax.random.normal(ks[0], (input_dim, 1024), jnp.float32)
    w2 = std * jax.random.normal(ks[1], (1024, d_fc2), jnp.float32)
    wd1 = std * jax.random.normal(ks[2], (128, 64, 4, 4), jnp.float32)       # (Cin,Cout,kh,kw)
    wd2 = std * jax.random.normal(ks[3], (64, output_dim, 4, 4), jnp.float32)

    g2 = 1.0 + std * jax.random.normal(ks[5], (1, d_fc2), jnp.float32)
    bd2 = jnp.zeros((1, output_dim), jnp.float32)

    # Note: fc biases and the deconv1 bias are intentionally absent — they feed
    # straight into batch-stat BatchNorms and cancel exactly (and are zero at
    # init per utils.initialize_weights anyway).
    return dict(
        w1=w1.astype(jnp.bfloat16),
        g1=1.0 + std * jax.random.normal(ks[4], (1, 1024), jnp.float32),
        be1=jnp.zeros((1, 1024), jnp.float32),
        w2=_permute_fc2_cols(w2, S4).astype(jnp.bfloat16),
        g2=_permute_fc2_cols(g2, S4),
        be2=jnp.zeros((1, d_fc2), jnp.float32),
        wd1_mat=build_parity_rhs(wd1).astype(jnp.bfloat16),    # (512, 256)
        g3=1.0 + std * jax.random.normal(ks[6], (1, 64), jnp.float32),
        be3=jnp.zeros((1, 64), jnp.float32),
        wd2_mat=build_parity_rhs(wd2).astype(jnp.bfloat16),    # (256, 4*Cout)
        bd2_mat=jnp.tile(bd2, (1, 4)),                         # (1, 4*Cout)
    )


if __name__ == "__main__":
    key = jax.random.PRNGKey(0)
    B, input_dim, input_size, output_dim = 4, 32, 16, 1

    params = init_params(key, input_dim, input_size, output_dim)
    z = jax.random.normal(jax.random.fold_in(key, 123), (B, input_dim), jnp.float32)

    fwd = jax.jit(functools.partial(generator_forward,
                                    input_size=input_size, output_dim=output_dim))
    out = jax.block_until_ready(fwd(z, params))

    assert out.shape == (B, output_dim, input_size, input_size), out.shape
    assert bool(jnp.all(jnp.isfinite(out)))
    assert bool(jnp.all(jnp.abs(out) <= 1.0 + 1e-6))  # tanh output range
    print("KERNEL_OK")
</pallas_src>

<mosaic_0001>
module attributes {stable_mosaic.version = 11 : i64} {
  func.func @fc_fused_kernel(%arg0: i32, %arg1: memref<4x32xf32, #tpu.memory_space<vmem>>, %arg2: memref<32x1024xbf16, #tpu.memory_space<vmem>>, %arg3: memref<1x1024xf32, #tpu.memory_space<vmem>>, %arg4: memref<1x1024xf32, #tpu.memory_space<vmem>>, %arg5: memref<1024x1024xbf16, #tpu.memory_space<vmem>>, %arg6: memref<1x1024xf32, #tpu.memory_space<vmem>>, %arg7: memref<1x1024xf32, #tpu.memory_space<vmem>>, %arg8: memref<4x1024xbf16, #tpu.memory_space<vmem>>) attributes {dimension_semantics = [#tpu.dimension_semantics<parallel>], iteration_bounds = array<i64: 2>, scalar_prefetch = 0 : i64, scratch_operands = 0 : i64, tpu.core_type = #tpu.core_type<tc>, window_params = [{pipeline_mode = #tpu.pipeline_mode<synchronous>, transform_indices = @transform_0, window_bounds = array<i64: 4, 32>}, {pipeline_mode = #tpu.pipeline_mode<synchronous>, transform_indices = @transform_1, window_bounds = array<i64: 32, 1024>}, {pipeline_mode = #tpu.pipeline_mode<synchronous>, transform_indices = @transform_2, window_bounds = array<i64: 1, 1024>}, {pipeline_mode = #tpu.pipeline_mode<synchronous>, transform_indices = @transform_3, window_bounds = array<i64: 1, 1024>}, {transform_indices = @transform_4, window_bounds = array<i64: 1024, 1024>}, {transform_indices = @transform_5, window_bounds = array<i64: 1, 1024>}, {transform_indices = @transform_6, window_bounds = array<i64: 1, 1024>}, {transform_indices = @transform_7, window_bounds = array<i64: 4, 1024>}]} {
    %c0 = arith.constant 0 : index
    %c0_0 = arith.constant 0 : index
    %0 = vector.load %arg1[%c0, %c0_0] : memref<4x32xf32, #tpu.memory_space<vmem>>, vector<4x32xf32>
    %1 = arith.truncf %0 : vector<4x32xf32> to vector<4x32xbf16>
    %c0_1 = arith.constant 0 : index
    %c0_2 = arith.constant 0 : index
    %2 = vector.load %arg2[%c0_1, %c0_2] : memref<32x1024xbf16, #tpu.memory_space<vmem>>, vector<32x1024xbf16>
    %cst = arith.constant dense<0.000000e+00> : vector<4x1024xf32>
    %3 = tpu.matmul %1, %2, %cst {dimension_numbers = #tpu.dot_dimension_numbers<[1], [0], [0], [1], [0, 0, 1, 1], [], []>} : vector<4x32xbf16>, vector<32x1024xbf16>, vector<4x1024xf32> -> vector<4x1024xf32>
    %cst_3 = arith.constant dense<0.000000e+00> : vector<1024xf32>
    %4 = vector.multi_reduction <add>, %3, %cst_3 [0] : vector<4x1024xf32> to vector<1024xf32>
    %5 = vector.shape_cast %4 : vector<1024xf32> to vector<1x1024xf32>
    %cst_4 = arith.constant 4.000000e+00 : f32
    %6 = vector.broadcast %cst_4 : f32 to vector<1x1024xf32>
    %7 = arith.divf %5, %6 : vector<1x1024xf32>
    %8 = arith.mulf %3, %3 : vector<4x1024xf32>
    %cst_5 = arith.constant dense<0.000000e+00> : vector<1024xf32>
    %9 = vector.multi_reduction <add>, %8, %cst_5 [0] : vector<4x1024xf32> to vector<1024xf32>
    %10 = vector.shape_cast %9 : vector<1024xf32> to vector<1x1024xf32>
    %cst_6 = arith.constant 4.000000e+00 : f32
    %11 = vector.broadcast %cst_6 : f32 to vector<1x1024xf32>
    %12 = arith.divf %10, %11 : vector<1x1024xf32>
    %13 = arith.mulf %7, %7 : vector<1x1024xf32>
    %14 = arith.subf %12, %13 : vector<1x1024xf32>
    %15 = vector.broadcast %7 : vector<1x1024xf32> to vector<4x1024xf32>
    %16 = arith.subf %3, %15 : vector<4x1024xf32>
    %cst_7 = arith.constant 9.99999974E-6 : f32
    %17 = vector.broadcast %cst_7 : f32 to vector<1x1024xf32>
    %18 = arith.addf %14, %17 : vector<1x1024xf32>
    %19 = math.rsqrt %18 : vector<1x1024xf32>
    %20 = vector.broadcast %19 : vector<1x1024xf32> to vector<4x1024xf32>
    %21 = arith.mulf %16, %20 : vector<4x1024xf32>
    %c0_8 = arith.constant 0 : index
    %c0_9 = arith.constant 0 : index
    %22 = vector.load %arg3[%c0_8, %c0_9] : memref<1x1024xf32, #tpu.memory_space<vmem>>, vector<1x1024xf32>
    %23 = vector.broadcast %22 : vector<1x1024xf32> to vector<4x1024xf32>
    %24 = arith.mulf %21, %23 : vector<4x1024xf32>
    %c0_10 = arith.constant 0 : index
    %c0_11 = arith.constant 0 : index
    %25 = vector.load %arg4[%c0_10, %c0_11] : memref<1x1024xf32, #tpu.memory_space<vmem>>, vector<1x1024xf32>
    %26 = vector.broadcast %25 : vector<1x1024xf32> to vector<4x1024xf32>
    %27 = arith.addf %24, %26 : vector<4x1024xf32>
    %cst_12 = arith.constant 0.000000e+00 : f32
    %28 = vector.broadcast %cst_12 : f32 to vector<4x1024xf32>
    %29 = arith.maximumf %27, %28 : vector<4x1024xf32>
    %30 = arith.truncf %29 : vector<4x1024xf32> to vector<4x1024xbf16>
    %c0_13 = arith.constant 0 : index
    %c0_14 = arith.constant 0 : index
    %31 = vector.load %arg5[%c0_13, %c0_14] : memref<1024x1024xbf16, #tpu.memory_space<vmem>>, vector<1024x1024xbf16>
    %cst_15 = arith.constant dense<0.000000e+00> : vector<4x1024xf32>
    %32 = tpu.matmul %30, %31, %cst_15 {dimension_numbers = #tpu.dot_dimension_numbers<[1], [0], [0], [1], [0, 0, 1, 1], [], []>} : vector<4x1024xbf16>, vector<1024x1024xbf16>, vector<4x1024xf32> -> vector<4x1024xf32>
    %cst_16 = arith.constant dense<0.000000e+00> : vector<1024xf32>
    %33 = vector.multi_reduction <add>, %32, %cst_16 [0] : vector<4x1024xf32> to vector<1024xf32>
    %34 = vector.shape_cast %33 : vector<1024xf32> to vector<1x1024xf32>
    %cst_17 = arith.constant 4.000000e+00 : f32
    %35 = vector.broadcast %cst_17 : f32 to vector<1x1024xf32>
    %36 = arith.divf %34, %35 : vector<1x1024xf32>
    %37 = arith.mulf %32, %32 : vector<4x1024xf32>
    %cst_18 = arith.constant dense<0.000000e+00> : vector<1024xf32>
    %38 = vector.multi_reduction <add>, %37, %cst_18 [0] : vector<4x1024xf32> to vector<1024xf32>
    %39 = vector.shape_cast %38 : vector<1024xf32> to vector<1x1024xf32>
    %cst_19 = arith.constant 4.000000e+00 : f32
    %40 = vector.broadcast %cst_19 : f32 to vector<1x1024xf32>
    %41 = arith.divf %39, %40 : vector<1x1024xf32>
    %42 = arith.mulf %36, %36 : vector<1x1024xf32>
    %43 = arith.subf %41, %42 : vector<1x1024xf32>
    %44 = vector.broadcast %36 : vector<1x1024xf32> to vector<4x1024xf32>
    %45 = arith.subf %32, %44 : vector<4x1024xf32>
    %cst_20 = arith.constant 9.99999974E-6 : f32
    %46 = vector.broadcast %cst_20 : f32 to vector<1x1024xf32>
    %47 = arith.addf %43, %46 : vector<1x1024xf32>
    %48 = math.rsqrt %47 : vector<1x1024xf32>
    %49 = vector.broadcast %48 : vector<1x1024xf32> to vector<4x1024xf32>
    %50 = arith.mulf %45, %49 : vector<4x1024xf32>
    %c0_21 = arith.constant 0 : index
    %c0_22 = arith.constant 0 : index
    %51 = vector.load %arg6[%c0_21, %c0_22] : memref<1x1024xf32, #tpu.memory_space<vmem>>, vector<1x1024xf32>
    %52 = vector.broadcast %51 : vector<1x1024xf32> to vector<4x1024xf32>
    %53 = arith.mulf %50, %52 : vector<4x1024xf32>
    %c0_23 = arith.constant 0 : index
    %c0_24 = arith.constant 0 : index
    %54 = vector.load %arg7[%c0_23, %c0_24] : memref<1x1024xf32, #tpu.memory_space<vmem>>, vector<1x1024xf32>
    %55 = vector.broadcast %54 : vector<1x1024xf32> to vector<4x1024xf32>
    %56 = arith.addf %53, %55 : vector<4x1024xf32>
    %cst_25 = arith.constant 0.000000e+00 : f32
    %57 = vector.broadcast %cst_25 : f32 to vector<4x1024xf32>
    %58 = arith.maximumf %56, %57 : vector<4x1024xf32>
    %59 = arith.truncf %58 : vector<4x1024xf32> to vector<4x1024xbf16>
    %c0_26 = arith.constant 0 : index
    %c0_27 = arith.constant 0 : index
    %60 = vector.load %arg8[%c0_26, %c0_27] : memref<4x1024xbf16, #tpu.memory_space<vmem>>, vector<4x1024xbf16>
    tpu.vector_store %arg8[%c0_26, %c0_27], %59 {strides = array<i32>} : memref<4x1024xbf16, #tpu.memory_space<vmem>>, vector<4x1024xbf16>,
    return
  }
  func.func @transform_0(%arg0: i32) -> (i32, i32) {
    %c0_i32 = arith.constant 0 : i32
    %c0_i32_0 = arith.constant 0 : i32
    %c0_i32_1 = arith.constant 0 : i32
    return %c0_i32, %c0_i32_0 : i32, i32
  }
  func.func @transform_1(%arg0: i32) -> (i32, i32) {
    %c0_i32 = arith.constant 0 : i32
    %c0_i32_0 = arith.constant 0 : i32
    %c0_i32_1 = arith.constant 0 : i32
    return %c0_i32, %c0_i32_0 : i32, i32
  }
  func.func @transform_2(%arg0: i32) -> (i32, i32) {
    %c0_i32 = arith.constant 0 : i32
    %c0_i32_0 = arith.constant 0 : i32
    %c0_i32_1 = arith.constant 0 : i32
    return %c0_i32, %c0_i32_0 : i32, i32
  }
  func.func @transform_3(%arg0: i32) -> (i32, i32) {
    %c0_i32 = arith.constant 0 : i32
    %c0_i32_0 = arith.constant 0 : i32
    %c0_i32_1 = arith.constant 0 : i32
    return %c0_i32, %c0_i32_0 : i32, i32
  }
  func.func @transform_4(%arg0: i32) -> (i32, i32) {
    %c0_i32 = arith.constant 0 : i32
    %c0_i32_0 = arith.constant 0 : i32
    return %c0_i32, %arg0 : i32, i32
  }
  func.func @transform_5(%arg0: i32) -> (i32, i32) {
    %c0_i32 = arith.constant 0 : i32
    %c0_i32_0 = arith.constant 0 : i32
    return %c0_i32, %arg0 : i32, i32
  }
  func.func @transform_6(%arg0: i32) -> (i32, i32) {
    %c0_i32 = arith.constant 0 : i32
    %c0_i32_0 = arith.constant 0 : i32
    return %c0_i32, %arg0 : i32, i32
  }
  func.func @transform_7(%arg0: i32) -> (i32, i32) {
    %c0_i32 = arith.constant 0 : i32
    %c0_i32_0 = arith.constant 0 : i32
    return %c0_i32, %arg0 : i32, i32
  }
}

module attributes {stable_mosaic.version = 11 : i64} {
  func.func @_matmul_kernel(%arg0: i32, %arg1: memref<64x512xbf16, #tpu.memory_space<vmem>>, %arg2: memref<512x256xbf16, #tpu.memory_space<vmem>>, %arg3: memref<64x256xbf16, #tpu.memory_space<vmem>>) attributes {dimension_semantics = [#tpu.dimension_semantics<parallel>], iteration_bounds = array<i64: 2>, scalar_prefetch = 0 : i64, scratch_operands = 0 : i64, tpu.core_type = #tpu.core_type<tc>, window_params = [{transform_indices = @transform_0, window_bounds = array<i64: 64, 512>}, {pipeline_mode = #tpu.pipeline_mode<synchronous>, transform_indices = @transform_1, window_bounds = array<i64: 512, 256>}, {transform_indices = @transform_2, window_bounds = array<i64: 64, 256>}]} {
    %c0 = arith.constant 0 : index
    %c0_0 = arith.constant 0 : index
    %0 = vector.load %arg1[%c0, %c0_0] : memref<64x512xbf16, #tpu.memory_space<vmem>>, vector<64x512xbf16>
    %c0_1 = arith.constant 0 : index
    %c0_2 = arith.constant 0 : index
    %1 = vector.load %arg2[%c0_1, %c0_2] : memref<512x256xbf16, #tpu.memory_space<vmem>>, vector<512x256xbf16>
    %cst = arith.constant dense<0.000000e+00> : vector<64x256xf32>
    %2 = tpu.matmul %0, %1, %cst {dimension_numbers = #tpu.dot_dimension_numbers<[1], [0], [0], [1], [0, 0, 1, 1], [], []>} : vector<64x512xbf16>, vector<512x256xbf16>, vector<64x256xf32> -> vector<64x256xf32>
    %3 = arith.truncf %2 : vector<64x256xf32> to vector<64x256xbf16>
    %c0_3 = arith.constant 0 : index
    %c0_4 = arith.constant 0 : index
    %4 = vector.load %arg3[%c0_3, %c0_4] : memref<64x256xbf16, #tpu.memory_space<vmem>>, vector<64x256xbf16>
    tpu.vector_store %arg3[%c0_3, %c0_4], %3 {strides = array<i32>} : memref<64x256xbf16, #tpu.memory_space<vmem>>, vector<64x256xbf16>,
    return
  }
  func.func @transform_0(%arg0: i32) -> (i32, i32) {
    %c0_i32 = arith.constant 0 : i32
    %c0_i32_0 = arith.constant 0 : i32
    return %arg0, %c0_i32 : i32, i32
  }
  func.func @transform_1(%arg0: i32) -> (i32, i32) {
    %c0_i32 = arith.constant 0 : i32
    %c0_i32_0 = arith.constant 0 : i32
    %c0_i32_1 = arith.constant 0 : i32
    return %c0_i32, %c0_i32_0 : i32, i32
  }
  func.func @transform_2(%arg0: i32) -> (i32, i32) {
    %c0_i32 = arith.constant 0 : i32
    %c0_i32_0 = arith.constant 0 : i32
    return %arg0, %c0_i32 : i32, i32
  }
}

module attributes {stable_mosaic.version = 11 : i64} {
  func.func @bn2d_relu_block_kernel(%arg0: i32, %arg1: memref<128x128xbf16, #tpu.memory_space<vmem>>, %arg2: memref<1x128xf32, #tpu.memory_space<vmem>>, %arg3: memref<1x128xf32, #tpu.memory_space<vmem>>, %arg4: memref<128x128xbf16, #tpu.memory_space<vmem>>) attributes {dimension_semantics = [#tpu.dimension_semantics<arbitrary>], iteration_bounds = array<i64: 1>, scalar_prefetch = 0 : i64, scratch_operands = 0 : i64, tpu.core_type = #tpu.core_type<tc>, window_params = [{pipeline_mode = #tpu.pipeline_mode<synchronous>, transform_indices = @transform_0, window_bounds = array<i64: 128, 128>}, {pipeline_mode = #tpu.pipeline_mode<synchronous>, transform_indices = @transform_1, window_bounds = array<i64: 1, 128>}, {pipeline_mode = #tpu.pipeline_mode<synchronous>, transform_indices = @transform_2, window_bounds = array<i64: 1, 128>}, {pipeline_mode = #tpu.pipeline_mode<synchronous>, transform_indices = @transform_3, window_bounds = array<i64: 128, 128>}]} {
    %c0 = arith.constant 0 : index
    %c0_0 = arith.constant 0 : index
    %0 = vector.load %arg1[%c0, %c0_0] : memref<128x128xbf16, #tpu.memory_space<vmem>>, vector<128x128xbf16>
    %1 = arith.extf %0 : vector<128x128xbf16> to vector<128x128xf32>
    %cst = arith.constant dense<0.000000e+00> : vector<128xf32>
    %2 = vector.multi_reduction <add>, %1, %cst [0] : vector<128x128xf32> to vector<128xf32>
    %3 = vector.shape_cast %2 : vector<128xf32> to vector<1x128xf32>
    %4 = arith.mulf %1, %1 : vector<128x128xf32>
    %cst_1 = arith.constant dense<0.000000e+00> : vector<128xf32>
    %5 = vector.multi_reduction <add>, %4, %cst_1 [0] : vector<128x128xf32> to vector<128xf32>
    %6 = vector.shape_cast %5 : vector<128xf32> to vector<1x128xf32>
    %c64_i32 = arith.constant 64 : i32
    %7 = tpu.dynamic_rotate %3 by %c64_i32 dim 1 : vector<1x128xf32>, i32 -> vector<1x128xf32>
    %8 = arith.addf %3, %7 : vector<1x128xf32>
    %c64_i32_2 = arith.constant 64 : i32
    %9 = tpu.dynamic_rotate %6 by %c64_i32_2 dim 1 : vector<1x128xf32>, i32 -> vector<1x128xf32>
    %10 = arith.addf %6, %9 : vector<1x128xf32>
    %cst_3 = arith.constant 3.906250e-03 : f32
    %11 = vector.broadcast %cst_3 : f32 to vector<1x128xf32>
    %12 = arith.mulf %8, %11 : vector<1x128xf32>
    %cst_4 = arith.constant 3.906250e-03 : f32
    %13 = vector.broadcast %cst_4 : f32 to vector<1x128xf32>
    %14 = arith.mulf %10, %13 : vector<1x128xf32>
    %15 = arith.mulf %12, %12 : vector<1x128xf32>
    %16 = arith.subf %14, %15 : vector<1x128xf32>
    %c0_5 = arith.constant 0 : index
    %c0_6 = arith.constant 0 : index
    %17 = vector.load %arg2[%c0_5, %c0_6] : memref<1x128xf32, #tpu.memory_space<vmem>>, vector<1x128xf32>
    %cst_7 = arith.constant 9.99999974E-6 : f32
    %18 = vector.broadcast %cst_7 : f32 to vector<1x128xf32>
    %19 = arith.addf %16, %18 : vector<1x128xf32>
    %20 = math.rsqrt %19 : vector<1x128xf32>
    %21 = arith.mulf %17, %20 : vector<1x128xf32>
    %c0_8 = arith.constant 0 : index
    %c0_9 = arith.constant 0 : index
    %22 = vector.load %arg3[%c0_8, %c0_9] : memref<1x128xf32, #tpu.memory_space<vmem>>, vector<1x128xf32>
    %23 = arith.mulf %12, %21 : vector<1x128xf32>
    %24 = arith.subf %22, %23 : vector<1x128xf32>
    %25 = vector.broadcast %21 : vector<1x128xf32> to vector<128x128xf32>
    %26 = arith.mulf %1, %25 : vector<128x128xf32>
    %27 = vector.broadcast %24 : vector<1x128xf32> to vector<128x128xf32>
    %28 = arith.addf %26, %27 : vector<128x128xf32>
    %cst_10 = arith.constant 0.000000e+00 : f32
    %29 = vector.broadcast %cst_10 : f32 to vector<128x128xf32>
    %30 = arith.maximumf %28, %29 : vector<128x128xf32>
    %31 = arith.truncf %30 : vector<128x128xf32> to vector<128x128xbf16>
    %c0_11 = arith.constant 0 : index
    %c0_12 = arith.constant 0 : index
    %32 = vector.load %arg4[%c0_11, %c0_12] : memref<128x128xbf16, #tpu.memory_space<vmem>>, vector<128x128xbf16>
    tpu.vector_store %arg4[%c0_11, %c0_12], %31 {strides = array<i32>} : memref<128x128xbf16, #tpu.memory_space<vmem>>, vector<128x128xbf16>,
    return
  }
  func.func @transform_0(%arg0: i32) -> (i32, i32) {
    %c0_i32 = arith.constant 0 : i32
    %c0_i32_0 = arith.constant 0 : i32
    %c0_i32_1 = arith.constant 0 : i32
    return %c0_i32, %c0_i32_0 : i32, i32
  }
  func.func @transform_1(%arg0: i32) -> (i32, i32) {
    %c0_i32 = arith.constant 0 : i32
    %c0_i32_0 = arith.constant 0 : i32
    %c0_i32_1 = arith.constant 0 : i32
    return %c0_i32, %c0_i32_0 : i32, i32
  }
  func.func @transform_2(%arg0: i32) -> (i32, i32) {
    %c0_i32 = arith.constant 0 : i32
    %c0_i32_0 = arith.constant 0 : i32
    %c0_i32_1 = arith.constant 0 : i32
    return %c0_i32, %c0_i32_0 : i32, i32
  }
  func.func @transform_3(%arg0: i32) -> (i32, i32) {
    %c0_i32 = arith.constant 0 : i32
    %c0_i32_0 = arith.constant 0 : i32
    %c0_i32_1 = arith.constant 0 : i32
    return %c0_i32, %c0_i32_0 : i32, i32
  }
}

module attributes {stable_mosaic.version = 11 : i64} {
  func.func @_matmul_bias_kernel(%arg0: i32, %arg1: memref<176x256xbf16, #tpu.memory_space<vmem>>, %arg2: memref<256x4xbf16, #tpu.memory_space<vmem>>, %arg3: memref<1x4xf32, #tpu.memory_space<vmem>>, %arg4: memref<176x4xf32, #tpu.memory_space<vmem>>) attributes {dimension_semantics = [#tpu.dimension_semantics<parallel>], iteration_bounds = array<i64: 2>, scalar_prefetch = 0 : i64, scratch_operands = 0 : i64, tpu.core_type = #tpu.core_type<tc>, window_params = [{transform_indices = @transform_0, window_bounds = array<i64: 176, 256>}, {pipeline_mode = #tpu.pipeline_mode<synchronous>, transform_indices = @transform_1, window_bounds = array<i64: 256, 4>}, {pipeline_mode = #tpu.pipeline_mode<synchronous>, transform_indices = @transform_2, window_bounds = array<i64: 1, 4>}, {transform_indices = @transform_3, window_bounds = array<i64: 176, 4>}]} {
    %c0 = arith.constant 0 : index
    %c0_0 = arith.constant 0 : index
    %0 = vector.load %arg1[%c0, %c0_0] : memref<176x256xbf16, #tpu.memory_space<vmem>>, vector<176x256xbf16>
    %c0_1 = arith.constant 0 : index
    %c0_2 = arith.constant 0 : index
    %1 = vector.load %arg2[%c0_1, %c0_2] : memref<256x4xbf16, #tpu.memory_space<vmem>>, vector<256x4xbf16>
    %cst = arith.constant dense<0.000000e+00> : vector<176x4xf32>
    %2 = tpu.matmul %0, %1, %cst {dimension_numbers = #tpu.dot_dimension_numbers<[1], [0], [0], [1], [0, 0, 1, 1], [], []>} : vector<176x256xbf16>, vector<256x4xbf16>, vector<176x4xf32> -> vector<176x4xf32>
    %c0_3 = arith.constant 0 : index
    %c0_4 = arith.constant 0 : index
    %3 = vector.load %arg3[%c0_3, %c0_4] : memref<1x4xf32, #tpu.memory_space<vmem>>, vector<1x4xf32>
    %4 = vector.broadcast %3 : vector<1x4xf32> to vector<176x4xf32>
    %5 = arith.addf %2, %4 : vector<176x4xf32>
    %6 = math.tanh %5 : vector<176x4xf32>
    %c0_5 = arith.constant 0 : index
    %c0_6 = arith.constant 0 : index
    %7 = vector.load %arg4[%c0_5, %c0_6] : memref<176x4xf32, #tpu.memory_space<vmem>>, vector<176x4xf32>
    tpu.vector_store %arg4[%c0_5, %c0_6], %6 {strides = array<i32>} : memref<176x4xf32, #tpu.memory_space<vmem>>, vector<176x4xf32>,
    return
  }
  func.func @transform_0(%arg0: i32) -> (i32, i32) {
    %c0_i32 = arith.constant 0 : i32
    %c0_i32_0 = arith.constant 0 : i32
    return %arg0, %c0_i32 : i32, i32
  }
  func.func @transform_1(%arg0: i32) -> (i32, i32) {
    %c0_i32 = arith.constant 0 : i32
    %c0_i32_0 = arith.constant 0 : i32
    %c0_i32_1 = arith.constant 0 : i32
    return %c0_i32, %c0_i32_0 : i32, i32
  }
  func.func @transform_2(%arg0: i32) -> (i32, i32) {
    %c0_i32 = arith.constant 0 : i32
    %c0_i32_0 = arith.constant 0 : i32
    %c0_i32_1 = arith.constant 0 : i32
    return %c0_i32, %c0_i32_0 : i32, i32
  }
  func.func @transform_3(%arg0: i32) -> (i32, i32) {
    %c0_i32 = arith.constant 0 : i32
    %c0_i32_0 = arith.constant 0 : i32
    return %arg0, %c0_i32 : i32, i32
  }
}

</mosaic_0001>

<bundles_post_ra>
// kernel: generator_forward.5
= control target key start
LH: loop header
LB: loop body
LE: loop exit
PB: predicated region body
PF: predicated region fallthrough
CT: control target
= control target key end

     0   :  { %s1170_s9 = smov 0   ;;  %s1413_s0 = inlined_call_operand.vmem [shape: bf16[128,512], index: 0, kind: input, shape index: {}]   ;;  %s1414_s1 = inlined_call_operand.vmem [shape: bf16[512,256], index: 1, kind: input, shape index: {}]   ;;  %s1415_s2 = inlined_call_operand.vmem [shape: bf16[128,256], index: 2, kind: output, shape index: {}]  }
   0x1 LB: > { %s892_s10 = sadd.s32 4294967295, %s1153_s9   ;;  %p896_p0 = scmp.ge.s32.totalorder %s1153_s9, 1  ;;  %s1153_s9 = sphi %s1170_s9, %s12_s9  }
   0x2   : > { %p114_p1 = scmp.lt.s32.totalorder %s1153_s9, 3 }
   0x4   : > { %p115_p2 = pnand %p896_p0, %p114_p1 }
   0x5   : > { %v1027_v0 = vld [vmem:[%s1414_s1 + $0x4] ss:$8 sps:$4 sm:$0xff] (!%p115_p2)   ;;  %v1031_v2 = vld [vmem:[%s1414_s1] ss:$8 sps:$4 sm:$0xff] (!%p115_p2)   ;;  %v1033_v4 = vld [vmem:[%s1414_s1 + $0x14] ss:$8 sps:$4 sm:$0xff] (!%p115_p2)  }
   0x6   : > { %118 = sbr.rel (%p115_p2) target bundleno = 315 (0x13b), region = 28  ;;  %v1029_v1 = vld [vmem:[%s1414_s1 + $0x104] ss:$8 sps:$4 sm:$0xff] (!%p115_p2)   ;;  %632 = vmatprep.subr.bf16.mxu1 (!%p115_p2), %v1027_v0  ;;  %v1032_v3 = vld [vmem:[%s1414_s1 + $0x100] ss:$8 sps:$4 sm:$0xff] (!%p115_p2)   ;;  %s897_s19 = sshll.u32 (!%p115_p2), %s892_s10, 3 }
   0x7   : > { %705 = vmatprep.subr.bf16.mxu0 (!%p115_p2), %v1029_v1  ;;  %633 = vmatpush1.bf16.msra.mxu1 (!%p115_p2), %v1031_v2  ;;  %v1035_v5 = vld [vmem:[%s1414_s1 + $0x114] ss:$8 sps:$4 sm:$0xff] (!%p115_p2)   ;;  %v1037_v6 = vld [vmem:[%s1414_s1 + $0x10] ss:$8 sps:$4 sm:$0xff] (!%p115_p2)   ;;  %v1039_v8 = vld [vmem:[%s1414_s1 + $0x24] ss:$8 sps:$4 sm:$0xff] (!%p115_p2)  }
   0x8   : > { %706 = vmatpush1.bf16.msra.mxu0 (!%p115_p2), %v1032_v3  ;;  %634 = vmatprep.subr.bf16.mxu1 (!%p115_p2), %v1033_v4  ;;  %v1038_v7 = vld [vmem:[%s1414_s1 + $0x110] ss:$8 sps:$4 sm:$0xff] (!%p115_p2)   ;;  %v1041_v9 = vld [vmem:[%s1414_s1 + $0x124] ss:$8 sps:$4 sm:$0xff] (!%p115_p2)   ;;  %v1043_v10 = vld [vmem:[%s1414_s1 + $0x20] ss:$8 sps:$4 sm:$0xff] (!%p115_p2)  }
   0x9   : > { %707 = vmatprep.subr.bf16.mxu0 (!%p115_p2), %v1035_v5  ;;  %v1044_v11 = vld [vmem:[%s1414_s1 + $0x120] ss:$8 sps:$4 sm:$0xff] (!%p115_p2)   ;;  %v1045_v12 = vld [vmem:[%s1414_s1 + $0x34] ss:$8 sps:$4 sm:$0xff] (!%p115_p2)   ;;  %v1049_v14 = vld [vmem:[%s1414_s1 + $0x30] ss:$8 sps:$4 sm:$0xff] (!%p115_p2)  }
   0xa   : > { %v1047_v13 = vld [vmem:[%s1414_s1 + $0x134] ss:$8 sps:$4 sm:$0xff] (!%p115_p2)   ;;  %v1050_v15 = vld [vmem:[%s1414_s1 + $0x130] ss:$8 sps:$4 sm:$0xff] (!%p115_p2)   ;;  %v1051_v16 = vld [vmem:[%s1414_s1 + $0x44] ss:$8 sps:$4 sm:$0xff] (!%p115_p2)  }
   0xb   : > { %635 = vmatpush1.bf16.msra.mxu1 (!%p115_p2), %v1037_v6  ;;  %v1053_v17 = vld [vmem:[%s1414_s1 + $0x144] ss:$8 sps:$4 sm:$0xff] (!%p115_p2)   ;;  %v1055_v18 = vld [vmem:[%s1414_s1 + $0x40] ss:$8 sps:$4 sm:$0xff] (!%p115_p2)   ;;  %v1057_v20 = vld [vmem:[%s1414_s1 + $0x54] ss:$8 sps:$4 sm:$0xff] (!%p115_p2)  }
   0xc   : > { %708 = vmatpush1.bf16.msra.mxu0 (!%p115_p2), %v1038_v7  ;;  %636 = vmatprep.subr.bf16.mxu1 (!%p115_p2), %v1039_v8  ;;  %v1056_v19 = vld [vmem:[%s1414_s1 + $0x140] ss:$8 sps:$4 sm:$0xff] (!%p115_p2)   ;;  %v1059_v21 = vld [vmem:[%s1414_s1 + $0x154] ss:$8 sps:$4 sm:$0xff] (!%p115_p2)   ;;  %v1061_v22 = vld [vmem:[%s1414_s1 + $0x50] ss:$8 sps:$4 sm:$0xff] (!%p115_p2)  }
   0xd   : > { %709 = vmatprep.subr.bf16.mxu0 %v1041_v9  ;;  %v1062_v23 = vld [vmem:[%s1414_s1 + $0x150] ss:$8 sps:$4 sm:$0xff]   ;;  %v1063_v24 = vld [vmem:[%s1414_s1 + $0x64] ss:$8 sps:$4 sm:$0xff]   ;;  %v1067_v26 = vld [vmem:[%s1414_s1 + $0x60] ss:$8 sps:$4 sm:$0xff]  }
   0xe   : > { %v1065_v25 = vld [vmem:[%s1414_s1 + $0x164] ss:$8 sps:$4 sm:$0xff]   ;;  %v1068_v27 = vld [vmem:[%s1414_s1 + $0x160] ss:$8 sps:$4 sm:$0xff]   ;;  %v1069_v28 = vld [vmem:[%s1414_s1 + $0x74] ss:$8 sps:$4 sm:$0xff]  }
   0xf   : > { %637 = vmatpush1.bf16.msra.mxu1 %v1043_v10  ;;  %v1071_v29 = vld [vmem:[%s1414_s1 + $0x174] ss:$8 sps:$4 sm:$0xff]   ;;  %v1073_v30 = vld [vmem:[%s1414_s1 + $0x70] ss:$8 sps:$4 sm:$0xff]   ;;  %v1075_v32 = vld [vmem:[%s1414_s1 + $0x84] ss:$8 sps:$4 sm:$0xff]  }
  0x10   : > { %710 = vmatpush1.bf16.msra.mxu0 %v1044_v11  ;;  %638 = vmatprep.subr.bf16.mxu1 %v1045_v12  ;;  %v1074_v31 = vld [vmem:[%s1414_s1 + $0x170] ss:$8 sps:$4 sm:$0xff]   ;;  %v1077_v33 = vld [vmem:[%s1414_s1 + $0x184] ss:$8 sps:$4 sm:$0xff]   ;;  %p139_p3 = scmp.lt.s32.totalorder %s897_s19, 15 }
  0x11   : > { %711 = vmatprep.subr.bf16.mxu0 %v1047_v13  ;;  %v1079_v34 = vld [vmem:[%s1414_s1 + $0x80] ss:$8 sps:$4 sm:$0xff]   ;;  %v1081_v36 = vld [vmem:[%s1414_s1 + $0x94] ss:$8 sps:$4 sm:$0xff]   ;;  %v1085_v38 = vld [vmem:[%s1414_s1 + $0x90] ss:$8 sps:$4 sm:$0xff]  }
  0x12   : > { %v1080_v35 = vld [vmem:[%s1414_s1 + $0x180] ss:$8 sps:$4 sm:$0xff]   ;;  %v1083_v37 = vld [vmem:[%s1414_s1 + $0x194] ss:$8 sps:$4 sm:$0xff]   ;;  %s1417_s19 = smov (!%p139_p3, %s897_s19), 15 }
  0x13   : > { %639 = vmatpush1.bf16.msra.mxu1 %v1049_v14  ;;  %v1086_v39 = vld [vmem:[%s1414_s1 + $0x190] ss:$8 sps:$4 sm:$0xff]   ;;  %v1087_v40 = vld [vmem:[%s1414_s1 + $0xa4] ss:$8 sps:$4 sm:$0xff]   ;;  %s993_s17 = sshll.u32 %s1417_s19, 4  ;;  %s994_s14 = sshll.u32 %s1417_s19, 3 }
  0x14   : > { %712 = vmatpush1.bf16.msra.mxu0 %v1050_v15  ;;  %640 = vmatprep.subr.bf16.mxu1 %v1051_v16  ;;  %v1089_v41 = vld [vmem:[%s1414_s1 + $0x1a4] ss:$8 sps:$4 sm:$0xff]   ;;  %v1091_v42 = vld [vmem:[%s1414_s1 + $0xa0] ss:$8 sps:$4 sm:$0xff]   ;;  %v1093_v44 = vld [vmem:[%s1414_s1 + $0xb4] ss:$8 sps:$4 sm:$0xff]   ;;  %s1321_s27 = scalar_lea.vmem %s1413_s0, %s993_s17  ;;  %s1400_s17 = scalar_lea.vmem %s1415_s2, %s994_s14 }
  0x15   : > { %713 = vmatprep.subr.bf16.mxu0 %v1053_v17  ;;  %v1092_v43 = vld [vmem:[%s1414_s1 + $0x1a0] ss:$8 sps:$4 sm:$0xff]   ;;  %v1095_v45 = vld [vmem:[%s1414_s1 + $0x1b4] ss:$8 sps:$4 sm:$0xff]   ;;  %v1097_v46 = vld [vmem:[%s1414_s1 + $0xb0] ss:$8 sps:$4 sm:$0xff]  }
  0x16   : > { %v1098_v47 = vld [vmem:[%s1414_s1 + $0x1b0] ss:$8 sps:$4 sm:$0xff]   ;;  %v1099_v48 = vld [vmem:[%s1414_s1 + $0xc4] ss:$8 sps:$4 sm:$0xff]   ;;  %v1103_v52 = vld [vmem:[%s1414_s1 + $0xc0] ss:$8 sps:$4 sm:$0xff]  }
  0x17   : > { %641 = vmatpush1.bf16.msra.mxu1 %v1055_v18  ;;  %v1125_v49 = vld [vmem:[%s1321_s27 + $0x4] ss:$16 sps:$4 sm:$0xff]   ;;  %v1128_v51 = vld [vmem:[%s1321_s27 + $0xc] ss:$16 sps:$4 sm:$0xff]   ;;  %v1104_v53 = vld [vmem:[%s1414_s1 + $0x1c0] ss:$8 sps:$4 sm:$0xff]  }
  0x18   : > { %714 = vmatpush1.bf16.msra.mxu0 %v1056_v19  ;;  %642 = vmatprep.subr.bf16.mxu1 %v1057_v20  ;;  %v1101_v50 = vld [vmem:[%s1414_s1 + $0x1c4] ss:$8 sps:$4 sm:$0xff]   ;;  %v1105_v54 = vld [vmem:[%s1414_s1 + $0xd4] ss:$8 sps:$4 sm:$0xff]   ;;  %v1109_v56 = vld [vmem:[%s1414_s1 + $0xd0] ss:$8 sps:$4 sm:$0xff]  }
  0x19   : > { %715 = vmatprep.subr.bf16.mxu0 %v1059_v21  ;;  %664 = vmatprep.mubr.bf16.mxu1 %v1125_v49  ;;  %v1107_v55 = vld [vmem:[%s1414_s1 + $0x1d4] ss:$8 sps:$4 sm:$0xff]   ;;  %v1110_v57 = vld [vmem:[%s1414_s1 + $0x1d0] ss:$8 sps:$4 sm:$0xff]   ;;  %v1111_v58 = vld [vmem:[%s1414_s1 + $0xe4] ss:$8 sps:$4 sm:$0xff]  }
  0x1a   : > { %737 = vmatprep.mubr.bf16.mxu0 %v1128_v51  ;;  %v1113_v59 = vld [vmem:[%s1414_s1 + $0x1e4] ss:$8 sps:$4 sm:$0xff]   ;;  %v1115_v60 = vld [vmem:[%s1414_s1 + $0xe0] ss:$8 sps:$4 sm:$0xff]   ;;  %v1117_v62 = vld [vmem:[%s1414_s1 + $0xf4] ss:$8 sps:$4 sm:$0xff]  }
  0x1b   : > { %643 = vmatpush1.bf16.msra.mxu1 %v1061_v22  ;;  %v1116_v61 = vld [vmem:[%s1414_s1 + $0x1e0] ss:$8 sps:$4 sm:$0xff]   ;;  %v1119_v63 = vld [vmem:[%s1414_s1 + $0x1f4] ss:$8 sps:$4 sm:$0xff]   ;;  %v1121_v0 = vld [vmem:[%s1414_s1 + $0xf0] ss:$8 sps:$4 sm:$0xff]  }
  0x1c   : > { %716 = vmatpush1.bf16.msra.mxu0 %v1062_v23  ;;  %644 = vmatprep.subr.bf16.mxu1 %v1063_v24  ;;  %v1122_v1 = vld [vmem:[%s1414_s1 + $0x1f0] ss:$8 sps:$4 sm:$0xff]   ;;  %v1129_v4 = vld [vmem:[%s1321_s27 + $0x24] ss:$16 sps:$4 sm:$0xff]   ;;  %v1131_v5 = vld [vmem:[%s1321_s27 + $0x2c] ss:$16 sps:$4 sm:$0xff]  }
  0x1d   : > { %717 = vmatprep.subr.bf16.mxu0 %v1065_v25  ;;  %v1123_v2 = vld [vmem:[%s1321_s27] ss:$16 sps:$4 sm:$0xff]   ;;  %v1126_v3 = vld [vmem:[%s1321_s27 + $0x8] ss:$16 sps:$4 sm:$0xff]   ;;  %v1135_v8 = vld [vmem:[%s1321_s27 + $0x44] ss:$16 sps:$4 sm:$0xff]  }
  0x1e   : > { %v1133_v6 = vld [vmem:[%s1321_s27 + $0x20] ss:$16 sps:$4 sm:$0xff]   ;;  %v1134_v7 = vld [vmem:[%s1321_s27 + $0x28] ss:$16 sps:$4 sm:$0xff]   ;;  %v1137_v9 = vld [vmem:[%s1321_s27 + $0x4c] ss:$16 sps:$4 sm:$0xff]  }
  0x1f   : > { %645 = vmatpush1.bf16.msra.mxu1 %v1067_v26  ;;  %v1139_v10 = vld [vmem:[%s1321_s27 + $0x40] ss:$16 sps:$4 sm:$0xff]   ;;  %v1140_v11 = vld [vmem:[%s1321_s27 + $0x48] ss:$16 sps:$4 sm:$0xff]   ;;  %v1141_v12 = vld [vmem:[%s1321_s27 + $0x64] ss:$16 sps:$4 sm:$0xff]  }
  0x20   : > { %718 = vmatpush1.bf16.msra.mxu0 %v1068_v27  ;;  %646 = vmatprep.subr.bf16.mxu1 %v1069_v28  ;;  %v1143_v13 = vld [vmem:[%s1321_s27 + $0x6c] ss:$16 sps:$4 sm:$0xff]   ;;  %v1145_v14 = vld [vmem:[%s1321_s27 + $0x60] ss:$16 sps:$4 sm:$0xff]   ;;  %v1146_v15 = vld [vmem:[%s1321_s27 + $0x68] ss:$16 sps:$4 sm:$0xff]  }
  0x21   : > { %719 = vmatprep.subr.bf16.mxu0 %v1071_v29 }
  0x23   : > { %647 = vmatpush1.bf16.msra.mxu1 %v1073_v30 }
  0x24   : > { %720 = vmatpush1.bf16.msra.mxu0 %v1074_v31  ;;  %648 = vmatprep.subr.bf16.mxu1 %v1075_v32 }
  0x25   : > { %721 = vmatprep.subr.bf16.mxu0 %v1077_v33 }
  0x27   : > { %649 = vmatpush1.bf16.msra.mxu1 %v1079_v34 }
  0x28   : > { %722 = vmatpush1.bf16.msra.mxu0 %v1080_v35  ;;  %650 = vmatprep.subr.bf16.mxu1 %v1081_v36 }
  0x29   : > { %723 = vmatprep.subr.bf16.mxu0 %v1083_v37 }
  0x2b   : > { %651 = vmatpush1.bf16.msra.mxu1 %v1085_v38 }
  0x2c   : > { %724 = vmatpush1.bf16.msra.mxu0 %v1086_v39  ;;  %652 = vmatprep.subr.bf16.mxu1 %v1087_v40 }
  0x2d   : > { %725 = vmatprep.subr.bf16.mxu0 %v1089_v41 }
  0x2f   : > { %653 = vmatpush1.bf16.msra.mxu1 %v1091_v42 }
  0x30   : > { %726 = vmatpush1.bf16.msra.mxu0 %v1092_v43  ;;  %654 = vmatprep.subr.bf16.mxu1 %v1093_v44 }
  0x31   : > { %727 = vmatprep.subr.bf16.mxu0 %v1095_v45 }
  0x33   : > { %655 = vmatpush1.bf16.msra.mxu1 %v1097_v46 }
  0x34   : > { %728 = vmatpush1.bf16.msra.mxu0 %v1098_v47  ;;  %656 = vmatprep.subr.bf16.mxu1 %v1099_v48 }
  0x35   : > { %729 = vmatprep.subr.bf16.mxu0 %v1101_v50 }
  0x37   : > { %657 = vmatpush1.bf16.msra.mxu1 %v1103_v52 }
  0x38   : > { %730 = vmatpush1.bf16.msra.mxu0 %v1104_v53  ;;  %658 = vmatprep.subr.bf16.mxu1 %v1105_v54 }
  0x39   : > { %731 = vmatprep.subr.bf16.mxu0 %v1107_v55 }
  0x3b   : > { %659 = vmatpush1.bf16.msra.mxu1 %v1109_v56 }
  0x3c   : > { %732 = vmatpush1.bf16.msra.mxu0 %v1110_v57  ;;  %660 = vmatprep.subr.bf16.mxu1 %v1111_v58 }
  0x3d   : > { %733 = vmatprep.subr.bf16.mxu0 %v1113_v59 }
  0x3f   : > { %661 = vmatpush1.bf16.msra.mxu1 %v1115_v60 }
  0x40   : > { %734 = vmatpush1.bf16.msra.mxu0 %v1116_v61  ;;  %662 = vmatprep.subr.bf16.mxu1 %v1117_v62 }
  0x41   : > { %735 = vmatprep.subr.bf16.mxu0 %v1119_v63 }
  0x43   : > { %663 = vmatpush1.bf16.msra.mxu1 %v1121_v0 }
  0x44   : > { %736 = vmatpush1.bf16.msra.mxu0 %v1122_v1 }
  0x46   : > { %665 = vmatmul.mubr.bf16.vlgmr.msra.gmra.mrb[0].mxu1 %v1123_v2 }
  0x47   : > { %738 = vmatmul.mubr.bf16.vlgmr.msra.gmra.mrb[0].mxu0 %v1126_v3  ;;  %674 = vmatprep.mubr.bf16.mxu1 %v1129_v4 }
  0x48   : > { %747 = vmatprep.mubr.bf16.mxu0 %v1131_v5 }
  0x4e   : > { %675 = vmatmul.mubr.bf16.gmra.mrb[4].mxu1 %v1133_v6 }
  0x4f   : > { %748 = vmatmul.mubr.bf16.gmra.mrb[4].mxu0 %v1134_v7  ;;  %684 = vmatprep.mubr.bf16.mxu1 %v1135_v8 }
  0x50   : > { %757 = vmatprep.mubr.bf16.mxu0 %v1137_v9 }
  0x56   : > { %685 = vmatmul.mubr.bf16.gmra.mrb[8].mxu1 %v1139_v10 }
  0x57   : > { %758 = vmatmul.mubr.bf16.gmra.mrb[8].mxu0 %v1140_v11  ;;  %694 = vmatprep.mubr.bf16.mxu1 %v1141_v12 }
  0x58   : > { %767 = vmatprep.mubr.bf16.mxu0 %v1143_v13 }
  0x5e   : > { %695 = vmatmul.mubr.bf16.gmra.mrb[12].mxu1 %v1145_v14 }
  0x5f   : > { %768 = vmatmul.mubr.bf16.gmra.mrb[12].mxu0 %v1146_v15 }
 0x119   : > { %v666_v16 = vpop.f32.mrb[0].mxu1 }
 0x11a   : > { %v739_v17 = vpop.f32.mrb[0].mxu0  ;;  %v668_v19 = vpop.f32.mrb[1].mxu1 }
 0x11b   : > { %v740_v18 = vadd.f32 %v739_v17, %v666_v16  ;;  %v741_v20 = vpop.f32.mrb[1].mxu0  ;;  %v670_v22 = vpop.f32.mrb[2].mxu1 }
 0x11c   : > { %v742_v21 = vadd.f32 %v741_v20, %v668_v19  ;;  %v743_v23 = vpop.f32.mrb[2].mxu0  ;;  %v672_v25 = vpop.f32.mrb[3].mxu1 }
 0x11d   : > { %v744_v24 = vadd.f32 %v743_v23, %v670_v22  ;;  %v745_v26 = vpop.f32.mrb[3].mxu0 }
 0x11e   : > { %v995_v27 = vpack.c.bf16 %v742_v21, %v740_v18  ;;  %v746_v28 = vadd.f32 %v745_v26, %v672_v25 }
 0x120   : > { %826 = vst [vmem:[%s1400_s17] sm:$0xff] %v995_v27  ;;  %v996_v29 = vpack.c.bf16 %v746_v28, %v744_v24 }
 0x121   : > { %v676_v30 = vpop.f32.mrb[4].mxu1 }
 0x122   : > { %827 = vst [vmem:[%s1400_s17 + $0x8] sm:$0xff] %v996_v29  ;;  %v749_v31 = vpop.f32.mrb[4].mxu0  ;;  %v678_v33 = vpop.f32.mrb[5].mxu1 }
 0x123   : > { %v750_v32 = vadd.f32 %v749_v31, %v676_v30  ;;  %v751_v34 = vpop.f32.mrb[5].mxu0  ;;  %v680_v36 = vpop.f32.mrb[6].mxu1 }
 0x124   : > { %v752_v35 = vadd.f32 %v751_v34, %v678_v33  ;;  %v753_v37 = vpop.f32.mrb[6].mxu0  ;;  %v682_v39 = vpop.f32.mrb[7].mxu1 }
 0x125   : > { %v754_v38 = vadd.f32 %v753_v37, %v680_v36  ;;  %v755_v40 = vpop.f32.mrb[7].mxu0 }
 0x126   : > { %v997_v41 = vpack.c.bf16 %v752_v35, %v750_v32  ;;  %v756_v42 = vadd.f32 %v755_v40, %v682_v39 }
 0x128   : > { %828 = vst [vmem:[%s1400_s17 + $0x10] sm:$0xff] %v997_v41  ;;  %v998_v43 = vpack.c.bf16 %v756_v42, %v754_v38 }
 0x129   : > { %v686_v44 = vpop.f32.mrb[8].mxu1 }
 0x12a   : > { %829 = vst [vmem:[%s1400_s17 + $0x18] sm:$0xff] %v998_v43  ;;  %v759_v45 = vpop.f32.mrb[8].mxu0  ;;  %v688_v47 = vpop.f32.mrb[9].mxu1 }
 0x12b   : > { %v760_v46 = vadd.f32 %v759_v45, %v686_v44  ;;  %v761_v48 = vpop.f32.mrb[9].mxu0  ;;  %v690_v50 = vpop.f32.mrb[10].mxu1 }
 0x12c   : > { %v762_v49 = vadd.f32 %v761_v48, %v688_v47  ;;  %v763_v51 = vpop.f32.mrb[10].mxu0  ;;  %v692_v53 = vpop.f32.mrb[11].mxu1 }
 0x12d   : > { %v764_v52 = vadd.f32 %v763_v51, %v690_v50  ;;  %v765_v54 = vpop.f32.mrb[11].mxu0 }
 0x12e   : > { %v999_v55 = vpack.c.bf16 %v762_v49, %v760_v46  ;;  %v766_v56 = vadd.f32 %v765_v54, %v692_v53 }
 0x130   : > { %830 = vst [vmem:[%s1400_s17 + $0x20] sm:$0xff] %v999_v55  ;;  %v1000_v57 = vpack.c.bf16 %v766_v56, %v764_v52 }
 0x131   : > { %v696_v58 = vpop.f32.mrb[12].mxu1 }
 0x132   : > { %831 = vst [vmem:[%s1400_s17 + $0x28] sm:$0xff] %v1000_v57  ;;  %v769_v59 = vpop.f32.mrb[12].mxu0  ;;  %v698_v61 = vpop.f32.mrb[13].mxu1 }
 0x133   : > { %v770_v60 = vadd.f32 %v769_v59, %v696_v58  ;;  %v771_v62 = vpop.f32.mrb[13].mxu0  ;;  %v700_v0 = vpop.f32.mrb[14].mxu1 }
 0x134   : > { %v772_v63 = vadd.f32 %v771_v62, %v698_v61  ;;  %v773_v1 = vpop.f32.mrb[14].mxu0  ;;  %v702_v3 = vpop.f32.mrb[15].mxu1 }
 0x135   : > { %v774_v2 = vadd.f32 %v773_v1, %v700_v0  ;;  %v775_v4 = vpop.f32.mrb[15].mxu0 }
 0x136   : > { %v1001_v5 = vpack.c.bf16 %v772_v63, %v770_v60  ;;  %v776_v6 = vadd.f32 %v775_v4, %v702_v3 }
 0x138   : > { %832 = vst [vmem:[%s1400_s17 + $0x30] sm:$0xff] %v1001_v5  ;;  %v1002_v7 = vpack.c.bf16 %v776_v6, %v774_v2 }
 0x13a   : > { %833 = vst [vmem:[%s1400_s17 + $0x38] sm:$0xff] %v1002_v7 }
 0x13b PF: > { %s12_s9 = sadd.s32 1, %s1153_s9  }
 0x13c   : > { %p9_p4 = scmp.ge.s32.totalorder %s12_s9, 4  }
 0x13e   :  { %11 = sbr.rel (!%p9_p4) target bundleno = 1 (0x1), region = 58 }

// kernel: generator_forward.6
= control target key start
LH: loop header
LB: loop body
LE: loop exit
PB: predicated region body
PF: predicated region fallthrough
CT: control target
= control target key end

     0   :  { %s557_s0 = inlined_call_operand.vmem [shape: bf16[128,128], index: 0, kind: input, shape index: {}]   ;;  %s558_s1 = inlined_call_operand.vmem [shape: f32[1,128], index: 1, kind: input, shape index: {}]   ;;  %s559_s2 = inlined_call_operand.vmem [shape: f32[1,128], index: 2, kind: input, shape index: {}]   ;;  %s560_s3 = inlined_call_operand.vmem [shape: bf16[128,128], index: 3, kind: output, shape index: {}]  }
   0x1   :  { %v298_v0 = vld [vmem:[%s557_s0] sm:$0xff]   ;;  %v369_v1 = vld [vmem:[%s557_s0 + $0x8] sm:$0xff]   ;;  %v370_v5 = vld [vmem:[%s557_s0 + $0x10] sm:$0xff]  }
   0x2   :  { %v413_v2 = vunpack.c.l.bf16 %v298_v0  ;;  %v415_v3 = vunpack.c.h.bf16 %v298_v0  ;;  %v417_v4 = vunpack.c.l.bf16 %v369_v1  ;;  %v422_v6 = vunpack.c.h.bf16 %v369_v1  ;;  %v371_v13 = vld [vmem:[%s557_s0 + $0x18] sm:$0xff]   ;;  %v372_v22 = vld [vmem:[%s557_s0 + $0x20] sm:$0xff]   ;;  %v373_v31 = vld [vmem:[%s557_s0 + $0x28] sm:$0xff]  }
   0x3   :  { %v430_v10 = vunpack.c.l.bf16 %v370_v5  ;;  %v438_v14 = vunpack.c.h.bf16 %v370_v5  ;;  %v443_v18 = vunpack.c.l.bf16 %v371_v13  ;;  %v451_v23 = vunpack.c.h.bf16 %v371_v13  ;;  %v374_v40 = vld [vmem:[%s557_s0 + $0x30] sm:$0xff]   ;;  %v375_v49 = vld [vmem:[%s557_s0 + $0x38] sm:$0xff]   ;;  %s386_s0 = smov 64  }
   0x4   :  { %v46_v7 = vadd.f32 %v415_v3, %v413_v2  ;;  %v67_v8 = vmul.f32 %v413_v2, %v413_v2  ;;  %v68_v9 = vmul.f32 %v415_v3, %v415_v3  ;;  %v69_v12 = vmul.f32 %v417_v4, %v417_v4 }
   0x5   :  { %v70_v16 = vmul.f32 %v422_v6, %v422_v6  ;;  %v71_v20 = vmul.f32 %v430_v10, %v430_v10  ;;  %v72_v25 = vmul.f32 %v438_v14, %v438_v14  ;;  %v456_v27 = vunpack.c.l.bf16 %v372_v22 }
   0x6   :  { %v47_v11 = vadd.f32 %v417_v4, %v46_v7  ;;  %v83_v17 = vadd.f32 %v68_v9, %v67_v8  ;;  %v73_v29 = vmul.f32 %v443_v18, %v443_v18  ;;  %v464_v32 = vunpack.c.h.bf16 %v372_v22 }
   0x7   :  { %v74_v34 = vmul.f32 %v451_v23, %v451_v23  ;;  %v469_v36 = vunpack.c.l.bf16 %v373_v31  ;;  %v75_v38 = vmul.f32 %v456_v27, %v456_v27  ;;  %v477_v41 = vunpack.c.h.bf16 %v373_v31 }
   0x8   :  { %v48_v15 = vadd.f32 %v422_v6, %v47_v11  ;;  %v84_v21 = vadd.f32 %v83_v17, %v69_v12  ;;  %v76_v43 = vmul.f32 %v464_v32, %v464_v32  ;;  %v482_v45 = vunpack.c.l.bf16 %v374_v40 }
   0x9   :  { %v77_v47 = vmul.f32 %v469_v36, %v469_v36  ;;  %v490_v50 = vunpack.c.h.bf16 %v374_v40  ;;  %v78_v52 = vmul.f32 %v477_v41, %v477_v41  ;;  %v495_v54 = vunpack.c.l.bf16 %v375_v49  ;;  %v114_v40 = vld [vmem:[%s558_s1] sm:$0x1] }
   0xa   :  { %v49_v19 = vadd.f32 %v430_v10, %v48_v15  ;;  %v85_v26 = vadd.f32 %v84_v21, %v70_v16  ;;  %v79_v56 = vmul.f32 %v482_v45, %v482_v45  ;;  %v500_v58 = vunpack.c.h.bf16 %v375_v49 }
   0xb   :  { %v80_v60 = vmul.f32 %v490_v50, %v490_v50  ;;  %v81_v63 = vmul.f32 %v495_v54, %v495_v54 }
   0xc   :  { %v50_v24 = vadd.f32 %v438_v14, %v49_v19  ;;  %v86_v30 = vadd.f32 %v85_v26, %v71_v20  ;;  %v82_v5 = vmul.f32 %v500_v58, %v500_v58 }
   0xe   :  { %v51_v28 = vadd.f32 %v443_v18, %v50_v24  ;;  %v87_v35 = vadd.f32 %v86_v30, %v72_v25 }
  0x10   :  { %v52_v33 = vadd.f32 %v451_v23, %v51_v28  ;;  %v88_v39 = vadd.f32 %v87_v35, %v73_v29 }
  0x12   :  { %v53_v37 = vadd.f32 %v456_v27, %v52_v33  ;;  %v89_v44 = vadd.f32 %v88_v39, %v74_v34 }
  0x14   :  { %v54_v42 = vadd.f32 %v464_v32, %v53_v37  ;;  %v90_v48 = vadd.f32 %v89_v44, %v75_v38  ;;  %v122_v38 = vlaneseq }
  0x16   :  { %v55_v46 = vadd.f32 %v469_v36, %v54_v42  ;;  %v91_v53 = vadd.f32 %v90_v48, %v76_v43  ;;  %v123_v39 = vshrl.u32 %v122_v38, 7 }
  0x18   :  { %v56_v51 = vadd.f32 %v477_v41, %v55_v46  ;;  %v92_v57 = vadd.f32 %v91_v53, %v77_v47  ;;  %v124_v42 = vsub.s32 0, %v123_v39  ;;  %v118_v46 = vld [vmem:[%s559_s2] sm:$0x1] }
  0x1a   :  { %v57_v55 = vadd.f32 %v482_v45, %v56_v51  ;;  %v93_v61 = vadd.f32 %v92_v57, %v78_v52 }
  0x1c   :  { %v58_v59 = vadd.f32 %v490_v50, %v57_v55  ;;  %v94_v0 = vadd.f32 %v93_v61, %v79_v56 }
  0x1e   :  { %v59_v62 = vadd.f32 %v495_v54, %v58_v59  ;;  %v95_v7 = vadd.f32 %v94_v0, %v80_v60 }
  0x20   :  { %v60_v1 = vadd.f32 %v500_v58, %v59_v62  ;;  %v96_v9 = vadd.f32 %v95_v7, %v81_v63 }
  0x22   :  { %v61_v8 = vrot.slane %v60_v1, 4  ;;  %v97_v12 = vadd.f32 %v96_v9, %v82_v5 }
  0x24   :  { %v62_v11 = vadd.f32 %v61_v8, %v60_v1  ;;  %v98_v15 = vrot.slane %v97_v12, 4 }
  0x26   :  { %v63_v13 = vrot.slane %v62_v11, 2  ;;  %v99_v17 = vadd.f32 %v98_v15, %v97_v12 }
  0x28   :  { %v64_v16 = vadd.f32 %v63_v13, %v62_v11  ;;  %v100_v20 = vrot.slane %v99_v17, 2 }
  0x2a   :  { %v65_v19 = vrot.slane %v64_v16, 1  ;;  %v101_v22 = vadd.f32 %v100_v20, %v99_v17 }
  0x2c   :  { %v66_v21 = vadd.f32 %v65_v19, %v64_v16  ;;  %v102_v24 = vrot.slane %v101_v22, 1 }
  0x2e   :  { %104 = vrot.lane.b32.xlu0 %v66_v21, %s386_s0  ;;  %v103_v25 = vadd.f32 %v102_v24, %v101_v22 }
  0x32   :  { %107 = vrot.lane.b32.xlu0 %v103_v25, %s386_s0 }
  0xa0   :  { %v105_v26 = vpop.permute.xlu0 %104 }
  0xa1   :  { %v106_v28 = vadd.f32 %v105_v26, %v66_v21 }
  0xa3   :  { %v110_v29 = vmul.f32 0.00390625, %v106_v28 }
  0xa4   :  { %v108_v30 = vpop.permute.xlu0 %107 }
  0xa5   :  { %v109_v31 = vadd.f32 %v108_v30, %v103_v25  ;;  %v112_v33 = vmul.f32 %v110_v29, %v110_v29 }
  0xa7   :  { %v111_v34 = vmul.f32 0.00390625, %v109_v31 }
  0xa9   :  { %v113_v35 = vsub.f32 %v111_v34, %v112_v33 }
  0xab   :  { %v115_v37 = vadd.f32 1e-05, %v113_v35 }
  0xad   :  { %384 = vrsqrt.f32 %v115_v37 }
  0xb7   :  { %v385_v43 = vpop.eup %384 }
  0xb8   :  { %v117_v44 = vmul.f32 %v385_v43, %v114_v40 }
  0xba   :  { %v119_v47 = vmul.f32 %v117_v44, %v110_v29  ;;  %v125_v48 = vrot.slane %v117_v44, %v124_v42 }
  0xbc   :  { %v120_v49 = vsub.f32 %v118_v46, %v119_v47  ;;  %v127_v51 = vmul.f32 %v413_v2, %v125_v48  ;;  %v128_v52 = vmul.f32 %v415_v3, %v125_v48  ;;  %v129_v53 = vmul.f32 %v417_v4, %v125_v48 }
  0xbd   :  { %v130_v55 = vmul.f32 %v422_v6, %v125_v48  ;;  %v131_v56 = vmul.f32 %v430_v10, %v125_v48  ;;  %v132_v57 = vmul.f32 %v438_v14, %v125_v48  ;;  %v133_v59 = vmul.f32 %v443_v18, %v125_v48 }
  0xbe   :  { %v134_v60 = vmul.f32 %v451_v23, %v125_v48  ;;  %v135_v61 = vmul.f32 %v456_v27, %v125_v48  ;;  %v136_v62 = vmul.f32 %v464_v32, %v125_v48  ;;  %v137_v2 = vmul.f32 %v469_v36, %v125_v48 }
  0xbf   :  { %v138_v3 = vmul.f32 %v477_v41, %v125_v48  ;;  %v147_v63 = vrot.slane %v120_v49, %v124_v42  ;;  %v139_v4 = vmul.f32 %v482_v45, %v125_v48  ;;  %v140_v6 = vmul.f32 %v490_v50, %v125_v48 }
  0xc0   :  { %v141_v10 = vmul.f32 %v495_v54, %v125_v48  ;;  %v142_v14 = vmul.f32 %v500_v58, %v125_v48 }
  0xc1   :  { %v149_v18 = vadd.f32 %v147_v63, %v127_v51  ;;  %v150_v0 = vadd.f32 %v147_v63, %v128_v52  ;;  %v151_v23 = vadd.f32 %v147_v63, %v129_v53  ;;  %v152_v1 = vadd.f32 %v147_v63, %v130_v55 }
  0xc2   :  { %v153_v27 = vadd.f32 %v147_v63, %v131_v56  ;;  %v154_v5 = vadd.f32 %v147_v63, %v132_v57  ;;  %v155_v32 = vadd.f32 %v147_v63, %v133_v59  ;;  %v156_v7 = vadd.f32 %v147_v63, %v134_v60 }
  0xc3   :  { %v157_v36 = vadd.f32 %v147_v63, %v135_v61  ;;  %v158_v8 = vadd.f32 %v147_v63, %v136_v62  ;;  %v159_v41 = vadd.f32 %v147_v63, %v137_v2  ;;  %v160_v9 = vadd.f32 %v147_v63, %v138_v3 }
  0xc4   :  { %v161_v11 = vadd.f32 %v147_v63, %v139_v4  ;;  %v162_v45 = vadd.f32 %v147_v63, %v140_v6  ;;  %v163_v12 = vadd.f32 %v147_v63, %v141_v10  ;;  %v164_v50 = vadd.f32 %v147_v63, %v142_v14 }
  0xc5   :  { %v165_v13 = vmax.f32 %v149_v18, 0.0  ;;  %v166_v54 = vmax.f32 %v150_v0, 0.0  ;;  %v167_v15 = vmax.f32 %v151_v23, 0.0  ;;  %v168_v58 = vmax.f32 %v152_v1, 0.0 }
  0xc6   :  { %v169_v16 = vmax.f32 %v153_v27, 0.0  ;;  %v170_v17 = vmax.f32 %v154_v5, 0.0  ;;  %v171_v19 = vmax.f32 %v155_v32, 0.0  ;;  %v172_v20 = vmax.f32 %v156_v7, 0.0 }
  0xc7   :  { %v173_v21 = vmax.f32 %v157_v36, 0.0  ;;  %v174_v22 = vmax.f32 %v158_v8, 0.0  ;;  %v175_v24 = vmax.f32 %v159_v41, 0.0  ;;  %v176_v25 = vmax.f32 %v160_v9, 0.0 }
  0xc8   :  { %v177_v26 = vmax.f32 %v161_v11, 0.0  ;;  %v178_v28 = vmax.f32 %v162_v45, 0.0  ;;  %v179_v29 = vmax.f32 %v163_v12, 0.0  ;;  %v180_v30 = vmax.f32 %v164_v50, 0.0 }
  0xc9   :  { %v332_v31 = vpack.c.bf16 %v166_v54, %v165_v13  ;;  %v337_v33 = vpack.c.bf16 %v168_v58, %v167_v15  ;;  %v342_v34 = vpack.c.bf16 %v170_v17, %v169_v16  ;;  %v347_v35 = vpack.c.bf16 %v172_v20, %v171_v19 }
  0xca   :  { %v352_v37 = vpack.c.bf16 %v174_v22, %v173_v21  ;;  %v357_v38 = vpack.c.bf16 %v176_v25, %v175_v24  ;;  %v362_v39 = vpack.c.bf16 %v178_v28, %v177_v26  ;;  %v367_v40 = vpack.c.bf16 %v180_v30, %v179_v29 }
  0xcb   :  { %333 = vst [vmem:[%s560_s3] sm:$0xff] %v332_v31   ;;  %376 = vst [vmem:[%s560_s3 + $0x8] sm:$0xff] %v337_v33  }
  0xcc   :  { %377 = vst [vmem:[%s560_s3 + $0x10] sm:$0xff] %v342_v34   ;;  %378 = vst [vmem:[%s560_s3 + $0x18] sm:$0xff] %v347_v35  }
  0xcd   :  { %379 = vst [vmem:[%s560_s3 + $0x20] sm:$0xff] %v352_v37   ;;  %380 = vst [vmem:[%s560_s3 + $0x28] sm:$0xff] %v357_v38  }
  0xce   :  { %381 = vst [vmem:[%s560_s3 + $0x30] sm:$0xff] %v362_v39   ;;  %382 = vst [vmem:[%s560_s3 + $0x38] sm:$0xff] %v367_v40  }

// kernel: generator_forward.4
= control target key start
LH: loop header
LB: loop body
LE: loop exit
PB: predicated region body
PF: predicated region fallthrough
CT: control target
= control target key end

     0   :  { %s7538_s0 = inlined_call_operand.hbm [shape: f32[4,32], index: 0, kind: input, shape index: {}]   ;;  %s7539_s1 = inlined_call_operand.hbm [shape: bf16[32,1024], index: 1, kind: input, shape index: {}]   ;;  %s7540_s2 = inlined_call_operand.hbm [shape: f32[1,1024], index: 2, kind: input, shape index: {}]   ;;  %s7541_s3 = inlined_call_operand.hbm [shape: f32[1,1024], index: 3, kind: input, shape index: {}]   ;;  %s7542_s4 = inlined_call_operand.hbm [shape: bf16[1024,2048], index: 4, kind: input, shape index: {}]   ;;  %s7543_s5 = inlined_call_operand.hbm [shape: f32[1,2048], index: 5, kind: input, shape index: {}]   ;;  %s7544_s6 = inlined_call_operand.hbm [shape: f32[1,2048], index: 6, kind: input, shape index: {}]   ;;  %s7545_s7 = inlined_call_operand.vmem [shape: bf16[4,2048], index: 7, kind: output, shape index: {}]  }
   0x1   :  { %7561 = sst [smem:[#allocation19_spill]] %s7538_s0 }
   0x2   :  { %7562 = sst [smem:[#allocation20_spill]] %s7542_s4 }
   0x3   :  { %7563 = sst [smem:[#allocation21_spill]] %s7545_s7 }
   0x4   :  { %12 = vsyncpa [#allocation3], 0 }
   0x5   :  { %13 = vsyncpa [#allocation5], 0 }
   0x6   :  { %14 = vsyncpa [#allocation8], 0  ;;  %s6258_s24 = smov 0   ;;  %s6260_s25 = smov 0  }
   0x7   :  { %s6262_s26 = smov 0   ;;  %s6264_s27 = smov 0  }
   0x8 LB: > { %s6277_s28 = sadd.s32 4294967295, %s6204_s27   ;;  %s6280_s29 = sadd.s32 1, %s6204_s27   ;;  %s6204_s27 = sphi %s6264_s27, %s7603_s27   ;;  %s6200_s26 = sphi %s6262_s26, %s7607_s26   ;;  %s6196_s25 = sphi %s6260_s25, %s7606_s25   ;;  %s6192_s24 = sphi %s6258_s24, %s7605_s24  }
   0x9   : > { %7564 = sst [smem:[#allocation16_spill]] %s6280_s29  ;;  %s108_s30 = ssub.s32 %s6204_s27, %s6280_s29 }
   0xa   : > { %s111_s8 = sadd.s32 1, %s6200_s26  ;;  %p109_p0 = scmp.eq.s32.totalorder %s108_s30, 0 }
   0xb   : > { %p118_p1 = scmp.ne.s32.totalorder %s6200_s26, %s6196_s25  ;;  %p119_p2 = scmp.eq.s32.totalorder %s6204_s27, 0 }
   0xc   : > { %p124_p3 = scmp.ne.s32.totalorder %s6196_s25, %s6192_s24  ;;  %p7546_p5 = scmp.eq.s32.totalorder %s6277_s28, 0 }
   0xd   : > { %s6290_s9 = scalar_select %p109_p0, %s6200_s26, %s111_s8  }
   0xe   : > { %p120_p4 = por %p119_p2, %p118_p1  ;;  %p5213_p6 = scmp.ge.s32.totalorder %s6204_s27, 1 }
   0xf   : > { %7565 = sst [smem:[#allocation17_spill]] %s6290_s9  ;;  %p213_p7 = scmp.lt.s32.totalorder %s6204_s27, 3 }
  0x10   : > { %p6297_p8 = por %p7546_p5, %p124_p3  ;;  %s6206_s12 = smov [#allocation2]  }
  0x11   : > { %p6301_p9 = pnand %p5213_p6, %p213_p7  ;;  %s226_s13 = sshll.u32 %s6206_s12, 4  ;;  %s227_s13 = int_to_ptr.vmem [resolvable:$true] %s226_s13 }
  0x12   : > { %s7566_s10 = scalar_select %p6297_p8, 1, 0 }
  0x13   : > { %s7568_s11 = scalar_select %p6301_p9, 1, 0 }
  0x14   : > { %7567 = sst [smem:[#allocation18_spill]] %s7566_s10  ;;  %p5849_p10 = pneg %p6301_p9 }
  0x15   : > { %p5876_p11 = scmp.lt.s32.totalorder %s6204_s27, 2  ;;  %s272_s16 = sand.u32 1, %s6204_s27  }
  0x16   : > { %p6310_p12 = pnand %p5849_p10, %p7546_p5  ;;  %s7571_s0 = sld [smem:[#allocation19_spill]] }
  0x17   : > { %p6314_p13 = pnand %p5876_p11, %p120_p4 }
  0x18   : > { %s7569_s14 = scalar_select %p6310_p12, 1, 0 }
  0x19   : > { %s7570_s15 = scalar_select %p6314_p13, 1, 0 }
  0x1a   : > { %p6327_p1 = pneg %p6310_p12 }
  0x1c   : > { %s5956_s19 = scalar_lea.hbm %s7571_s0, 64 }
  0x1d   : > { %p5957_p0 = scmp.ne.s32.totalorder %s7571_s0, %s5956_s19  ;;  %p5963_p4 = scmp.lt.u32.totalorder %s5956_s19, %s7571_s0 }
  0x1e   : > { %s7572_s22 = scalar_select %p6327_p1, 1, 0 }
  0x1f   : > { %p5959_p2 = pnand %p6327_p1, %p5957_p0 }
  0x21   : > { %p5960_p3 = pneg %p5959_p2 }
  0x23   : > { %p5965_p6 = pnand %p5963_p4, %p5960_p3 }
  0x25   : > { %5968 = shalt.err (!%p5965_p6)
}
  0x26   : > { %s5969_s30 = scalar_lea.vmem %s227_s13, 64  ;;  %p5977_p5 = scmp.lt.s32.totalorder %s227_s13, %s227_s13 }
  0x27   : > { %p5970_p7 = scmp.ne.s32.totalorder %s227_s13, %s5969_s30  ;;  %p5978_p8 = scmp.lt.s32.totalorder %s5969_s30, %s5969_s30 }
  0x29   : > { %p5972_p10 = pnand %p5970_p7, %p6327_p1  ;;  %p5979_p9 = por %p5978_p8, %p5977_p5 }
  0x2b   : > { %p5973_p11 = pneg %p5972_p10 }
  0x2d   : > { %p5980_p13 = pnand %p5979_p9, %p5973_p11 }
  0x2f   : > { %5983 = shalt.err (!%p5980_p13)
}
  0x30   : > { %5852 = dma.hbm_to_vmem [thread:$0]  (!%p6310_p12), %s7571_s0, 64, %s227_s13, [#allocation3]  }
  0x31   : > { %s7554_s17 = sand.u32 1, %s6200_s26   ;;  %s5776_s19 = sshll.u32 %s6204_s27, 9 }
  0x32   : > { %s5219_s18 = sshll.u32 %s7554_s17, 12  ;;  %s7573_s4 = sld [smem:[#allocation20_spill]] }
  0x33   : > { %s276_s24 = scalar_lea.vmem [#allocation9], %s5219_s18  ;;  %s6354_s8 = scalar_lea.sflag [#allocation3], %s272_s16 }
  0x34   : > { %s283_s30 = sshll.u32 %s276_s24, 4  ;;  %p7574_p8 = scmp.ne.s32.totalorder %s7570_s15, 0  ;;  %s6352_s30 = int_to_ptr.vmem [resolvable:$true] %s283_s30 }
  0x36   : > { %p6360_p9 = pneg %p7574_p8 }
  0x38   : > { %s6350_s23 = scalar_lea.hbm %s7573_s4, %s5776_s19  ;;  %s5989_s18 = scalar_lea.hbm %s7573_s4, 131072 }
  0x39   : > { %s5984_s13 = scalar_lea.hbm %s6350_s23, 65536  ;;  %p5990_p2 = scmp.lt.u32.totalorder %s6350_s23, %s7573_s4 }
  0x3a   : > { %p5985_p5 = scmp.ne.s32.totalorder %s6350_s23, %s5984_s13  ;;  %p5991_p3 = scmp.lt.u32.totalorder %s5989_s18, %s5984_s13 }
  0x3b   : > { %p5993_p6 = scmp.lt.u32.totalorder %s5984_s13, %s6350_s23 }
  0x3c   : > { %p5987_p13 = pnand %p6360_p9, %p5985_p5  ;;  %p5992_p4 = por %p5991_p3, %p5990_p2 }
  0x3e   : > { %p5988_p0 = pneg %p5987_p13  ;;  %p5994_p7 = por %p5993_p6, %p5992_p4 }
  0x40   : > { %p5995_p10 = pnand %p5994_p7, %p5988_p0 }
  0x42   : > { %5998 = shalt.err (!%p5995_p10)
}
  0x43   : > { %s5999_s16 = scalar_lea.vmem %s6352_s30, 65536  ;;  %s6207_s19 = smov [#allocation9]  }
  0x44   : > { %p6000_p11 = scmp.ne.s32.totalorder %s6352_s30, %s5999_s16  ;;  %s6004_s20 = sshll.u32 %s6207_s19, 4  ;;  %s6005_s20 = int_to_ptr.vmem [resolvable:$false] %s6004_s20 }
  0x45   : > { %s6006_s21 = scalar_lea.vmem %s6005_s20, 131072  ;;  %p6007_p12 = scmp.lt.s32.totalorder %s6352_s30, %s6005_s20 }
  0x46   : > { %p6002_p5 = pnand %p6000_p11, %p6360_p9  ;;  %p6008_p1 = scmp.lt.s32.totalorder %s6006_s21, %s5999_s16 }
  0x48   : > { %p6003_p13 = pneg %p6002_p5  ;;  %p6009_p2 = por %p6008_p1, %p6007_p12 }
  0x4a   : > { %p6010_p3 = pnand %p6009_p2, %p6003_p13 }
  0x4c   : > { %6013 = shalt.err (!%p6010_p3)
}
  0x4d   : > { %s6208_s13 = smov 1024   ;;  %s6209_s18 = smov 512  }
  0x4e   : > { %s6210_s24 = smov 32   ;;  %s6211_s17 = smov [#allocation4]  }
  0x4f   : > { %5865 = dma.hbm_to_vmem [thread:$0]  (!%p7574_p8), %s6350_s23, 65536, %s6352_s30, %s6354_s8, %s6208_s13, %s6209_s18, %s6210_s24  }
  0x50   : > { %s236_s19 = sshll.u32 %s6211_s17, 4  ;;  %s7576_s0 = sand.u32 1, %s6200_s26   ;;  %s237_s19 = int_to_ptr.vmem [resolvable:$true] %s236_s19 }
  0x51   : > { %s6386_s4 = sshll.u32 %s7576_s0, 3  ;;  %s6014_s21 = scalar_lea.hbm %s7539_s1, 2048 }
  0x52   : > { %p6015_p12 = scmp.ne.s32.totalorder %s7539_s1, %s6014_s21  ;;  %p7577_p1 = scmp.ne.s32.totalorder %s7572_s22, 0 }
  0x53   : > { %p6021_p6 = scmp.lt.u32.totalorder %s6014_s21, %s7539_s1 }
  0x54   : > { %p6017_p0 = pnand %p6015_p12, %p7577_p1 }
  0x56   : > { %p6018_p4 = pneg %p6017_p0 }
  0x58   : > { %p6023_p7 = pnand %p6021_p6, %p6018_p4 }
  0x5a   : > { %6026 = shalt.err (!%p6023_p7)
}
  0x5b   : > { %s6027_s0 = scalar_lea.vmem %s237_s19, 2048  ;;  %p6035_p13 = scmp.lt.s32.totalorder %s237_s19, %s237_s19 }
  0x5c   : > { %p6028_p10 = scmp.ne.s32.totalorder %s237_s19, %s6027_s0  ;;  %p6036_p2 = scmp.lt.s32.totalorder %s6027_s0, %s6027_s0 }
  0x5e   : > { %p6030_p11 = pnand %p6028_p10, %p7577_p1  ;;  %p6037_p3 = por %p6036_p2, %p6035_p13 }
  0x60   : > { %p6031_p5 = pneg %p6030_p11 }
  0x62   : > { %p6038_p8 = pnand %p6037_p3, %p6031_p5 }
  0x64   : > { %6041 = shalt.err (!%p6038_p8)
}
  0x65   : > { %p7578_p12 = scmp.ne.s32.totalorder %s7569_s14, 0  ;;  %s5777_s7 = sshll.u32 %s6204_s27, 7 }
  0x66   : > { %s297_s10 = scalar_lea.vmem [#allocation10], %s6386_s4  ;;  %s303_s13 = scalar_lea.hbm %s7543_s5, %s5777_s7 }
  0x67   : > { %5855 = dma.hbm_to_vmem [thread:$0]  (!%p7578_p12), %s7539_s1, 2048, %s237_s19, [#allocation5], %s6209_s18, %s6209_s18, %s6210_s24  }
  0x68   : > { %s305_s17 = sshll.u32 %s297_s10, 4  ;;  %s6042_s16 = scalar_lea.hbm %s303_s13, 128  ;;  %s306_s17 = int_to_ptr.vmem [resolvable:$true] %s305_s17 }
  0x69   : > { %p6043_p8 = scmp.ne.s32.totalorder %s303_s13, %s6042_s16  ;;  %s6047_s0 = scalar_lea.hbm %s7543_s5, 256 }
  0x6a   : > { %p6048_p6 = scmp.lt.u32.totalorder %s303_s13, %s7543_s5  ;;  %p6049_p7 = scmp.lt.u32.totalorder %s6047_s0, %s6042_s16 }
  0x6b   : > { %p6045_p0 = pnand %p6043_p8, %p6360_p9  ;;  %p6051_p11 = scmp.lt.u32.totalorder %s6042_s16, %s303_s13 }
  0x6c   : > { %p6050_p10 = por %p6049_p7, %p6048_p6 }
  0x6d   : > { %p6046_p4 = pneg %p6045_p0 }
  0x6e   : > { %p6052_p5 = por %p6051_p11, %p6050_p10 }
  0x70   : > { %p6053_p13 = pnand %p6052_p5, %p6046_p4 }
  0x72   : > { %6056 = shalt.err (!%p6053_p13)
}
  0x73   : > { %s6057_s24 = scalar_lea.vmem %s306_s17, 128  ;;  %s6212_s19 = smov [#allocation10]  }
  0x74   : > { %p6058_p2 = scmp.ne.s32.totalorder %s306_s17, %s6057_s24  ;;  %s6062_s9 = sshll.u32 %s6212_s19, 4  ;;  %s6063_s9 = int_to_ptr.vmem [resolvable:$false] %s6062_s9 }
  0x75   : > { %s6064_s10 = scalar_lea.vmem %s6063_s9, 256  ;;  %p6065_p0 = scmp.lt.s32.totalorder %s306_s17, %s6063_s9 }
  0x76   : > { %p6060_p3 = pnand %p6058_p2, %p6360_p9  ;;  %p6066_p12 = scmp.lt.s32.totalorder %s6064_s10, %s6057_s24 }
  0x78   : > { %p6061_p8 = pneg %p6060_p3  ;;  %p6067_p1 = por %p6066_p12, %p6065_p0 }
  0x7a   : > { %p6068_p6 = pnand %p6067_p1, %p6061_p8 }
  0x7c   : > { %6071 = shalt.err (!%p6068_p6)
}
  0x7d   : > { %p7579_p7 = scmp.ne.s32.totalorder %s7570_s15, 0  ;;  %s6213_s23 = smov [#allocation6]  }
  0x7e   : > { %s250_s30 = sshll.u32 %s6213_s23, 4  ;;  %s6214_s16 = smov [#allocation7]   ;;  %s251_s30 = int_to_ptr.vmem [resolvable:$true] %s250_s30 }
  0x7f   : > { %5868 = dma.hbm_to_vmem [thread:$0]  (!%p7579_p7), %s303_s13, 128, %s306_s17, %s6354_s8  }
  0x80   : > { %s261_s20 = sshll.u32 %s6214_s16, 4  ;;  %s6072_s29 = scalar_lea.hbm %s7540_s2, 128  ;;  %s6426_s20 = int_to_ptr.vmem [resolvable:$true] %s261_s20 }
  0x81   : > { %p6073_p1 = scmp.ne.s32.totalorder %s7540_s2, %s6072_s29  ;;  %p7580_p12 = scmp.ne.s32.totalorder %s7572_s22, 0 }
  0x82   : > { %p6079_p11 = scmp.lt.u32.totalorder %s6072_s29, %s7540_s2 }
  0x83   : > { %p6075_p4 = pnand %p6073_p1, %p7580_p12 }
  0x85   : > { %p6076_p10 = pneg %p6075_p4 }
  0x87   : > { %p6081_p5 = pnand %p6079_p11, %p6076_p10 }
  0x89   : > { %6084 = shalt.err (!%p6081_p5)
}
  0x8a   : > { %s6085_s13 = scalar_lea.vmem %s251_s30, 128  ;;  %p6093_p8 = scmp.lt.s32.totalorder %s251_s30, %s251_s30 }
  0x8b   : > { %p6086_p13 = scmp.ne.s32.totalorder %s251_s30, %s6085_s13  ;;  %p6094_p0 = scmp.lt.s32.totalorder %s6085_s13, %s6085_s13 }
  0x8d   : > { %p6088_p2 = pnand %p6086_p13, %p7580_p12  ;;  %p6095_p6 = por %p6094_p0, %p6093_p8 }
  0x8f   : > { %p6089_p3 = pneg %p6088_p2 }
  0x91   : > { %p6096_p7 = pnand %p6095_p6, %p6089_p3 }
  0x93   : > { %6099 = shalt.err (!%p6096_p7)
}
  0x94   : > { %p7581_p1 = scmp.ne.s32.totalorder %s7569_s14, 0  ;;  %s6100_s21 = scalar_lea.hbm %s7541_s3, 128 }
  0x95   : > { %p6101_p4 = scmp.ne.s32.totalorder %s7541_s3, %s6100_s21  ;;  %p6107_p7 = scmp.lt.u32.totalorder %s6100_s21, %s7541_s3 }
  0x96   : > { %5858 = dma.hbm_to_vmem [thread:$0]  (!%p7581_p1), %s7540_s2, 128, %s251_s30, [#allocation5]  }
  0x97   : > { %p6103_p10 = pnand %p6101_p4, %p7580_p12 }
  0x99   : > { %p6104_p11 = pneg %p6103_p10 }
  0x9b   : > { %p6109_p5 = pnand %p6107_p7, %p6104_p11 }
  0x9d   : > { %6112 = shalt.err (!%p6109_p5)
}
  0x9e   : > { %s6113_s30 = scalar_lea.vmem %s6426_s20, 128  ;;  %p6121_p8 = scmp.lt.s32.totalorder %s6426_s20, %s6426_s20 }
  0x9f   : > { %p6114_p13 = scmp.ne.s32.totalorder %s6426_s20, %s6113_s30  ;;  %p6122_p0 = scmp.lt.s32.totalorder %s6113_s30, %s6113_s30 }
  0xa1   : > { %p6116_p2 = pnand %p6114_p13, %p7580_p12  ;;  %p6123_p6 = por %p6122_p0, %p6121_p8 }
  0xa3   : > { %p6117_p3 = pneg %p6116_p2 }
  0xa5   : > { %p6124_p4 = pnand %p6123_p6, %p6117_p3 }
  0xa7   : > { %6127 = shalt.err (!%p6124_p4)
}
  0xa8   : > { %5861 = dma.hbm_to_vmem [thread:$0]  (!%p7581_p1), %s7541_s3, 128, %s6426_s20, [#allocation8]  }
  0xa9   : > { %s6474_s9 = scalar_lea.hbm %s7544_s6, %s5777_s7  ;;  %s316_s10 = scalar_lea.vmem [#allocation11], %s6386_s4 }
  0xaa   : > { %s324_s14 = sshll.u32 %s316_s10, 4  ;;  %s6128_s23 = scalar_lea.hbm %s6474_s9, 128  ;;  %s325_s14 = int_to_ptr.vmem [resolvable:$true] %s324_s14 }
  0xab   : > { %p6129_p12 = scmp.ne.s32.totalorder %s6474_s9, %s6128_s23  ;;  %s6133_s27 = scalar_lea.hbm %s7544_s6, 256 }
  0xac   : > { %p6134_p1 = scmp.lt.u32.totalorder %s6474_s9, %s7544_s6  ;;  %p6135_p7 = scmp.lt.u32.totalorder %s6133_s27, %s6128_s23 }
  0xad   : > { %p6131_p10 = pnand %p6129_p12, %p6360_p9  ;;  %p6137_p13 = scmp.lt.u32.totalorder %s6128_s23, %s6474_s9 }
  0xae   : > { %p6136_p5 = por %p6135_p7, %p6134_p1 }
  0xaf   : > { %p6132_p11 = pneg %p6131_p10 }
  0xb0   : > { %p6138_p2 = por %p6137_p13, %p6136_p5 }
  0xb2   : > { %p6139_p3 = pnand %p6138_p2, %p6132_p11 }
  0xb4   : > { %6142 = shalt.err (!%p6139_p3)
}
  0xb5   : > { %s6143_s4 = scalar_lea.vmem %s325_s14, 128  ;;  %s6215_s7 = smov [#allocation11]  }
  0xb6   : > { %p6144_p8 = scmp.ne.s32.totalorder %s325_s14, %s6143_s4  ;;  %s6148_s29 = sshll.u32 %s6215_s7, 4  ;;  %s6149_s29 = int_to_ptr.vmem [resolvable:$false] %s6148_s29 }
  0xb7   : > { %s6150_s18 = scalar_lea.vmem %s6149_s29, 256  ;;  %p6151_p4 = scmp.lt.s32.totalorder %s325_s14, %s6149_s29 }
  0xb8   : > { %p6146_p0 = pnand %p6144_p8, %p6360_p9  ;;  %p6152_p12 = scmp.lt.s32.totalorder %s6150_s18, %s6143_s4 }
  0xba   : > { %p6147_p6 = pneg %p6146_p0  ;;  %p6153_p10 = por %p6152_p12, %p6151_p4 }
  0xbc   : > { %p6154_p1 = pnand %p6153_p10, %p6147_p6 }
  0xbe   : > { %6157 = shalt.err (!%p6154_p1)
}
  0xbf   : > { %p7582_p7 = scmp.ne.s32.totalorder %s7570_s15, 0  ;;  %p7583_p11 = scmp.ne.s32.totalorder %s7568_s11, 0 }
  0xc0   : > { %p7584_p9 = scmp.eq.s32.totalorder (!%p7583_p11), %s6277_s28, 0 }
  0xc1   : > { %5871 = dma.hbm_to_vmem [thread:$0]  (!%p7582_p7), %s6474_s9, 128, %s325_s14, %s6354_s8  }
  0xc2   : > { %333 = sbr.rel (%p7583_p11) target bundleno = 1204 (0x4b4), region = 48 }
  0xc9   : > { %6175 = dma.done.wait (%p7584_p9), [#allocation3], 64   ;;  %p7585_p5 = pmov %p7584_p9 }
  0xcb   : > { %6177 = vsyncadd (%p7585_p5), [#allocation3], 4294967232  ;;  %p7586_p13 = pmov %p7585_p5 }
  0xcc   : > { %p7587_p2 = pmov %p7585_p5 }
  0xcd   : > { %6179 = dma.done.wait (%p7586_p13), [#allocation5], 2176  }
  0xce   : > { %6181 = vsyncadd (%p7587_p2), [#allocation5], 4294965120  ;;  %p7588_p3 = pmov %p7587_p2 }
  0xcf   : > { %p7589_p8 = pmov %p7587_p2 }
  0xd0   : > { %6183 = dma.done.wait (%p7588_p3), [#allocation8], 128  }
  0xd1   : > { %6185 = vsyncadd (%p7589_p8), [#allocation8], 4294967168  ;;  %s7590_s11 = sld [smem:[#allocation18_spill]]  ;;  %s351_s15 = sand.u32 1, %s6277_s28  }
  0xd2   : > { %s353_s8 = sand.u32 1, %s6196_s25   ;;  %s352_s24 = scalar_lea.sflag [#allocation3], %s351_s15 }
  0xd3   : > { %s5233_s12 = sshll.u32 %s353_s8, 12 }
  0xd4   : > { %s6513_s30 = scalar_lea.vmem [#allocation9], %s5233_s12 }
  0xd7   : > { %p7591_p0 = scmp.ne.s32.totalorder %s7590_s11, 0 }
  0xd9   : > { %6187 = dma.done.wait (%p7591_p0), %s352_s24, 65792  }
  0xda   : > { %6189 = vsyncadd (%p7591_p0), %s352_s24, 4294901504  ;;  %v6216_v0 = vmov 0   ;;  %v426_v1 = vld [vmem:[#allocation4] sm:$0xff]  ;;  %v427_v7 = vld [vmem:[#allocation4 + $0x8] sm:$0xff]  ;;  %vm522_vm0 = vcmask 261120   ;;  %vm690_vm1 = vcmask 1043456  }
  0xdb   : > { %558 = vmatprep.mubr.bf16.mxu0 %v6216_v0  ;;  %599 = vmatprep.mubr.bf16.mxu1 %v6216_v0  ;;  %v430_v2 = vld [vmem:[#allocation4 + $0x20] sm:$0xff]  ;;  %v431_v9 = vld [vmem:[#allocation4 + $0x28] sm:$0xff]  ;;  %v428_v15 = vld [vmem:[#allocation4 + $0x10] sm:$0xff]  ;;  %s7414_s19 = sshll.u32 %s353_s8, 3  ;;  %s5236_s13 = sshll.u32 %s6277_s28, 3 }
  0xdc   : > { %v434_v3 = vld [vmem:[#allocation4 + $0x40] sm:$0xff]  ;;  %v5239_v4 = vcombine.high %v426_v1, %v430_v2  ;;  %v5238_v5 = vcombine.low %v426_v1, %v430_v2  ;;  %v435_v10 = vld [vmem:[#allocation4 + $0x48] sm:$0xff]  ;;  %v5241_v12 = vcombine.high %v427_v7, %v431_v9  ;;  %v5240_v13 = vcombine.low %v427_v7, %v431_v9  ;;  %v432_v16 = vld [vmem:[#allocation4 + $0x30] sm:$0xff]  ;;  %s364_s17 = scalar_lea.vmem [#allocation10], %s7414_s19  ;;  %s373_s22 = scalar_lea.vmem [#allocation11], %s7414_s19 }
  0xdd   : > { %v438_v6 = vld [vmem:[#allocation4 + $0x60] sm:$0xff]  ;;  %v439_v11 = vld [vmem:[#allocation4 + $0x68] sm:$0xff]  ;;  %v424_v18 = vld [vmem:[#allocation2] sm:$0xf]  ;;  %v5243_v21 = vcombine.high %v428_v15, %v432_v16  ;;  %v5242_v27 = vcombine.low %v428_v15, %v432_v16  ;;  %p418_p6 = scmp.lt.s32.totalorder %s5236_s13, 15  ;;  %s7602_s14 = sld [smem:[#allocation21_spill]] }
  0xde   : > { %v5247_v8 = vcombine.high %v434_v3, %v438_v6  ;;  %526 = vmatprep.subr.bf16.mxu0 %v5239_v4  ;;  %v5249_v14 = vcombine.high %v435_v10, %v439_v11  ;;  %v5246_v17 = vcombine.low %v434_v3, %v438_v6  ;;  %v429_v19 = vld [vmem:[#allocation4 + $0x18] sm:$0xff]  ;;  %567 = vmatprep.subr.bf16.mxu1 %v5241_v12  ;;  %v436_v23 = vld [vmem:[#allocation4 + $0x50] sm:$0xff] }
  0xdf   : > { %527 = vmatpush1.bf16.msra.mxu0 %v5238_v5  ;;  %v433_v20 = vld [vmem:[#allocation4 + $0x38] sm:$0xff]  ;;  %568 = vmatpush1.bf16.msra.mxu1 %v5240_v13  ;;  %v5248_v22 = vcombine.low %v435_v10, %v439_v11  ;;  %v440_v24 = vld [vmem:[#allocation4 + $0x70] sm:$0xff]  ;;  %v425_v25 = vpack.c.bf16 %v424_v18, %v424_v18  ;;  %s7609_s13 = smov (!%p418_p6, %s5236_s13), 15 }
  0xe0   : > { %528 = vmatprep.subr.bf16.mxu0 %v5247_v8  ;;  %569 = vmatprep.subr.bf16.mxu1 %v5249_v14  ;;  %v5245_v26 = vcombine.high %v429_v19, %v433_v20  ;;  %v437_v28 = vld [vmem:[#allocation4 + $0x58] sm:$0xff]  ;;  %v5251_v30 = vcombine.high %v436_v23, %v440_v24  ;;  %v5244_v31 = vcombine.low %v429_v19, %v433_v20  ;;  %v992_v32 = vld [vmem:[%s6513_s30] sm:$0xff]  ;;  %s5237_s28 = sshll.u32 %s7609_s13, 1 }
  0xe1   : > { %v441_v29 = vld [vmem:[#allocation4 + $0x78] sm:$0xff]  ;;  %v996_v33 = vld [vmem:[%s6513_s30 + $0x20] sm:$0xff]  ;;  %v5250_v35 = vcombine.low %v436_v23, %v440_v24 }
  0xe2   : > { %v5253_v34 = vcombine.high %v437_v28, %v441_v29  ;;  %v993_v36 = vld [vmem:[%s6513_s30 + $0x8] sm:$0xff]  ;;  %v5259_v38 = vcombine.high %v992_v32, %v996_v33  ;;  %v5252_v39 = vcombine.low %v437_v28, %v441_v29  ;;  %v1000_v40 = vld [vmem:[%s6513_s30 + $0x40] sm:$0xff]  ;;  %v5258_v43 = vcombine.low %v992_v32, %v996_v33 }
  0xe3   : > { %529 = vmatpush1.bf16.msra.mxu0 %v5246_v17  ;;  %570 = vmatpush1.bf16.msra.mxu1 %v5248_v22  ;;  %v997_v37 = vld [vmem:[%s6513_s30 + $0x28] sm:$0xff]  ;;  %v1004_v41 = vld [vmem:[%s6513_s30 + $0x60] sm:$0xff]  ;;  %s7471_s23 = scalar_lea.vmem %s7602_s14, %s5237_s28 }
  0xe4   : > { %608 = vmatprep.subr.bf16.mxu0 %v5243_v21  ;;  %649 = vmatprep.subr.bf16.mxu1 %v5245_v26  ;;  %v5261_v42 = vcombine.high %v993_v36, %v997_v37  ;;  %v1001_v44 = vld [vmem:[%s6513_s30 + $0x48] sm:$0xff]  ;;  %v5267_v46 = vcombine.high %v1000_v40, %v1004_v41  ;;  %v5260_v47 = vcombine.low %v993_v36, %v997_v37  ;;  %v1008_v48 = vld [vmem:[%s6513_s30 + $0x80] sm:$0xff] }
  0xe5   : > { %v1005_v45 = vld [vmem:[%s6513_s30 + $0x68] sm:$0xff]  ;;  %v1012_v49 = vld [vmem:[%s6513_s30 + $0xa0] sm:$0xff]  ;;  %v5266_v51 = vcombine.low %v1000_v40, %v1004_v41 }
  0xe6   : > { %5254 = vmatmul.mubr.msk.bf16.vlgmr.msra.gmra.mrb[0].mxu0 %vm522_vm0, %v425_v25  ;;  %5255 = vmatmul.mubr.msk.bf16.vlgmr.msra.gmra.mrb[0].mxu1 %vm522_vm0, %v425_v25  ;;  %v5269_v50 = vcombine.high %v1001_v44, %v1005_v45  ;;  %v1009_v52 = vld [vmem:[%s6513_s30 + $0x88] sm:$0xff]  ;;  %v5275_v54 = vcombine.high %v1008_v48, %v1012_v49  ;;  %v5268_v55 = vcombine.low %v1001_v44, %v1005_v45  ;;  %v1016_v56 = vld [vmem:[%s6513_s30 + $0xc0] sm:$0xff] }
  0xe7   : > { %609 = vmatpush1.bf16.msra.mxu0 %v5242_v27  ;;  %640 = vmatprep.mubr.bf16.mxu0 %v6216_v0  ;;  %v1013_v53 = vld [vmem:[%s6513_s30 + $0xa8] sm:$0xff]  ;;  %v1020_v57 = vld [vmem:[%s6513_s30 + $0xe0] sm:$0xff]  ;;  %v5274_v59 = vcombine.low %v1008_v48, %v1012_v49 }
  0xe8   : > { %610 = vmatprep.subr.bf16.mxu0 %v5251_v30  ;;  %650 = vmatpush1.bf16.msra.mxu1 %v5244_v31  ;;  %v5277_v58 = vcombine.high %v1009_v52, %v1013_v53  ;;  %v1017_v60 = vld [vmem:[%s6513_s30 + $0xc8] sm:$0xff]  ;;  %v5283_v62 = vcombine.high %v1016_v56, %v1020_v57  ;;  %v5276_v63 = vcombine.low %v1009_v52, %v1013_v53  ;;  %v1028_v1 = vld [vmem:[%s6513_s30 + $0x120] sm:$0xff] }
  0xe9   : > { %681 = vmatprep.mubr.bf16.mxu1 %v6216_v0  ;;  %651 = vmatprep.subr.bf16.mxu1 %v5253_v34  ;;  %v1021_v61 = vld [vmem:[%s6513_s30 + $0xe8] sm:$0xff]  ;;  %v1024_v0 = vld [vmem:[%s6513_s30 + $0x100] sm:$0xff]  ;;  %v5282_v3 = vcombine.low %v1016_v56, %v1020_v57 }
  0xea   : > { %v5285_v2 = vcombine.high %v1017_v60, %v1021_v61  ;;  %v1025_v4 = vld [vmem:[%s6513_s30 + $0x108] sm:$0xff]  ;;  %v5291_v6 = vcombine.high %v1024_v0, %v1028_v1  ;;  %v5284_v7 = vcombine.low %v1017_v60, %v1021_v61  ;;  %v5290_v9 = vcombine.low %v1024_v0, %v1028_v1  ;;  %v1032_v11 = vld [vmem:[%s6513_s30 + $0x140] sm:$0xff] }
  0xeb   : > { %611 = vmatpush1.bf16.msra.mxu0 %v5250_v35  ;;  %v1029_v5 = vld [vmem:[%s6513_s30 + $0x128] sm:$0xff]  ;;  %v1036_v12 = vld [vmem:[%s6513_s30 + $0x160] sm:$0xff] }
  0xec   : > { %4064 = vmatprep.subr.bf16.mxu0 %v5259_v38  ;;  %652 = vmatpush1.bf16.msra.mxu1 %v5252_v39  ;;  %v5293_v8 = vcombine.high %v1025_v4, %v1029_v5  ;;  %v5292_v10 = vcombine.low %v1025_v4, %v1029_v5  ;;  %v1033_v13 = vld [vmem:[%s6513_s30 + $0x148] sm:$0xff]  ;;  %v5299_v14 = vcombine.high %v1032_v11, %v1036_v12  ;;  %v1040_v19 = vld [vmem:[%s6513_s30 + $0x180] sm:$0xff] }
  0xed   : > { %4228 = vmatprep.subr.bf16.mxu1 %v5261_v42  ;;  %v1037_v15 = vld [vmem:[%s6513_s30 + $0x168] sm:$0xff]  ;;  %v5298_v16 = vcombine.low %v1032_v11, %v1036_v12  ;;  %v1044_v20 = vld [vmem:[%s6513_s30 + $0x1a0] sm:$0xff] }
  0xee   : > { %5256 = vmatmul.mubr.msk.bf16.vlgmr.msra.gmra.mrb[4].mxu0 %vm522_vm0, %v425_v25  ;;  %v5300_v17 = vcombine.low %v1033_v13, %v1037_v15  ;;  %v5301_v18 = vcombine.high %v1033_v13, %v1037_v15  ;;  %v1041_v21 = vld [vmem:[%s6513_s30 + $0x188] sm:$0xff]  ;;  %v5307_v22 = vcombine.high %v1040_v19, %v1044_v20  ;;  %v5306_v24 = vcombine.low %v1040_v19, %v1044_v20  ;;  %v1048_v27 = vld [vmem:[%s6513_s30 + $0x1c0] sm:$0xff] }
  0xef   : > { %4065 = vmatpush1.bf16.msra.mxu0 %v5258_v43  ;;  %5257 = vmatmul.mubr.msk.bf16.vlgmr.msra.gmra.mrb[4].mxu1 %vm522_vm0, %v425_v25  ;;  %v1045_v23 = vld [vmem:[%s6513_s30 + $0x1a8] sm:$0xff]  ;;  %v1052_v28 = vld [vmem:[%s6513_s30 + $0x1e0] sm:$0xff] }
  0xf0   : > { %4066 = vmatprep.subr.bf16.mxu0 %v5267_v46  ;;  %4229 = vmatpush1.bf16.msra.mxu1 %v5260_v47  ;;  %v5308_v25 = vcombine.low %v1041_v21, %v1045_v23  ;;  %v5309_v26 = vcombine.high %v1041_v21, %v1045_v23  ;;  %v1049_v29 = vld [vmem:[%s6513_s30 + $0x1c8] sm:$0xff]  ;;  %v5315_v30 = vcombine.high %v1048_v27, %v1052_v28  ;;  %v1056_v35 = vld [vmem:[%s6513_s30 + $0x200] sm:$0xff] }
  0xf1   : > { %4230 = vmatprep.subr.bf16.mxu1 %v5269_v50  ;;  %v1053_v31 = vld [vmem:[%s6513_s30 + $0x1e8] sm:$0xff]  ;;  %v5314_v32 = vcombine.low %v1048_v27, %v1052_v28  ;;  %v1060_v36 = vld [vmem:[%s6513_s30 + $0x220] sm:$0xff] }
  0xf2   : > { %v5316_v33 = vcombine.low %v1049_v29, %v1053_v31  ;;  %v5317_v34 = vcombine.high %v1049_v29, %v1053_v31  ;;  %v1057_v37 = vld [vmem:[%s6513_s30 + $0x208] sm:$0xff]  ;;  %v5323_v38 = vcombine.high %v1056_v35, %v1060_v36  ;;  %v5322_v40 = vcombine.low %v1056_v35, %v1060_v36  ;;  %v1064_v43 = vld [vmem:[%s6513_s30 + $0x240] sm:$0xff] }
  0xf3   : > { %4067 = vmatpush1.bf16.msra.mxu0 %v5266_v51  ;;  %v1061_v39 = vld [vmem:[%s6513_s30 + $0x228] sm:$0xff]  ;;  %v1068_v44 = vld [vmem:[%s6513_s30 + $0x260] sm:$0xff] }
  0xf4   : > { %4068 = vmatprep.subr.bf16.mxu0 %v5275_v54  ;;  %4231 = vmatpush1.bf16.msra.mxu1 %v5268_v55  ;;  %v5324_v41 = vcombine.low %v1057_v37, %v1061_v39  ;;  %v5325_v42 = vcombine.high %v1057_v37, %v1061_v39  ;;  %v1065_v45 = vld [vmem:[%s6513_s30 + $0x248] sm:$0xff]  ;;  %v5331_v46 = vcombine.high %v1064_v43, %v1068_v44  ;;  %v1072_v51 = vld [vmem:[%s6513_s30 + $0x280] sm:$0xff] }
  0xf5   : > { %4232 = vmatprep.subr.bf16.mxu1 %v5277_v58  ;;  %v1069_v47 = vld [vmem:[%s6513_s30 + $0x268] sm:$0xff]  ;;  %v5330_v48 = vcombine.low %v1064_v43, %v1068_v44  ;;  %v1076_v52 = vld [vmem:[%s6513_s30 + $0x2a0] sm:$0xff] }
  0xf6   : > { %v5332_v49 = vcombine.low %v1065_v45, %v1069_v47  ;;  %v5333_v50 = vcombine.high %v1065_v45, %v1069_v47  ;;  %v1073_v53 = vld [vmem:[%s6513_s30 + $0x288] sm:$0xff]  ;;  %v5339_v54 = vcombine.high %v1072_v51, %v1076_v52  ;;  %v5338_v56 = vcombine.low %v1072_v51, %v1076_v52  ;;  %v1084_v60 = vld [vmem:[%s6513_s30 + $0x2e0] sm:$0xff] }
  0xf7   : > { %4069 = vmatpush1.bf16.msra.mxu0 %v5274_v59  ;;  %v1077_v55 = vld [vmem:[%s6513_s30 + $0x2a8] sm:$0xff]  ;;  %v1080_v59 = vld [vmem:[%s6513_s30 + $0x2c0] sm:$0xff] }
  0xf8   : > { %4070 = vmatprep.subr.bf16.mxu0 %v5283_v62  ;;  %4233 = vmatpush1.bf16.msra.mxu1 %v5276_v63  ;;  %v5340_v57 = vcombine.low %v1073_v53, %v1077_v55  ;;  %v5341_v58 = vcombine.high %v1073_v53, %v1077_v55  ;;  %v1081_v61 = vld [vmem:[%s6513_s30 + $0x2c8] sm:$0xff]  ;;  %v5347_v62 = vcombine.high %v1080_v59, %v1084_v60  ;;  %v1092_v4 = vld [vmem:[%s6513_s30 + $0x320] sm:$0xff] }
  0xf9   : > { %4234 = vmatprep.subr.bf16.mxu1 %v5285_v2  ;;  %v1085_v63 = vld [vmem:[%s6513_s30 + $0x2e8] sm:$0xff]  ;;  %v5346_v0 = vcombine.low %v1080_v59, %v1084_v60  ;;  %v1096_v11 = vld [vmem:[%s6513_s30 + $0x340] sm:$0xff] }
  0xfa   : > { %v5348_v1 = vcombine.low %v1081_v61, %v1085_v63  ;;  %v5349_v2 = vcombine.high %v1081_v61, %v1085_v63  ;;  %v1089_v5 = vld [vmem:[%s6513_s30 + $0x308] sm:$0xff]  ;;  %v1100_v12 = vld [vmem:[%s6513_s30 + $0x360] sm:$0xff] }
  0xfb   : > { %4071 = vmatpush1.bf16.msra.mxu0 %v5282_v3  ;;  %v1088_v3 = vld [vmem:[%s6513_s30 + $0x300] sm:$0xff]  ;;  %v1097_v13 = vld [vmem:[%s6513_s30 + $0x348] sm:$0xff] }
  0xfc   : > { %4072 = vmatprep.subr.bf16.mxu0 %v5291_v6  ;;  %4235 = vmatpush1.bf16.msra.mxu1 %v5284_v7  ;;  %v5355_v6 = vcombine.high %v1088_v3, %v1092_v4  ;;  %v1093_v7 = vld [vmem:[%s6513_s30 + $0x328] sm:$0xff]  ;;  %v1104_v19 = vld [vmem:[%s6513_s30 + $0x380] sm:$0xff] }
  0xfd   : > { %4236 = vmatprep.subr.bf16.mxu1 %v5293_v8  ;;  %v5354_v8 = vcombine.low %v1088_v3, %v1092_v4  ;;  %v1101_v15 = vld [vmem:[%s6513_s30 + $0x368] sm:$0xff]  ;;  %v1108_v20 = vld [vmem:[%s6513_s30 + $0x3a0] sm:$0xff] }
  0xfe   : > { %v1105_v21 = vld [vmem:[%s6513_s30 + $0x388] sm:$0xff]  ;;  %v1112_v27 = vld [vmem:[%s6513_s30 + $0x3c0] sm:$0xff] }
  0xff   : > { %4073 = vmatpush1.bf16.msra.mxu0 %v5290_v9  ;;  %v5356_v9 = vcombine.low %v1089_v5, %v1093_v7  ;;  %v1109_v23 = vld [vmem:[%s6513_s30 + $0x3a8] sm:$0xff]  ;;  %v1116_v28 = vld [vmem:[%s6513_s30 + $0x3e0] sm:$0xff] }
 0x100   : > { %4237 = vmatpush1.bf16.msra.mxu1 %v5292_v10  ;;  %4074 = vmatprep.subr.bf16.mxu0 %v5299_v14  ;;  %v5357_v10 = vcombine.high %v1089_v5, %v1093_v7  ;;  %v5363_v14 = vcombine.high %v1096_v11, %v1100_v12  ;;  %v1113_v29 = vld [vmem:[%s6513_s30 + $0x3c8] sm:$0xff]  ;;  %v6588_v35 = vld [vmem:[%s6513_s30 + $0x400] sm:$0xff] }
 0x101   : > { %4238 = vmatprep.subr.bf16.mxu1 %v5301_v18  ;;  %v5365_v18 = vcombine.high %v1097_v13, %v1101_v15  ;;  %v1117_v31 = vld [vmem:[%s6513_s30 + $0x3e8] sm:$0xff]  ;;  %v6591_v36 = vld [vmem:[%s6513_s30 + $0x420] sm:$0xff] }
 0x102   : > { %v6594_v37 = vld [vmem:[%s6513_s30 + $0x408] sm:$0xff] }
 0x103   : > { %4075 = vmatpush1.bf16.msra.mxu0 %v5298_v16  ;;  %v5362_v16 = vcombine.low %v1096_v11, %v1100_v12  ;;  %v6599_v39 = vld [vmem:[%s6513_s30 + $0x428] sm:$0xff] }
 0x104   : > { %4239 = vmatpush1.bf16.msra.mxu1 %v5300_v17  ;;  %4076 = vmatprep.subr.bf16.mxu0 %v5307_v22  ;;  %v5364_v17 = vcombine.low %v1097_v13, %v1101_v15  ;;  %v5371_v22 = vcombine.high %v1104_v19, %v1108_v20 }
 0x105   : > { %4240 = vmatprep.subr.bf16.mxu1 %v5309_v26  ;;  %v5373_v26 = vcombine.high %v1105_v21, %v1109_v23 }
 0x107   : > { %4077 = vmatpush1.bf16.msra.mxu0 %v5306_v24  ;;  %v5370_v24 = vcombine.low %v1104_v19, %v1108_v20 }
 0x108   : > { %4241 = vmatpush1.bf16.msra.mxu1 %v5308_v25  ;;  %4078 = vmatprep.subr.bf16.mxu0 %v5315_v30  ;;  %v5372_v25 = vcombine.low %v1105_v21, %v1109_v23  ;;  %v5379_v30 = vcombine.high %v1112_v27, %v1116_v28 }
 0x109   : > { %4242 = vmatprep.subr.bf16.mxu1 %v5317_v34  ;;  %v5381_v34 = vcombine.high %v1113_v29, %v1117_v31 }
 0x10b   : > { %4079 = vmatpush1.bf16.msra.mxu0 %v5314_v32  ;;  %v5378_v32 = vcombine.low %v1112_v27, %v1116_v28 }
 0x10c   : > { %4243 = vmatpush1.bf16.msra.mxu1 %v5316_v33  ;;  %4080 = vmatprep.subr.bf16.mxu0 %v5323_v38  ;;  %v5380_v33 = vcombine.low %v1113_v29, %v1117_v31  ;;  %v5387_v38 = vcombine.high %v6588_v35, %v6591_v36 }
 0x10d   : > { %4244 = vmatprep.subr.bf16.mxu1 %v5325_v42  ;;  %v5389_v42 = vcombine.high %v6594_v37, %v6599_v39 }
 0x10f   : > { %4081 = vmatpush1.bf16.msra.mxu0 %v5322_v40  ;;  %v5386_v40 = vcombine.low %v6588_v35, %v6591_v36 }
 0x110   : > { %4245 = vmatpush1.bf16.msra.mxu1 %v5324_v41  ;;  %4082 = vmatprep.subr.bf16.mxu0 %v5331_v46  ;;  %v5388_v41 = vcombine.low %v6594_v37, %v6599_v39 }
 0x111   : > { %4246 = vmatprep.subr.bf16.mxu1 %v5333_v50 }
 0x113   : > { %4083 = vmatpush1.bf16.msra.mxu0 %v5330_v48 }
 0x114   : > { %4247 = vmatpush1.bf16.msra.mxu1 %v5332_v49  ;;  %4084 = vmatprep.subr.bf16.mxu0 %v5339_v54 }
 0x115   : > { %4248 = vmatprep.subr.bf16.mxu1 %v5341_v58 }
 0x117   : > { %4085 = vmatpush1.bf16.msra.mxu0 %v5338_v56 }
 0x118   : > { %4249 = vmatpush1.bf16.msra.mxu1 %v5340_v57  ;;  %4086 = vmatprep.subr.bf16.mxu0 %v5347_v62 }
 0x119   : > { %4250 = vmatprep.subr.bf16.mxu1 %v5349_v2 }
 0x11b   : > { %4087 = vmatpush1.bf16.msra.mxu0 %v5346_v0 }
 0x11c   : > { %4251 = vmatpush1.bf16.msra.mxu1 %v5348_v1  ;;  %4088 = vmatprep.subr.bf16.mxu0 %v5355_v6 }
 0x11d   : > { %4252 = vmatprep.subr.bf16.mxu1 %v5357_v10 }
 0x11f   : > { %4089 = vmatpush1.bf16.msra.mxu0 %v5354_v8 }
 0x120   : > { %4253 = vmatpush1.bf16.msra.mxu1 %v5356_v9  ;;  %4090 = vmatprep.subr.bf16.mxu0 %v5363_v14 }
 0x121   : > { %4254 = vmatprep.subr.bf16.mxu1 %v5365_v18 }
 0x123   : > { %4091 = vmatpush1.bf16.msra.mxu0 %v5362_v16 }
 0x124   : > { %4255 = vmatpush1.bf16.msra.mxu1 %v5364_v17  ;;  %4092 = vmatprep.subr.bf16.mxu0 %v5371_v22 }
 0x125   : > { %4256 = vmatprep.subr.bf16.mxu1 %v5373_v26 }
 0x127   : > { %4093 = vmatpush1.bf16.msra.mxu0 %v5370_v24 }
 0x128   : > { %4257 = vmatpush1.bf16.msra.mxu1 %v5372_v25  ;;  %4094 = vmatprep.subr.bf16.mxu0 %v5379_v30 }
 0x129   : > { %4258 = vmatprep.subr.bf16.mxu1 %v5381_v34 }
 0x12b   : > { %4095 = vmatpush1.bf16.msra.mxu0 %v5378_v32 }
 0x12c   : > { %4259 = vmatpush1.bf16.msra.mxu1 %v5380_v33  ;;  %4105 = vmatprep.subr.bf16.mxu0 %v5387_v38 }
 0x12d   : > { %4269 = vmatprep.subr.bf16.mxu1 %v5389_v42 }
 0x1b9   : > { %v6607_v43 = vpop.f32.mrb[0].mxu0  ;;  %v6619_v51 = vpop.f32.mrb[0].mxu1 }
 0x1ba   : > { %v691_v44 = vsel %vm690_vm1, %v6607_v43, 0.0  ;;  %v756_v45 = vmul.f32 %v6607_v43, %v6607_v43  ;;  %v6613_v46 = vpop.f32.mrb[1].mxu0  ;;  %v6622_v55 = vpop.f32.mrb[1].mxu1 }
 0x1bb   : > { %v692_v47 = vrot.slane %v691_v44, 4  ;;  %v698_v48 = vsel %vm690_vm1, %v6613_v46, 0.0  ;;  %v757_v49 = vmul.f32 %v6613_v46, %v6613_v46  ;;  %v564_v50 = vpop.f32.mrb[2].mxu0  ;;  %v605_v59 = vpop.f32.mrb[2].mxu1  ;;  %v712_v62 = vsel %vm690_vm1, %v6622_v55, 0.0 }
 0x1bc   : > { %v764_v52 = vsel %vm690_vm1, %v756_v45, 0.0  ;;  %v699_v53 = vrot.slane %v698_v48, 4  ;;  %v565_v54 = vpop.f32.mrb[3].mxu0  ;;  %v606_v63 = vpop.f32.mrb[3].mxu1  ;;  %v713_v4 = vrot.slane %v712_v62, 4  ;;  %v759_v5 = vmul.f32 %v6622_v55, %v6622_v55 }
 0x1bd   : > { %v693_v56 = vadd.f32 %v692_v47, %v691_v44  ;;  %v765_v57 = vrot.slane %v764_v52, 4  ;;  %v771_v58 = vsel %vm690_vm1, %v757_v49, 0.0  ;;  %v6639_v63 = vld [vmem:[#allocation6] sm:$0xff] }
 0x1be   : > { %v700_v60 = vadd.f32 %v699_v53, %v698_v48  ;;  %v772_v61 = vrot.slane %v771_v58, 4  ;;  %v714_v11 = vadd.f32 %v713_v4, %v712_v62  ;;  %v785_v12 = vsel %vm690_vm1, %v759_v5, 0.0 }
 0x1bf   : > { %v694_v0 = vrot.slane %v693_v56, 2  ;;  %v766_v1 = vadd.f32 %v765_v57, %v764_v52  ;;  %v786_v20 = vrot.slane %v785_v12, 4  ;;  %v878_v48 = vlaneseq }
 0x1c0   : > { %v701_v2 = vrot.slane %v700_v60, 2  ;;  %v773_v3 = vadd.f32 %v772_v61, %v771_v58  ;;  %v715_v19 = vrot.slane %v714_v11, 2 }
 0x1c1   : > { %v695_v6 = vadd.f32 %v694_v0, %v693_v56  ;;  %v767_v7 = vrot.slane %v766_v1, 2  ;;  %v6629_v8 = vpop.f32.mrb[4].mxu0  ;;  %v787_v27 = vadd.f32 %v786_v20, %v785_v12  ;;  %v6634_v57 = vshrl.u32 %v878_v48, 7 }
 0x1c2   : > { %v702_v9 = vadd.f32 %v701_v2, %v700_v60  ;;  %v774_v10 = vrot.slane %v773_v3, 2  ;;  %v6632_v13 = vpop.f32.mrb[5].mxu0  ;;  %v716_v26 = vadd.f32 %v715_v19, %v714_v11  ;;  %v6644_v2 = vld [vmem:[#allocation7] sm:$0xff]  ;;  %v6649_v5 = vpop.f32.mrb[4].mxu1 }
 0x1c3   : > { %v696_v14 = vrot.slane %v695_v6, 1  ;;  %v768_v15 = vadd.f32 %v767_v7, %v766_v1  ;;  %v646_v16 = vpop.f32.mrb[6].mxu0  ;;  %v788_v33 = vrot.slane %v787_v27, 2  ;;  %v6637_v61 = vsub.s32 0, %v6634_v57 }
 0x1c4   : > { %v703_v17 = vrot.slane %v702_v9, 1  ;;  %v775_v18 = vadd.f32 %v774_v10, %v773_v3  ;;  %v647_v21 = vpop.f32.mrb[7].mxu0  ;;  %v717_v32 = vrot.slane %v716_v26, 1  ;;  %v6642_v0 = vsub.s32 1, %v6634_v57 }
 0x1c5   : > { %v697_v22 = vadd.f32 %v696_v14, %v695_v6  ;;  %v769_v23 = vrot.slane %v768_v15, 1  ;;  %v789_v50 = vadd.f32 %v788_v33, %v787_v27  ;;  %v881_v4 = vrot.slane %v6639_v63, %v6637_v61 }
 0x1c6   : > { %v704_v24 = vadd.f32 %v703_v17, %v702_v9  ;;  %v776_v25 = vrot.slane %v775_v18, 1  ;;  %v718_v47 = vadd.f32 %v717_v32, %v716_v26  ;;  %v885_v9 = vrot.slane %v6639_v63, %v6642_v0 }
 0x1c7   : > { %v748_v28 = vmul.f32 0.25, %v697_v22  ;;  %v770_v29 = vadd.f32 %v769_v23, %v768_v15  ;;  %v790_v56 = vrot.slane %v789_v50, 1  ;;  %v931_v12 = vrot.slane %v6644_v2, %v6637_v61  ;;  %v6658_v15 = vpop.f32.mrb[5].mxu1 }
 0x1c8   : > { %v749_v30 = vmul.f32 0.25, %v704_v24  ;;  %v777_v31 = vadd.f32 %v776_v25, %v775_v18  ;;  %v751_v53 = vmul.f32 0.25, %v718_v47  ;;  %v758_v17 = vmul.f32 %v6619_v51, %v6619_v51  ;;  %v687_v18 = vpop.f32.mrb[6].mxu1 }
 0x1c9   : > { %v820_v34 = vmul.f32 0.25, %v770_v29  ;;  %v828_v38 = vmul.f32 %v748_v28, %v748_v28  ;;  %v791_v58 = vadd.f32 %v790_v56, %v789_v50  ;;  %v844_v3 = vsub.f32 %v6607_v43, %v748_v28  ;;  %v688_v23 = vpop.f32.mrb[7].mxu1  ;;  %v1128_v28 = vld [vmem:[%s6513_s30 + $0x440] sm:$0xff]  ;;  %v1149_v18 = vld [vmem:[%s6513_s30 + $0x4e8] sm:$0xff] }
 0x1ca   : > { %v821_v42 = vmul.f32 0.25, %v777_v31  ;;  %v829_v44 = vmul.f32 %v749_v30, %v749_v30  ;;  %v831_v59 = vmul.f32 %v751_v53, %v751_v53  ;;  %v845_v7 = vsub.f32 %v6613_v46, %v749_v30  ;;  %v1132_v29 = vld [vmem:[%s6513_s30 + $0x460] sm:$0xff] }
 0x1cb   : > { %v836_v45 = vsub.f32 %v820_v34, %v828_v38  ;;  %v823_v60 = vmul.f32 0.25, %v791_v58  ;;  %v935_v43 = vrot.slane %v6644_v2, %v6642_v0  ;;  %v705_v46 = vsel %vm690_vm1, %v6619_v51, 0.0  ;;  %v1129_v38 = vld [vmem:[%s6513_s30 + $0x448] sm:$0xff]  ;;  %v1136_v56 = vld [vmem:[%s6513_s30 + $0x480] sm:$0xff] }
 0x1cc   : > { %v837_v49 = vsub.f32 %v821_v42, %v829_v44  ;;  %v6665_v20 = vsub.s32 3, %v6634_v57  ;;  %v726_v21 = vsel %vm690_vm1, %v6632_v13, 0.0  ;;  %v761_v22 = vmul.f32 %v6632_v13, %v6632_v13  ;;  %v1133_v42 = vld [vmem:[%s6513_s30 + $0x468] sm:$0xff] }
 0x1cd   : > { %v852_v52 = vadd.f32 1e-05, %v836_v45  ;;  %v839_v62 = vsub.f32 %v823_v60, %v831_v59  ;;  %v706_v25 = vrot.slane %v705_v46, 4  ;;  %v847_v26 = vsub.f32 %v6622_v55, %v751_v53 }
 0x1ce   : > { %v853_v54 = vadd.f32 1e-05, %v837_v49  ;;  %v778_v30 = vsel %vm690_vm1, %v758_v17, 0.0  ;;  %v727_v32 = vrot.slane %v726_v21, 4  ;;  %v893_v33 = vrot.slane %v6639_v63, %v6665_v20  ;;  %v1145_v17 = vld [vmem:[%s6513_s30 + $0x4c8] sm:$0xff] }
 0x1cf   : > { %5922 = vrsqrt.f32 %v852_v52  ;;  %v855_v1 = vadd.f32 1e-05, %v839_v62  ;;  %v799_v44 = vsel %vm690_vm1, %v761_v22, 0.0  ;;  %v5395_v55 = vcombine.high %v1128_v28, %v1132_v29  ;;  %v1140_v62 = vld [vmem:[%s6513_s30 + $0x4a0] sm:$0xff] }
 0x1d0   : > { %5924 = vrsqrt.f32 %v853_v54  ;;  %v943_v47 = vrot.slane %v6644_v2, %v6665_v20  ;;  %v707_v48 = vadd.f32 %v706_v25, %v705_v46  ;;  %v779_v49 = vrot.slane %v778_v30, 4  ;;  %v1148_v46 = vld [vmem:[%s6513_s30 + $0x4e0] sm:$0xff] }
 0x1d1   : > { %5926 = vrsqrt.f32 %v855_v1  ;;  %v5397_v54 = vcombine.high %v1129_v38, %v1133_v42  ;;  %v728_v58 = vadd.f32 %v727_v32, %v726_v21  ;;  %v800_v59 = vrot.slane %v799_v44, 4  ;;  %v1137_v1 = vld [vmem:[%s6513_s30 + $0x488] sm:$0xff]  ;;  %v1152_v22 = vld [vmem:[%s6513_s30 + $0x500] sm:$0xff] }
 0x1d2   : > { %v5402_v36 = vcombine.low %v1136_v56, %v1140_v62  ;;  %v5413_v21 = vcombine.high %v1145_v17, %v1149_v18  ;;  %v1156_v25 = vld [vmem:[%s6513_s30 + $0x520] sm:$0xff] }
 0x1d3   : > { %v5419_v32 = vcombine.high %v1152_v22, %v1156_v25 }
 0x1d9   : > { %v5923_v6 = vpop.eup %5922 }
 0x1da   : > { %v5925_v10 = vpop.eup %5924  ;;  %v868_v11 = vmul.f32 %v5923_v6, %v844_v3  ;;  %v1141_v3 = vld [vmem:[%s6513_s30 + $0x4a8] sm:$0xff]  ;;  %v708_v6 = vrot.slane %v707_v48, 2 }
 0x1db   : > { %v869_v14 = vmul.f32 %v5925_v10, %v845_v7  ;;  %v5927_v45 = vpop.eup %5926  ;;  %v780_v7 = vadd.f32 %v779_v49, %v778_v30  ;;  %v5418_v49 = vcombine.low %v1152_v22, %v1156_v25  ;;  %v1189_v25 = vld [vmem:[%s6513_s30 + $0x628] sm:$0xff] }
 0x1dc   : > { %v918_v16 = vmul.f32 %v881_v4, %v868_v11  ;;  %v871_v50 = vmul.f32 %v5927_v45, %v847_v26  ;;  %v5394_v4 = vcombine.low %v1128_v28, %v1132_v29  ;;  %v5403_v11 = vcombine.high %v1136_v56, %v1140_v62  ;;  %v1153_v26 = vld [vmem:[%s6513_s30 + $0x508] sm:$0xff]  ;;  %v1172_v62 = vld [vmem:[%s6513_s30 + $0x5a0] sm:$0xff] }
 0x1dd   : > { %v919_v19 = vmul.f32 %v885_v9, %v869_v14  ;;  %v5396_v9 = vcombine.low %v1129_v38, %v1133_v42  ;;  %v1144_v14 = vld [vmem:[%s6513_s30 + $0x4c0] sm:$0xff]  ;;  %v709_v37 = vadd.f32 %v708_v6, %v707_v48  ;;  %v781_v39 = vrot.slane %v780_v7, 2  ;;  %v1161_v45 = vld [vmem:[%s6513_s30 + $0x548] sm:$0xff] }
 0x1de   : > { %v968_v24 = vadd.f32 %v931_v12, %v918_v16  ;;  %v921_v60 = vmul.f32 %v893_v33, %v871_v50  ;;  %v5405_v12 = vcombine.high %v1137_v1, %v1141_v3  ;;  %v801_v16 = vadd.f32 %v800_v59, %v799_v44  ;;  %v1164_v44 = vld [vmem:[%s6513_s30 + $0x560] sm:$0xff] }
 0x1df   : > { %v969_v27 = vadd.f32 %v935_v43, %v919_v19  ;;  %v729_v43 = vrot.slane %v728_v58, 2  ;;  %v5411_v19 = vcombine.high %v1144_v14, %v1148_v46  ;;  %v710_v28 = vrot.slane %v709_v37, 1 }
 0x1e0   : > { %v976_v31 = vmax.f32 %v968_v24, 0.0  ;;  %v971_v10 = vadd.f32 %v943_v47, %v921_v60  ;;  %v802_v24 = vrot.slane %v801_v16, 2  ;;  %v782_v29 = vadd.f32 %v781_v39, %v780_v7 }
 0x1e1   : > { %v977_v34 = vmax.f32 %v969_v27, 0.0  ;;  %v730_v23 = vadd.f32 %v729_v43, %v728_v58  ;;  %v1157_v27 = vld [vmem:[%s6513_s30 + $0x528] sm:$0xff]  ;;  %v5410_v30 = vcombine.low %v1144_v14, %v1148_v46  ;;  %v711_v47 = vadd.f32 %v710_v28, %v709_v37  ;;  %v1168_v58 = vld [vmem:[%s6513_s30 + $0x580] sm:$0xff] }
 0x1e2   : > { %v6684_v53 = vpack.c.bf16 %v976_v31, %v976_v31  ;;  %v979_v35 = vmax.f32 %v971_v10, 0.0  ;;  %v5412_v31 = vcombine.low %v1145_v17, %v1149_v18  ;;  %v5421_v33 = vcombine.high %v1153_v26, %v1157_v27  ;;  %v1177_v46 = vld [vmem:[%s6513_s30 + $0x5c8] sm:$0xff] }
 0x1e3   : > { %v6682_v52 = vpack.c.bf16 %v977_v34, %v977_v34  ;;  %v1160_v34 = vld [vmem:[%s6513_s30 + $0x540] sm:$0xff]  ;;  %v731_v38 = vrot.slane %v730_v23, 1  ;;  %v803_v42 = vadd.f32 %v802_v24, %v801_v16  ;;  %v783_v48 = vrot.slane %v782_v29, 1  ;;  %v1181_v17 = vld [vmem:[%s6513_s30 + $0x5e8] sm:$0xff] }
 0x1e4   : > { %v5420_v50 = vcombine.low %v1153_v26, %v1157_v27  ;;  %v5426_v7 = vcombine.low %v1160_v34, %v1164_v44  ;;  %v5435_v10 = vcombine.high %v1168_v58, %v1172_v62  ;;  %v1180_v16 = vld [vmem:[%s6513_s30 + $0x5e0] sm:$0xff]  ;;  %v1185_v24 = vld [vmem:[%s6513_s30 + $0x608] sm:$0xff]  ;;  %v5444_v28 = vcombine.low %v1177_v46, %v1181_v17 }
 0x1e5   : > { %4096 = vmatprep.mubr.bf16.mxu0 %v6682_v52  ;;  %4260 = vmatprep.mubr.bf16.mxu1 %v6682_v52  ;;  %v732_v59 = vadd.f32 %v731_v38, %v730_v23  ;;  %v804_v60 = vrot.slane %v803_v42, 1  ;;  %v784_v6 = vadd.f32 %v783_v48, %v782_v29  ;;  %v1188_v23 = vld [vmem:[%s6513_s30 + $0x620] sm:$0xff]  ;;  %v1197_v38 = vld [vmem:[%s6513_s30 + $0x668] sm:$0xff] }
 0x1e6   : > { %4097 = vmatmul.mubr.bf16.vlgmr.msra.gmra.mrb[8].mxu0 %v6684_v53  ;;  %4261 = vmatmul.mubr.bf16.vlgmr.msra.gmra.mrb[8].mxu1 %v6684_v53  ;;  %v1200_v48 = vld [vmem:[%s6513_s30 + $0x680] sm:$0xff] }
 0x1e7   : > { %4106 = vmatpush1.bf16.msra.mxu0 %v5386_v40  ;;  %4270 = vmatpush1.bf16.msra.mxu1 %v5388_v41  ;;  %v5404_v40 = vcombine.low %v1137_v1, %v1141_v3  ;;  %v6704_v41 = vpack.c.bf16 %v979_v35, %v979_v35  ;;  %v1169_v1 = vld [vmem:[%s6513_s30 + $0x588] sm:$0xff]  ;;  %v6723_v14 = vmul.f32 0.25, %v732_v59  ;;  %v805_v43 = vadd.f32 %v804_v60, %v803_v42 }
 0x1e8   : > { %4107 = vmatprep.subr.bf16.mxu0 %v5395_v55  ;;  %4271 = vmatprep.subr.bf16.mxu1 %v5397_v54  ;;  %v1165_v55 = vld [vmem:[%s6513_s30 + $0x568] sm:$0xff]  ;;  %v5427_v54 = vcombine.high %v1160_v34, %v1164_v44  ;;  %v822_v18 = vmul.f32 0.25, %v784_v6 }
 0x1e9   : > { %4137 = vmatprep.mubr.bf16.mxu0 %v6704_v41  ;;  %4301 = vmatprep.mubr.bf16.mxu1 %v6704_v41  ;;  %v5429_v56 = vcombine.high %v1161_v45, %v1165_v55  ;;  %v1173_v3 = vld [vmem:[%s6513_s30 + $0x5a8] sm:$0xff]  ;;  %v833_v22 = vmul.f32 %v6723_v14, %v6723_v14 }
 0x1ea   : > { %v5436_v37 = vcombine.low %v1169_v1, %v1173_v3  ;;  %v1193_v34 = vld [vmem:[%s6513_s30 + $0x648] sm:$0xff] }
 0x1eb   : > { %4108 = vmatpush1.bf16.msra.mxu0 %v5394_v4  ;;  %4272 = vmatpush1.bf16.msra.mxu1 %v5396_v9  ;;  %v6720_v4 = vmul.f32 0.25, %v711_v47  ;;  %v5428_v9 = vcombine.low %v1161_v45, %v1165_v55  ;;  %v5452_v45 = vcombine.low %v1185_v24, %v1189_v25  ;;  %v5461_v47 = vcombine.high %v1193_v34, %v1197_v38  ;;  %v1209_v6 = vld [vmem:[%s6513_s30 + $0x6c8] sm:$0xff] }
 0x1ec   : > { %4109 = vmatprep.subr.bf16.mxu0 %v5403_v11  ;;  %4273 = vmatprep.subr.bf16.mxu1 %v5405_v12  ;;  %v5437_v11 = vcombine.high %v1169_v1, %v1173_v3  ;;  %v1176_v12 = vld [vmem:[%s6513_s30 + $0x5c0] sm:$0xff]  ;;  %v5460_v59 = vcombine.low %v1193_v34, %v1197_v38  ;;  %v1233_v34 = vld [vmem:[%s6513_s30 + $0x788] sm:$0xff] }
 0x1ed   : > { %v830_v35 = vmul.f32 %v6720_v4, %v6720_v4  ;;  %v5443_v39 = vcombine.high %v1176_v12, %v1180_v16  ;;  %v5442_v27 = vcombine.low %v1176_v12, %v1180_v16  ;;  %v1208_v1 = vld [vmem:[%s6513_s30 + $0x6c0] sm:$0xff]  ;;  %v1237_v38 = vld [vmem:[%s6513_s30 + $0x7a8] sm:$0xff] }
 0x1ee   : > { %v1212_v3 = vld [vmem:[%s6513_s30 + $0x6e0] sm:$0xff] }
 0x1ef   : > { %4110 = vmatpush1.bf16.msra.mxu0 %v5402_v36  ;;  %4274 = vmatpush1.bf16.msra.mxu1 %v5404_v40  ;;  %v5434_v36 = vcombine.low %v1168_v58, %v1172_v62  ;;  %v5445_v40 = vcombine.high %v1177_v46, %v1181_v17  ;;  %v838_v26 = vsub.f32 %v822_v18, %v830_v35  ;;  %v1220_v16 = vld [vmem:[%s6513_s30 + $0x720] sm:$0xff]  ;;  %v1217_v46 = vld [vmem:[%s6513_s30 + $0x708] sm:$0xff]  ;;  %v6753_v18 = vsub.s32 2, %v6634_v57 }
 0x1f0   : > { %4111 = vmatprep.subr.bf16.mxu0 %v5411_v19  ;;  %4275 = vmatprep.subr.bf16.mxu1 %v5413_v21  ;;  %v1184_v19 = vld [vmem:[%s6513_s30 + $0x600] sm:$0xff]  ;;  %v825_v21 = vmul.f32 0.25, %v805_v43  ;;  %v1221_v17 = vld [vmem:[%s6513_s30 + $0x728] sm:$0xff]  ;;  %v5474_v35 = vcombine.low %v1208_v1, %v1212_v3 }
 0x1f1   : > { %v5451_v29 = vcombine.high %v1184_v19, %v1188_v23  ;;  %v854_v42 = vadd.f32 1e-05, %v838_v26  ;;  %v5450_v44 = vcombine.low %v1184_v19, %v1188_v23  ;;  %v1216_v43 = vld [vmem:[%s6513_s30 + $0x700] sm:$0xff]  ;;  %v1225_v23 = vld [vmem:[%s6513_s30 + $0x748] sm:$0xff]  ;;  %v6764_v26 = vsub.s32 5, %v6634_v57 }
 0x1f2   : > { %v1224_v19 = vld [vmem:[%s6513_s30 + $0x740] sm:$0xff] }
 0x1f3   : > { %4112 = vmatpush1.bf16.msra.mxu0 %v5410_v30  ;;  %4276 = vmatpush1.bf16.msra.mxu1 %v5412_v31  ;;  %v5453_v30 = vcombine.high %v1185_v24, %v1189_v25  ;;  %v1192_v31 = vld [vmem:[%s6513_s30 + $0x640] sm:$0xff]  ;;  %5928 = vrsqrt.f32 %v854_v42  ;;  %v1229_v24 = vld [vmem:[%s6513_s30 + $0x768] sm:$0xff]  ;;  %v849_v25 = vsub.f32 %v6632_v13, %v6723_v14 }
 0x1f4   : > { %4113 = vmatprep.subr.bf16.mxu0 %v5419_v32  ;;  %4277 = vmatprep.subr.bf16.mxu1 %v5421_v33  ;;  %v841_v32 = vsub.f32 %v825_v21, %v833_v22  ;;  %v1196_v33 = vld [vmem:[%s6513_s30 + $0x660] sm:$0xff] }
 0x1f5   : > { %v5459_v55 = vcombine.high %v1192_v31, %v1196_v33  ;;  %v5458_v58 = vcombine.low %v1192_v31, %v1196_v33  ;;  %v1228_v22 = vld [vmem:[%s6513_s30 + $0x760] sm:$0xff]  ;;  %v5493_v31 = vcombine.high %v1225_v23, %v1229_v24 }
 0x1f6   : > { %v1232_v13 = vld [vmem:[%s6513_s30 + $0x780] sm:$0xff]  ;;  %v5490_v42 = vcombine.low %v1224_v19, %v1228_v22 }
 0x1f7   : > { %4114 = vmatpush1.bf16.msra.mxu0 %v5418_v49  ;;  %4278 = vmatpush1.bf16.msra.mxu1 %v5420_v50  ;;  %v857_v49 = vadd.f32 1e-05, %v841_v32  ;;  %v1204_v50 = vld [vmem:[%s6513_s30 + $0x6a0] sm:$0xff]  ;;  %v901_v32 = vrot.slane %v6639_v63, %v6764_v26 }
 0x1f8   : > { %4115 = vmatprep.subr.bf16.mxu0 %v5427_v54  ;;  %4279 = vmatprep.subr.bf16.mxu1 %v5429_v56  ;;  %v1201_v54 = vld [vmem:[%s6513_s30 + $0x688] sm:$0xff]  ;;  %v5467_v60 = vcombine.high %v1200_v48, %v1204_v50  ;;  %v1236_v33 = vld [vmem:[%s6513_s30 + $0x7a0] sm:$0xff] }
 0x1f9   : > { %v1205_v56 = vld [vmem:[%s6513_s30 + $0x6a8] sm:$0xff]  ;;  %5930 = vrsqrt.f32 %v857_v49  ;;  %v1240_v49 = vld [vmem:[%s6513_s30 + $0x7c0] sm:$0xff] }
 0x1fa   : > { %v5469_v62 = vcombine.high %v1201_v54, %v1205_v56 }
 0x1fb   : > { %4116 = vmatpush1.bf16.msra.mxu0 %v5426_v7  ;;  %4280 = vmatpush1.bf16.msra.mxu1 %v5428_v9  ;;  %v1213_v7 = vld [vmem:[%s6513_s30 + $0x6e8] sm:$0xff]  ;;  %v5466_v9 = vcombine.low %v1200_v48, %v1204_v50  ;;  %v5501_v48 = vcombine.high %v1233_v34, %v1237_v38  ;;  %v1244_v50 = vld [vmem:[%s6513_s30 + $0x7e0] sm:$0xff] }
 0x1fc   : > { %4117 = vmatprep.subr.bf16.mxu0 %v5435_v10  ;;  %4281 = vmatprep.subr.bf16.mxu1 %v5437_v11  ;;  %v5468_v10 = vcombine.low %v1201_v54, %v1205_v56  ;;  %v5475_v11 = vcombine.high %v1208_v1, %v1212_v3  ;;  %v5477_v12 = vcombine.high %v1209_v6, %v1213_v7  ;;  %v1241_v56 = vld [vmem:[%s6513_s30 + $0x7c8] sm:$0xff]  ;;  %v719_v3 = vsel %vm690_vm1, %v6629_v8, 0.0 }
 0x1fd   : > { %v5929_v21 = vpop.eup %5928  ;;  %v5507_v1 = vcombine.high %v1240_v49, %v1244_v50 }
 0x1ff   : > { %4118 = vmatpush1.bf16.msra.mxu0 %v5434_v36  ;;  %4282 = vmatpush1.bf16.msra.mxu1 %v5436_v37  ;;  %v5476_v36 = vcombine.low %v1209_v6, %v1213_v7  ;;  %v846_v37 = vsub.f32 %v6619_v51, %v6720_v4  ;;  %v889_v51 = vrot.slane %v6639_v63, %v6753_v18 }
 0x200   : > { %4119 = vmatprep.subr.bf16.mxu0 %v5443_v39  ;;  %4283 = vmatprep.subr.bf16.mxu1 %v5445_v40  ;;  %v5483_v39 = vcombine.high %v1216_v43, %v1220_v16  ;;  %v5485_v40 = vcombine.high %v1217_v46, %v1221_v17  ;;  %v5482_v4 = vcombine.low %v1216_v43, %v1220_v16  ;;  %v740_v16 = vsel %vm690_vm1, %v6658_v15, 0.0 }
 0x201   : > { %v760_v6 = vmul.f32 %v6629_v8, %v6629_v8 }
 0x203   : > { %4120 = vmatpush1.bf16.msra.mxu0 %v5442_v27  ;;  %4284 = vmatpush1.bf16.msra.mxu1 %v5444_v28  ;;  %v5931_v27 = vpop.eup %5930  ;;  %v5484_v28 = vcombine.low %v1217_v46, %v1221_v17  ;;  %v763_v46 = vmul.f32 %v6658_v15, %v6658_v15  ;;  %v720_v17 = vrot.slane %v719_v3, 4 }
 0x204   : > { %4121 = vmatprep.subr.bf16.mxu0 %v5451_v29  ;;  %4285 = vmatprep.subr.bf16.mxu1 %v5453_v30  ;;  %v870_v29 = vmul.f32 %v5929_v21, %v846_v37  ;;  %v5491_v30 = vcombine.high %v1224_v19, %v1228_v22  ;;  %v873_v14 = vmul.f32 %v5931_v27, %v849_v25  ;;  %v1256_v21 = vld [vmem:[%s6513_s30 + $0x840] sm:$0xff]  ;;  %v1261_v25 = vld [vmem:[%s6513_s30 + $0x868] sm:$0xff] }
 0x205   : > { %v1260_v22 = vld [vmem:[%s6513_s30 + $0x860] sm:$0xff] }
 0x206   : > { %v923_v54 = vmul.f32 %v901_v32, %v873_v14  ;;  %v1264_v32 = vld [vmem:[%s6513_s30 + $0x880] sm:$0xff] }
 0x207   : > { %4122 = vmatpush1.bf16.msra.mxu0 %v5450_v44  ;;  %4286 = vmatpush1.bf16.msra.mxu1 %v5452_v45  ;;  %v5492_v44 = vcombine.low %v1225_v23, %v1229_v24  ;;  %v939_v45 = vrot.slane %v6644_v2, %v6753_v18  ;;  %v741_v23 = vrot.slane %v740_v16, 4  ;;  %v1257_v24 = vld [vmem:[%s6513_s30 + $0x848] sm:$0xff] }
 0x208   : > { %4123 = vmatprep.subr.bf16.mxu0 %v5459_v55  ;;  %4287 = vmatprep.subr.bf16.mxu1 %v5461_v47  ;;  %v920_v55 = vmul.f32 %v889_v51, %v870_v29  ;;  %v5499_v47 = vcombine.high %v1232_v13, %v1236_v33  ;;  %v813_v51 = vsel %vm690_vm1, %v763_v46, 0.0  ;;  %v5525_v14 = vcombine.high %v1257_v24, %v1261_v25  ;;  %v1281_v46 = vld [vmem:[%s6513_s30 + $0x908] sm:$0xff] }
 0x20b   : > { %4124 = vmatpush1.bf16.msra.mxu0 %v5458_v58  ;;  %4288 = vmatpush1.bf16.msra.mxu1 %v5460_v59  ;;  %v1245_v58 = vld [vmem:[%s6513_s30 + $0x7e8] sm:$0xff]  ;;  %v951_v59 = vrot.slane %v6644_v2, %v6764_v26 }
 0x20c   : > { %4125 = vmatprep.subr.bf16.mxu0 %v5467_v60  ;;  %4289 = vmatprep.subr.bf16.mxu1 %v5469_v62  ;;  %v5498_v60 = vcombine.low %v1232_v13, %v1236_v33  ;;  %v5500_v62 = vcombine.low %v1233_v34, %v1237_v38  ;;  %v5509_v7 = vcombine.high %v1241_v56, %v1245_v58  ;;  %v1253_v2 = vld [vmem:[%s6513_s30 + $0x828] sm:$0xff]  ;;  %v814_v34 = vrot.slane %v813_v51, 4  ;;  %v1268_v38 = vld [vmem:[%s6513_s30 + $0x8a0] sm:$0xff] }
 0x20d   : > { %v973_v43 = vadd.f32 %v951_v59, %v923_v54  ;;  %v742_v33 = vadd.f32 %v741_v23, %v740_v16  ;;  %v1284_v16 = vld [vmem:[%s6513_s30 + $0x920] sm:$0xff] }
 0x20e   : > { %v815_v59 = vadd.f32 %v814_v34, %v813_v51  ;;  %v1300_v34 = vld [vmem:[%s6513_s30 + $0x9a0] sm:$0xff] }
 0x20f   : > { %4126 = vmatpush1.bf16.msra.mxu0 %v5466_v9  ;;  %4290 = vmatpush1.bf16.msra.mxu1 %v5468_v10  ;;  %v970_v9 = vadd.f32 %v939_v45, %v920_v55  ;;  %v1248_v10 = vld [vmem:[%s6513_s30 + $0x800] sm:$0xff]  ;;  %v981_v27 = vmax.f32 %v973_v43, 0.0 }
 0x210   : > { %4127 = vmatprep.subr.bf16.mxu0 %v5475_v11  ;;  %4291 = vmatprep.subr.bf16.mxu1 %v5477_v12  ;;  %v1252_v11 = vld [vmem:[%s6513_s30 + $0x820] sm:$0xff]  ;;  %v1249_v12 = vld [vmem:[%s6513_s30 + $0x808] sm:$0xff]  ;;  %v816_v43 = vrot.slane %v815_v59, 2 }
 0x211   : > { %v5515_v37 = vcombine.high %v1248_v10, %v1252_v11  ;;  %v5517_v19 = vcombine.high %v1249_v12, %v1253_v2  ;;  %v6806_v45 = vpack.c.bf16 %v981_v27, %v981_v27  ;;  %v1293_v27 = vld [vmem:[%s6513_s30 + $0x968] sm:$0xff] }
 0x212   : > { %v817_v23 = vadd.f32 %v816_v43, %v815_v59  ;;  %v1308_v59 = vld [vmem:[%s6513_s30 + $0x9e0] sm:$0xff] }
 0x213   : > { %4128 = vmatpush1.bf16.msra.mxu0 %v5474_v35  ;;  %4292 = vmatpush1.bf16.msra.mxu1 %v5476_v36  ;;  %v5506_v35 = vcombine.low %v1240_v49, %v1244_v50  ;;  %v5508_v36 = vcombine.low %v1241_v56, %v1245_v58  ;;  %v5524_v49 = vcombine.low %v1257_v24, %v1261_v25  ;;  %v1272_v56 = vld [vmem:[%s6513_s30 + $0x8c0] sm:$0xff]  ;;  %v743_v58 = vrot.slane %v742_v33, 2  ;;  %v1289_v25 = vld [vmem:[%s6513_s30 + $0x948] sm:$0xff] }
 0x214   : > { %4129 = vmatprep.subr.bf16.mxu0 %v5483_v39  ;;  %4293 = vmatprep.subr.bf16.mxu1 %v5485_v40  ;;  %v792_v39 = vsel %vm690_vm1, %v760_v6, 0.0  ;;  %v978_v40 = vmax.f32 %v970_v9, 0.0  ;;  %v5531_v50 = vcombine.high %v1264_v32, %v1268_v38  ;;  %v1292_v24 = vld [vmem:[%s6513_s30 + $0x960] sm:$0xff] }
 0x215   : > { %v793_v29 = vrot.slane %v792_v39, 4  ;;  %v1316_v43 = vld [vmem:[%s6513_s30 + $0xa20] sm:$0xff] }
 0x216   : > { %v6800_v13 = vpack.c.bf16 %v978_v40, %v978_v40 }
 0x217   : > { %4130 = vmatpush1.bf16.msra.mxu0 %v5482_v4  ;;  %4294 = vmatpush1.bf16.msra.mxu1 %v5484_v28  ;;  %v5514_v4 = vcombine.low %v1248_v10, %v1252_v11  ;;  %v721_v28 = vadd.f32 %v720_v17, %v719_v3  ;;  %v1285_v17 = vld [vmem:[%s6513_s30 + $0x928] sm:$0xff] }
 0x218   : > { %4131 = vmatprep.subr.bf16.mxu0 %v5491_v30  ;;  %4295 = vmatprep.subr.bf16.mxu1 %v5493_v31  ;;  %v5516_v30 = vcombine.low %v1249_v12, %v1253_v2  ;;  %v5523_v31 = vcombine.high %v1256_v21, %v1260_v22  ;;  %v1280_v12 = vld [vmem:[%s6513_s30 + $0x900] sm:$0xff]  ;;  %v744_v2 = vadd.f32 %v743_v58, %v742_v33  ;;  %v818_v33 = vrot.slane %v817_v23, 1 }
 0x219   : > { %v722_v55 = vrot.slane %v721_v28, 2  ;;  %v5547_v40 = vcombine.high %v1280_v12, %v1284_v16 }
 0x21a   : > { %v819_v58 = vadd.f32 %v818_v33, %v817_v23  ;;  %v1325_v23 = vld [vmem:[%s6513_s30 + $0xa68] sm:$0xff] }
 0x21b   : > { %4132 = vmatpush1.bf16.msra.mxu0 %v5490_v42  ;;  %4296 = vmatpush1.bf16.msra.mxu1 %v5492_v44  ;;  %v1265_v42 = vld [vmem:[%s6513_s30 + $0x888] sm:$0xff]  ;;  %v723_v3 = vadd.f32 %v722_v55, %v721_v28  ;;  %v5546_v28 = vcombine.low %v1280_v12, %v1284_v16 }
 0x21c   : > { %4133 = vmatprep.subr.bf16.mxu0 %v5499_v47  ;;  %4297 = vmatprep.subr.bf16.mxu1 %v5501_v48  ;;  %v1269_v44 = vld [vmem:[%s6513_s30 + $0x8a8] sm:$0xff]  ;;  %v794_v47 = vadd.f32 %v793_v29, %v792_v39  ;;  %v5522_v48 = vcombine.low %v1256_v21, %v1260_v22  ;;  %v1288_v21 = vld [vmem:[%s6513_s30 + $0x940] sm:$0xff]  ;;  %v745_v22 = vrot.slane %v744_v2, 1  ;;  %v5548_v29 = vcombine.low %v1281_v46, %v1285_v17 }
 0x21d   : > { %v5533_v54 = vcombine.high %v1265_v42, %v1269_v44  ;;  %v5532_v9 = vcombine.low %v1265_v42, %v1269_v44  ;;  %v1301_v42 = vld [vmem:[%s6513_s30 + $0x9a8] sm:$0xff]  ;;  %v827_v12 = vmul.f32 0.25, %v819_v58 }
 0x21e   : > { %v795_v6 = vrot.slane %v794_v47, 2  ;;  %v1313_v16 = vld [vmem:[%s6513_s30 + $0xa08] sm:$0xff] }
 0x21f   : > { %4134 = vmatpush1.bf16.msra.mxu0 %v5498_v60  ;;  %4298 = vmatpush1.bf16.msra.mxu1 %v5500_v62  ;;  %v1276_v60 = vld [vmem:[%s6513_s30 + $0x8e0] sm:$0xff]  ;;  %v1273_v62 = vld [vmem:[%s6513_s30 + $0x8c8] sm:$0xff] }
 0x220   : > { %4135 = vmatprep.subr.bf16.mxu0 %v5507_v1  ;;  %4299 = vmatprep.subr.bf16.mxu1 %v5509_v7  ;;  %v1277_v1 = vld [vmem:[%s6513_s30 + $0x8e8] sm:$0xff]  ;;  %v5530_v7 = vcombine.low %v1264_v32, %v1268_v38  ;;  %v5539_v10 = vcombine.high %v1272_v56, %v1276_v60  ;;  %v746_v32 = vadd.f32 %v745_v22, %v744_v2 }
 0x221   : > { %v5541_v11 = vcombine.high %v1273_v62, %v1277_v1  ;;  %v5540_v39 = vcombine.low %v1273_v62, %v1277_v1  ;;  %v1297_v38 = vld [vmem:[%s6513_s30 + $0x988] sm:$0xff] }
 0x222   : > { %v1309_v62 = vld [vmem:[%s6513_s30 + $0x9e8] sm:$0xff] }
 0x223   : > { %4136 = vmatpush1.bf16.msra.mxu0 %v5506_v35  ;;  %4300 = vmatpush1.bf16.msra.mxu1 %v5508_v36  ;;  %v724_v35 = vrot.slane %v723_v3, 1  ;;  %v796_v36 = vadd.f32 %v795_v6, %v794_v47  ;;  %v5554_v47 = vcombine.low %v1288_v21, %v1292_v24  ;;  %v1321_v22 = vld [vmem:[%s6513_s30 + $0xa48] sm:$0xff] }
 0x224   : > { %4146 = vmatprep.subr.bf16.mxu0 %v5515_v37  ;;  %4310 = vmatprep.subr.bf16.mxu1 %v5517_v19  ;;  %v5538_v37 = vcombine.low %v1272_v56, %v1276_v60  ;;  %v5549_v19 = vcombine.high %v1281_v46, %v1285_v17  ;;  %v6831_v56 = vmul.f32 0.25, %v746_v32  ;;  %v1305_v60 = vld [vmem:[%s6513_s30 + $0x9c8] sm:$0xff]  ;;  %v5588_v33 = vcombine.low %v1321_v22, %v1325_v23 }
 0x225   : > { %v725_v51 = vadd.f32 %v724_v35, %v723_v3  ;;  %v1317_v46 = vld [vmem:[%s6513_s30 + $0xa28] sm:$0xff] }
 0x226   : > { %4138 = vmatmul.mubr.bf16.vlgmr.msra.gmra.mrb[8].mxu0 %v6800_v13  ;;  %4302 = vmatmul.mubr.bf16.vlgmr.msra.gmra.mrb[8].mxu1 %v6800_v13  ;;  %v835_v2 = vmul.f32 %v6831_v56, %v6831_v56 }
 0x227   : > { %4147 = vmatpush1.bf16.msra.mxu0 %v5514_v4  ;;  %4311 = vmatpush1.bf16.msra.mxu1 %v5516_v30  ;;  %v797_v4 = vrot.slane %v796_v36, 1  ;;  %v5555_v30 = vcombine.high %v1288_v21, %v1292_v24  ;;  %v6828_v44 = vmul.f32 0.25, %v725_v51  ;;  %v1324_v21 = vld [vmem:[%s6513_s30 + $0xa60] sm:$0xff] }
 0x228   : > { %4148 = vmatprep.subr.bf16.mxu0 %v5523_v31  ;;  %4312 = vmatprep.subr.bf16.mxu1 %v5525_v14  ;;  %v5557_v31 = vcombine.high %v1289_v25, %v1293_v27  ;;  %v1296_v14 = vld [vmem:[%s6513_s30 + $0x980] sm:$0xff] }
 0x229   : > { %4178 = vmatprep.mubr.bf16.mxu0 %v6806_v45  ;;  %4342 = vmatprep.mubr.bf16.mxu1 %v6806_v45  ;;  %v798_v55 = vadd.f32 %v797_v4, %v796_v36  ;;  %v832_v3 = vmul.f32 %v6828_v44, %v6828_v44  ;;  %v5562_v6 = vcombine.low %v1296_v14, %v1300_v34 }
 0x22a   : > { %v5572_v36 = vcombine.low %v1305_v60, %v1309_v62  ;;  %v5589_v4 = vcombine.high %v1321_v22, %v1325_v23  ;;  %v1361_v23 = vld [vmem:[%s6513_s30 + $0xb88] sm:$0xff] }
 0x22b   : > { %4149 = vmatpush1.bf16.msra.mxu0 %v5522_v48  ;;  %4313 = vmatpush1.bf16.msra.mxu1 %v5524_v49  ;;  %v5556_v48 = vcombine.low %v1289_v25, %v1293_v27  ;;  %v5563_v49 = vcombine.high %v1296_v14, %v1300_v34  ;;  %v824_v1 = vmul.f32 0.25, %v798_v55  ;;  %v5580_v27 = vcombine.low %v1313_v16, %v1317_v46  ;;  %v1333_v14 = vld [vmem:[%s6513_s30 + $0xaa8] sm:$0xff]  ;;  %v1340_v55 = vld [vmem:[%s6513_s30 + $0xae0] sm:$0xff] }
 0x22c   : > { %4150 = vmatprep.subr.bf16.mxu0 %v5531_v50  ;;  %4314 = vmatprep.subr.bf16.mxu1 %v5533_v54  ;;  %v5565_v50 = vcombine.high %v1297_v38, %v1301_v42  ;;  %v1304_v54 = vld [vmem:[%s6513_s30 + $0x9c0] sm:$0xff] }
 0x22d   : > { %v840_v17 = vsub.f32 %v824_v1, %v832_v3  ;;  %v5570_v35 = vcombine.low %v1304_v54, %v1308_v59  ;;  %v1349_v1 = vld [vmem:[%s6513_s30 + $0xb28] sm:$0xff]  ;;  %v6861_v3 = vsub.s32 4, %v6634_v57 }
 0x22f   : > { %4151 = vmatpush1.bf16.msra.mxu0 %v5530_v7  ;;  %4315 = vmatpush1.bf16.msra.mxu1 %v5532_v9  ;;  %v5564_v7 = vcombine.low %v1297_v38, %v1301_v42  ;;  %v5571_v9 = vcombine.high %v1304_v54, %v1308_v59  ;;  %v856_v24 = vadd.f32 1e-05, %v840_v17  ;;  %v1336_v42 = vld [vmem:[%s6513_s30 + $0xac0] sm:$0xff]  ;;  %v851_v17 = vsub.f32 %v6658_v15, %v6831_v56 }
 0x230   : > { %4152 = vmatprep.subr.bf16.mxu0 %v5539_v10  ;;  %4316 = vmatprep.subr.bf16.mxu1 %v5541_v11  ;;  %v5573_v10 = vcombine.high %v1305_v60, %v1309_v62  ;;  %v1312_v11 = vld [vmem:[%s6513_s30 + $0xa00] sm:$0xff]  ;;  %v5603_v54 = vcombine.high %v1336_v42, %v1340_v55  ;;  %v1345_v62 = vld [vmem:[%s6513_s30 + $0xb08] sm:$0xff] }
 0x231   : > { %v5578_v25 = vcombine.low %v1312_v11, %v1316_v43  ;;  %5932 = vrsqrt.f32 %v856_v24  ;;  %v1344_v59 = vld [vmem:[%s6513_s30 + $0xb00] sm:$0xff]  ;;  %v1365_v24 = vld [vmem:[%s6513_s30 + $0xba8] sm:$0xff] }
 0x232   : > { %v1348_v60 = vld [vmem:[%s6513_s30 + $0xb20] sm:$0xff] }
 0x233   : > { %4153 = vmatpush1.bf16.msra.mxu0 %v5538_v37  ;;  %4317 = vmatpush1.bf16.msra.mxu1 %v5540_v39  ;;  %v5579_v37 = vcombine.high %v1312_v11, %v1316_v43  ;;  %v5581_v39 = vcombine.high %v1313_v16, %v1317_v46  ;;  %v5613_v11 = vcombine.high %v1345_v62, %v1349_v1  ;;  %v1356_v43 = vld [vmem:[%s6513_s30 + $0xb60] sm:$0xff]  ;;  %v1353_v16 = vld [vmem:[%s6513_s30 + $0xb48] sm:$0xff] }
 0x234   : > { %4154 = vmatprep.subr.bf16.mxu0 %v5547_v40  ;;  %4318 = vmatprep.subr.bf16.mxu1 %v5549_v19  ;;  %v1320_v40 = vld [vmem:[%s6513_s30 + $0xa40] sm:$0xff]  ;;  %v843_v19 = vsub.f32 %v827_v12, %v835_v2  ;;  %v1357_v46 = vld [vmem:[%s6513_s30 + $0xb68] sm:$0xff] }
 0x235   : > { %v5587_v51 = vcombine.high %v1320_v40, %v1324_v21  ;;  %v5586_v32 = vcombine.low %v1320_v40, %v1324_v21  ;;  %v1352_v12 = vld [vmem:[%s6513_s30 + $0xb40] sm:$0xff] }
 0x236   : > { %v5619_v40 = vcombine.high %v1352_v12, %v1356_v43  ;;  %v1360_v15 = vld [vmem:[%s6513_s30 + $0xb80] sm:$0xff] }
 0x237   : > { %4155 = vmatpush1.bf16.msra.mxu0 %v5546_v28  ;;  %4319 = vmatpush1.bf16.msra.mxu1 %v5548_v29  ;;  %v1328_v28 = vld [vmem:[%s6513_s30 + $0xa80] sm:$0xff]  ;;  %v859_v29 = vadd.f32 1e-05, %v843_v19  ;;  %v5621_v19 = vcombine.high %v1353_v16, %v1357_v46 }
 0x238   : > { %4156 = vmatprep.subr.bf16.mxu0 %v5555_v30  ;;  %4320 = vmatprep.subr.bf16.mxu1 %v5557_v31  ;;  %v1332_v30 = vld [vmem:[%s6513_s30 + $0xaa0] sm:$0xff]  ;;  %v1329_v31 = vld [vmem:[%s6513_s30 + $0xa88] sm:$0xff] }
 0x239   : > { %v5595_v34 = vcombine.high %v1328_v28, %v1332_v30  ;;  %v5597_v38 = vcombine.high %v1329_v31, %v1333_v14  ;;  %5934 = vrsqrt.f32 %v859_v29  ;;  %v1364_v56 = vld [vmem:[%s6513_s30 + $0xba0] sm:$0xff] }
 0x23a   : > { %v1368_v29 = vld [vmem:[%s6513_s30 + $0xbc0] sm:$0xff] }
 0x23b   : > { %4157 = vmatpush1.bf16.msra.mxu0 %v5554_v47  ;;  %4321 = vmatpush1.bf16.msra.mxu1 %v5556_v48  ;;  %v1337_v47 = vld [vmem:[%s6513_s30 + $0xac8] sm:$0xff]  ;;  %v5933_v2 = vpop.eup %5932 }
 0x23c   : > { %4158 = vmatprep.subr.bf16.mxu0 %v5563_v49  ;;  %4322 = vmatprep.subr.bf16.mxu1 %v5565_v50  ;;  %v1341_v48 = vld [vmem:[%s6513_s30 + $0xae8] sm:$0xff]  ;;  %v5594_v49 = vcombine.low %v1328_v28, %v1332_v30  ;;  %v5596_v50 = vcombine.low %v1329_v31, %v1333_v14  ;;  %v5629_v28 = vcombine.high %v1361_v23, %v1365_v24  ;;  %v6883_v30 = vld [vmem:[#allocation7] sm:$0xff]  ;;  %v1372_v14 = vld [vmem:[%s6513_s30 + $0xbe0] sm:$0xff] }
 0x23d   : > { %v5605_v58 = vcombine.high %v1337_v47, %v1341_v48 }
 0x23f   : > { %4159 = vmatpush1.bf16.msra.mxu0 %v5562_v6  ;;  %4323 = vmatpush1.bf16.msra.mxu1 %v5564_v7  ;;  %v5602_v6 = vcombine.low %v1336_v42, %v1340_v55  ;;  %v5604_v7 = vcombine.low %v1337_v47, %v1341_v48  ;;  %v5626_v42 = vcombine.low %v1360_v15, %v1364_v56  ;;  %v733_v47 = vsel %vm690_vm1, %v6649_v5, 0.0 }
 0x240   : > { %4160 = vmatprep.subr.bf16.mxu0 %v5571_v9  ;;  %4324 = vmatprep.subr.bf16.mxu1 %v5573_v10  ;;  %v848_v9 = vsub.f32 %v6629_v8, %v6828_v44  ;;  %v5611_v10 = vcombine.high %v1344_v59, %v1348_v60  ;;  %v897_v8 = vrot.slane %v6639_v63, %v6861_v3 }
 0x241   : > { %v5610_v44 = vcombine.low %v1344_v59, %v1348_v60  ;;  %v5628_v55 = vcombine.low %v1361_v23, %v1365_v24  ;;  %v5635_v48 = vcombine.high %v1368_v29, %v1372_v14  ;;  %v1377_v59 = vld [vmem:[%s6513_s30 + $0xc08] sm:$0xff] }
 0x242   : > { %v1381_v60 = vld [vmem:[%s6513_s30 + $0xc28] sm:$0xff] }
 0x243   : > { %4161 = vmatpush1.bf16.msra.mxu0 %v5570_v35  ;;  %4325 = vmatpush1.bf16.msra.mxu1 %v5572_v36  ;;  %v6872_v35 = vsub.s32 7, %v6634_v57  ;;  %v5935_v36 = vpop.eup %5934 }
 0x244   : > { %4162 = vmatprep.subr.bf16.mxu0 %v5579_v37  ;;  %4326 = vmatprep.subr.bf16.mxu1 %v5581_v39  ;;  %v5612_v37 = vcombine.low %v1345_v62, %v1349_v1  ;;  %v872_v39 = vmul.f32 %v5933_v2, %v848_v9  ;;  %v875_v21 = vmul.f32 %v5935_v36, %v851_v17  ;;  %v734_v1 = vrot.slane %v733_v47, 4  ;;  %v1384_v2 = vld [vmem:[%s6513_s30 + $0xc40] sm:$0xff] }
 0x245   : > { %v909_v22 = vrot.slane %v6639_v63, %v6872_v35  ;;  %v947_v63 = vrot.slane %v6883_v30, %v6861_v3 }
 0x246   : > { %v735_v36 = vadd.f32 %v734_v1, %v733_v47  ;;  %v1408_v47 = vld [vmem:[%s6513_s30 + $0xd00] sm:$0xff] }
 0x247   : > { %4163 = vmatpush1.bf16.msra.mxu0 %v5578_v25  ;;  %4327 = vmatpush1.bf16.msra.mxu1 %v5580_v27  ;;  %v5618_v25 = vcombine.low %v1352_v12, %v1356_v43  ;;  %v5620_v27 = vcombine.low %v1353_v16, %v1357_v46  ;;  %v925_v31 = vmul.f32 %v909_v22, %v875_v21  ;;  %v1388_v43 = vld [vmem:[%s6513_s30 + $0xc60] sm:$0xff]  ;;  %v1385_v16 = vld [vmem:[%s6513_s30 + $0xc48] sm:$0xff] }
 0x248   : > { %4164 = vmatprep.subr.bf16.mxu0 %v5587_v51  ;;  %4328 = vmatprep.subr.bf16.mxu1 %v5589_v4  ;;  %v5627_v51 = vcombine.high %v1360_v15, %v1364_v56  ;;  %v922_v4 = vmul.f32 %v897_v8, %v872_v39  ;;  %v5645_v12 = vcombine.high %v1377_v59, %v1381_v60  ;;  %v1389_v46 = vld [vmem:[%s6513_s30 + $0xc68] sm:$0xff]  ;;  %v1392_v15 = vld [vmem:[%s6513_s30 + $0xc80] sm:$0xff]  ;;  %v736_v24 = vrot.slane %v735_v36, 2 }
 0x249   : > { %v1396_v56 = vld [vmem:[%s6513_s30 + $0xca0] sm:$0xff]  ;;  %v1393_v21 = vld [vmem:[%s6513_s30 + $0xc88] sm:$0xff] }
 0x24a   : > { %v1397_v22 = vld [vmem:[%s6513_s30 + $0xca8] sm:$0xff] }
 0x24b   : > { %4165 = vmatpush1.bf16.msra.mxu0 %v5586_v32  ;;  %4329 = vmatpush1.bf16.msra.mxu1 %v5588_v33  ;;  %v1369_v32 = vld [vmem:[%s6513_s30 + $0xbc8] sm:$0xff] }
 0x24c   : > { %4166 = vmatprep.subr.bf16.mxu0 %v5595_v34  ;;  %4330 = vmatprep.subr.bf16.mxu1 %v5597_v38  ;;  %v1373_v33 = vld [vmem:[%s6513_s30 + $0xbe8] sm:$0xff]  ;;  %v959_v34 = vrot.slane %v6883_v30, %v6872_v35  ;;  %v762_v38 = vmul.f32 %v6649_v5, %v6649_v5 }
 0x24e   : > { %v975_v62 = vadd.f32 %v959_v34, %v925_v31  ;;  %v806_v9 = vsel %vm690_vm1, %v762_v38, 0.0  ;;  %v1401_v31 = vld [vmem:[%s6513_s30 + $0xcc8] sm:$0xff]  ;;  %v5658_v34 = vcombine.low %v1392_v15, %v1396_v56  ;;  %v5660_v38 = vcombine.low %v1393_v21, %v1397_v22 }
 0x24f   : > { %4167 = vmatpush1.bf16.msra.mxu0 %v5594_v49  ;;  %4331 = vmatpush1.bf16.msra.mxu1 %v5596_v50  ;;  %v5637_v49 = vcombine.high %v1369_v32, %v1373_v33  ;;  %v972_v50 = vadd.f32 %v947_v63, %v922_v4  ;;  %v807_v8 = vrot.slane %v806_v9, 4  ;;  %v5659_v4 = vcombine.high %v1392_v15, %v1396_v56  ;;  %v1404_v63 = vld [vmem:[%s6513_s30 + $0xce0] sm:$0xff] }
 0x250   : > { %4168 = vmatprep.subr.bf16.mxu0 %v5603_v54  ;;  %4332 = vmatprep.subr.bf16.mxu1 %v5605_v58  ;;  %v1376_v54 = vld [vmem:[%s6513_s30 + $0xc00] sm:$0xff]  ;;  %v983_v17 = vmax.f32 %v975_v62, 0.0 }
 0x251   : > { %v1380_v58 = vld [vmem:[%s6513_s30 + $0xc20] sm:$0xff] }
 0x252   : > { %v6911_v23 = vpack.c.bf16 %v983_v17, %v983_v17  ;;  %v1424_v17 = vld [vmem:[%s6513_s30 + $0xd80] sm:$0xff] }
 0x253   : > { %4169 = vmatpush1.bf16.msra.mxu0 %v5602_v6  ;;  %4333 = vmatpush1.bf16.msra.mxu1 %v5604_v7  ;;  %v5634_v6 = vcombine.low %v1368_v29, %v1372_v14  ;;  %v5636_v7 = vcombine.low %v1369_v32, %v1373_v33  ;;  %v1400_v29 = vld [vmem:[%s6513_s30 + $0xcc0] sm:$0xff]  ;;  %v1405_v14 = vld [vmem:[%s6513_s30 + $0xce8] sm:$0xff]  ;;  %v737_v32 = vadd.f32 %v736_v24, %v735_v36 }
 0x254   : > { %4170 = vmatprep.subr.bf16.mxu0 %v5611_v10  ;;  %4334 = vmatprep.subr.bf16.mxu1 %v5613_v11  ;;  %v980_v10 = vmax.f32 %v972_v50, 0.0  ;;  %v5643_v11 = vcombine.high %v1376_v54, %v1380_v58  ;;  %v1413_v50 = vld [vmem:[%s6513_s30 + $0xd28] sm:$0xff]  ;;  %v1428_v36 = vld [vmem:[%s6513_s30 + $0xda0] sm:$0xff] }
 0x255   : > { %v5691_v56 = vcombine.high %v1424_v17, %v1428_v36  ;;  %v1436_v24 = vld [vmem:[%s6513_s30 + $0xde0] sm:$0xff] }
 0x256   : > { %v6905_v39 = vpack.c.bf16 %v980_v10, %v980_v10  ;;  %v1421_v10 = vld [vmem:[%s6513_s30 + $0xd68] sm:$0xff] }
 0x257   : > { %4171 = vmatpush1.bf16.msra.mxu0 %v5610_v44  ;;  %4335 = vmatpush1.bf16.msra.mxu1 %v5612_v37  ;;  %v5642_v44 = vcombine.low %v1376_v54, %v1380_v58  ;;  %v5644_v37 = vcombine.low %v1377_v59, %v1381_v60  ;;  %v738_v54 = vrot.slane %v737_v32, 1  ;;  %v5666_v59 = vcombine.low %v1400_v29, %v1404_v63 }
 0x258   : > { %4172 = vmatprep.subr.bf16.mxu0 %v5619_v40  ;;  %4336 = vmatprep.subr.bf16.mxu1 %v5621_v19  ;;  %v5651_v40 = vcombine.high %v1384_v2, %v1388_v43  ;;  %v5653_v19 = vcombine.high %v1385_v16, %v1389_v46  ;;  %v5668_v60 = vcombine.low %v1401_v31, %v1405_v14 }
 0x25b   : > { %4173 = vmatpush1.bf16.msra.mxu0 %v5618_v25  ;;  %4337 = vmatpush1.bf16.msra.mxu1 %v5620_v27  ;;  %v808_v25 = vadd.f32 %v807_v8, %v806_v9  ;;  %v5650_v27 = vcombine.low %v1384_v2, %v1388_v43  ;;  %v1417_v9 = vld [vmem:[%s6513_s30 + $0xd48] sm:$0xff] }
 0x25c   : > { %4174 = vmatprep.subr.bf16.mxu0 %v5627_v51  ;;  %4338 = vmatprep.subr.bf16.mxu1 %v5629_v28  ;;  %v5652_v51 = vcombine.low %v1385_v16, %v1389_v46  ;;  %v5661_v28 = vcombine.high %v1393_v21, %v1397_v22  ;;  %v5685_v46 = vcombine.high %v1417_v9, %v1421_v10  ;;  %v1425_v8 = vld [vmem:[%s6513_s30 + $0xd88] sm:$0xff]  ;;  %v1432_v22 = vld [vmem:[%s6513_s30 + $0xdc0] sm:$0xff] }
 0x25d   : > { %v809_v33 = vrot.slane %v808_v25, 2  ;;  %v5684_v15 = vcombine.low %v1417_v9, %v1421_v10  ;;  %v1460_v9 = vld [vmem:[%s6513_s30 + $0xea0] sm:$0xff]  ;;  %v1457_v10 = vld [vmem:[%s6513_s30 + $0xe88] sm:$0xff] }
 0x25f   : > { %4175 = vmatpush1.bf16.msra.mxu0 %v5626_v42  ;;  %4339 = vmatpush1.bf16.msra.mxu1 %v5628_v55  ;;  %v5667_v42 = vcombine.high %v1400_v29, %v1404_v63  ;;  %v5669_v55 = vcombine.high %v1401_v31, %v1405_v14  ;;  %v810_v58 = vadd.f32 %v809_v33, %v808_v25  ;;  %v1433_v25 = vld [vmem:[%s6513_s30 + $0xdc8] sm:$0xff]  ;;  %v1440_v14 = vld [vmem:[%s6513_s30 + $0xe00] sm:$0xff] }
 0x260   : > { %4176 = vmatprep.subr.bf16.mxu0 %v5635_v48  ;;  %4340 = vmatprep.subr.bf16.mxu1 %v5637_v49  ;;  %v1412_v48 = vld [vmem:[%s6513_s30 + $0xd20] sm:$0xff]  ;;  %v1409_v49 = vld [vmem:[%s6513_s30 + $0xd08] sm:$0xff]  ;;  %v5699_v63 = vcombine.high %v1432_v22, %v1436_v24 }
 0x261   : > { %v5675_v62 = vcombine.high %v1408_v47, %v1412_v48  ;;  %v5677_v1 = vcombine.high %v1409_v49, %v1413_v50  ;;  %v5674_v2 = vcombine.low %v1408_v47, %v1412_v48  ;;  %v5676_v43 = vcombine.low %v1409_v49, %v1413_v50  ;;  %v1441_v33 = vld [vmem:[%s6513_s30 + $0xe08] sm:$0xff]  ;;  %v1448_v49 = vld [vmem:[%s6513_s30 + $0xe40] sm:$0xff] }
 0x262   : > { %v1452_v50 = vld [vmem:[%s6513_s30 + $0xe60] sm:$0xff] }
 0x263   : > { %4177 = vmatpush1.bf16.msra.mxu0 %v5634_v6  ;;  %4341 = vmatpush1.bf16.msra.mxu1 %v5636_v7  ;;  %v1416_v6 = vld [vmem:[%s6513_s30 + $0xd40] sm:$0xff] }
 0x264   : > { %4187 = vmatprep.subr.bf16.mxu0 %v5643_v11  ;;  %4351 = vmatprep.subr.bf16.mxu1 %v5645_v12  ;;  %v1420_v7 = vld [vmem:[%s6513_s30 + $0xd60] sm:$0xff]  ;;  %v739_v11 = vadd.f32 %v738_v54, %v737_v32  ;;  %v811_v12 = vrot.slane %v810_v58, 1  ;;  %v1449_v54 = vld [vmem:[%s6513_s30 + $0xe48] sm:$0xff] }
 0x265   : > { %v5683_v16 = vcombine.high %v1416_v6, %v1420_v7  ;;  %v1444_v32 = vld [vmem:[%s6513_s30 + $0xe20] sm:$0xff] }
 0x266   : > { %4179 = vmatmul.mubr.bf16.vlgmr.msra.gmra.mrb[8].mxu0 %v6905_v39  ;;  %4343 = vmatmul.mubr.bf16.vlgmr.msra.gmra.mrb[8].mxu1 %v6905_v39  ;;  %v5707_v47 = vcombine.high %v1440_v14, %v1444_v32 }
 0x267   : > { %4188 = vmatpush1.bf16.msra.mxu0 %v5642_v44  ;;  %4352 = vmatpush1.bf16.msra.mxu1 %v5644_v37  ;;  %v1429_v44 = vld [vmem:[%s6513_s30 + $0xda8] sm:$0xff]  ;;  %v6933_v37 = vmul.f32 0.25, %v739_v11 }
 0x268   : > { %4189 = vmatprep.subr.bf16.mxu0 %v5651_v40  ;;  %4353 = vmatprep.subr.bf16.mxu1 %v5653_v19  ;;  %v812_v40 = vadd.f32 %v811_v12, %v810_v58  ;;  %v5682_v19 = vcombine.low %v1416_v6, %v1420_v7  ;;  %v5693_v21 = vcombine.high %v1425_v8, %v1429_v44  ;;  %v1453_v58 = vld [vmem:[%s6513_s30 + $0xe68] sm:$0xff]  ;;  %v1456_v7 = vld [vmem:[%s6513_s30 + $0xe80] sm:$0xff] }
 0x269   : > { %4219 = vmatprep.mubr.bf16.mxu0 %v6911_v23  ;;  %4383 = vmatprep.mubr.bf16.mxu1 %v6911_v23  ;;  %v5692_v29 = vcombine.low %v1425_v8, %v1429_v44  ;;  %v5717_v6 = vcombine.high %v1449_v54, %v1453_v58  ;;  %v1461_v11 = vld [vmem:[%s6513_s30 + $0xea8] sm:$0xff]  ;;  %v5714_v12 = vcombine.low %v1448_v49, %v1452_v50 }
 0x26a   : > { %v1469_v8 = vld [vmem:[%s6513_s30 + $0xee8] sm:$0xff]  ;;  %v5722_v44 = vcombine.low %v1456_v7, %v1460_v9 }
 0x26b   : > { %4190 = vmatpush1.bf16.msra.mxu0 %v5650_v27  ;;  %4354 = vmatpush1.bf16.msra.mxu1 %v5652_v51  ;;  %v1437_v27 = vld [vmem:[%s6513_s30 + $0xde8] sm:$0xff]  ;;  %v826_v51 = vmul.f32 0.25, %v812_v40  ;;  %v5724_v40 = vcombine.low %v1457_v10, %v1461_v11 }
 0x26c   : > { %4191 = vmatprep.subr.bf16.mxu0 %v5659_v4  ;;  %4355 = vmatprep.subr.bf16.mxu1 %v5661_v28  ;;  %v834_v4 = vmul.f32 %v6933_v37, %v6933_v37  ;;  %v5690_v28 = vcombine.low %v1424_v17, %v1428_v36  ;;  %v5701_v31 = vcombine.high %v1433_v25, %v1437_v27  ;;  %v1468_v17 = vld [vmem:[%s6513_s30 + $0xee0] sm:$0xff]  ;;  %v1465_v36 = vld [vmem:[%s6513_s30 + $0xec8] sm:$0xff] }
 0x26f   : > { %4192 = vmatpush1.bf16.msra.mxu0 %v5658_v34  ;;  %4356 = vmatpush1.bf16.msra.mxu1 %v5660_v38  ;;  %v1445_v34 = vld [vmem:[%s6513_s30 + $0xe28] sm:$0xff]  ;;  %v842_v38 = vsub.f32 %v826_v51, %v834_v4  ;;  %v5732_v51 = vcombine.low %v1465_v36, %v1469_v8  ;;  %v850_v4 = vsub.f32 %v6649_v5, %v6933_v37 }
 0x270   : > { %4193 = vmatprep.subr.bf16.mxu0 %v5667_v42  ;;  %4357 = vmatprep.subr.bf16.mxu1 %v5669_v55  ;;  %v5698_v42 = vcombine.low %v1432_v22, %v1436_v24  ;;  %v5700_v55 = vcombine.low %v1433_v25, %v1437_v27  ;;  %v5709_v48 = vcombine.high %v1441_v33, %v1445_v34  ;;  %v1473_v22 = vld [vmem:[%s6513_s30 + $0xf08] sm:$0xff]  ;;  %v6962_v25 = vsub.s32 6, %v6634_v57 }
 0x271   : > { %v1477_v24 = vld [vmem:[%s6513_s30 + $0xf28] sm:$0xff] }
 0x272   : > { %v5740_v5 = vcombine.low %v1473_v22, %v1477_v24 }
 0x273   : > { %4194 = vmatpush1.bf16.msra.mxu0 %v5666_v59  ;;  %4358 = vmatpush1.bf16.msra.mxu1 %v5668_v60  ;;  %v858_v59 = vadd.f32 1e-05, %v842_v38  ;;  %v5706_v60 = vcombine.low %v1440_v14, %v1444_v32  ;;  %v1484_v14 = vld [vmem:[%s6513_s30 + $0xf60] sm:$0xff]  ;;  %v1481_v32 = vld [vmem:[%s6513_s30 + $0xf48] sm:$0xff] }
 0x274   : > { %4195 = vmatprep.subr.bf16.mxu0 %v5675_v62  ;;  %4359 = vmatprep.subr.bf16.mxu1 %v5677_v1  ;;  %v5708_v62 = vcombine.low %v1441_v33, %v1445_v34  ;;  %v5715_v1 = vcombine.high %v1448_v49, %v1452_v50  ;;  %v1485_v33 = vld [vmem:[%s6513_s30 + $0xf68] sm:$0xff]  ;;  %v5955_v34 = vld [vmem:[#allocation6] sm:$0xff]  ;;  %v1492_v49 = vld [vmem:[%s6513_s30 + $0xfa0] sm:$0xff] }
 0x275   : > { %5936 = vrsqrt.f32 %v858_v59  ;;  %v905_v38 = vrot.slane %v5955_v34, %v6962_v25  ;;  %v1489_v50 = vld [vmem:[%s6513_s30 + $0xf88] sm:$0xff]  ;;  %v5748_v59 = vcombine.low %v1481_v32, %v1485_v33 }
 0x277   : > { %4196 = vmatpush1.bf16.msra.mxu0 %v5674_v2  ;;  %4360 = vmatpush1.bf16.msra.mxu1 %v5676_v43  ;;  %v5716_v2 = vcombine.low %v1449_v54, %v1453_v58  ;;  %v5723_v43 = vcombine.high %v1456_v7, %v1460_v9  ;;  %v1493_v54 = vld [vmem:[%s6513_s30 + $0xfa8] sm:$0xff]  ;;  %v1496_v7 = vld [vmem:[%s6513_s30 + $0xfc0] sm:$0xff] }
 0x278   : > { %4197 = vmatprep.subr.bf16.mxu0 %v5683_v16  ;;  %4361 = vmatprep.subr.bf16.mxu1 %v5685_v46  ;;  %v5725_v16 = vcombine.high %v1457_v10, %v1461_v11  ;;  %v1464_v46 = vld [vmem:[%s6513_s30 + $0xec0] sm:$0xff]  ;;  %v1497_v10 = vld [vmem:[%s6513_s30 + $0xfc8] sm:$0xff] }
 0x279   : > { %v5730_v27 = vcombine.low %v1464_v46, %v1468_v17  ;;  %v1500_v9 = vld [vmem:[%s6513_s30 + $0xfe0] sm:$0xff]  ;;  %v1501_v11 = vld [vmem:[%s6513_s30 + $0xfe8] sm:$0xff] }
 0x27b   : > { %4198 = vmatpush1.bf16.msra.mxu0 %v5682_v19  ;;  %4362 = vmatpush1.bf16.msra.mxu1 %v5684_v15  ;;  %v5731_v19 = vcombine.high %v1464_v46, %v1468_v17  ;;  %v5733_v15 = vcombine.high %v1465_v36, %v1469_v8  ;;  %v994_v46 = vld [vmem:[%s6513_s30 + $0x10] sm:$0xff]  ;;  %v995_v36 = vld [vmem:[%s6513_s30 + $0x18] sm:$0xff] }
 0x27c   : > { %4199 = vmatprep.subr.bf16.mxu0 %v5691_v56  ;;  %4363 = vmatprep.subr.bf16.mxu1 %v5693_v21  ;;  %v1472_v56 = vld [vmem:[%s6513_s30 + $0xf00] sm:$0xff]  ;;  %v998_v17 = vld [vmem:[%s6513_s30 + $0x30] sm:$0xff]  ;;  %v999_v8 = vld [vmem:[%s6513_s30 + $0x38] sm:$0xff] }
 0x27d   : > { %v1476_v21 = vld [vmem:[%s6513_s30 + $0xf20] sm:$0xff] }
 0x27f   : > { %4200 = vmatpush1.bf16.msra.mxu0 %v5690_v28  ;;  %4364 = vmatpush1.bf16.msra.mxu1 %v5692_v29  ;;  %v5739_v28 = vcombine.high %v1472_v56, %v1476_v21  ;;  %v5741_v29 = vcombine.high %v1473_v22, %v1477_v24  ;;  %v1006_v22 = vld [vmem:[%s6513_s30 + $0x70] sm:$0xff]  ;;  %v1003_v24 = vld [vmem:[%s6513_s30 + $0x58] sm:$0xff] }
 0x280   : > { %4201 = vmatprep.subr.bf16.mxu0 %v5699_v63  ;;  %4365 = vmatprep.subr.bf16.mxu1 %v5701_v31  ;;  %v1480_v63 = vld [vmem:[%s6513_s30 + $0xf40] sm:$0xff]  ;;  %v5937_v31 = vpop.eup %5936 }
 0x281   : > { %v874_v37 = vmul.f32 %v5937_v31, %v850_v4  ;;  %v5746_v58 = vcombine.low %v1480_v63, %v1484_v14  ;;  %v1010_v31 = vld [vmem:[%s6513_s30 + $0x90] sm:$0xff] }
 0x283   : > { %4202 = vmatpush1.bf16.msra.mxu0 %v5698_v42  ;;  %4366 = vmatpush1.bf16.msra.mxu1 %v5700_v55  ;;  %v5738_v42 = vcombine.low %v1472_v56, %v1476_v21  ;;  %v5747_v55 = vcombine.high %v1480_v63, %v1484_v14  ;;  %v5265_v56 = vcombine.high %v995_v36, %v999_v8  ;;  %v1002_v21 = vld [vmem:[%s6513_s30 + $0x50] sm:$0xff] }
 0x284   : > { %4203 = vmatprep.subr.bf16.mxu0 %v5707_v47  ;;  %4367 = vmatprep.subr.bf16.mxu1 %v5709_v48  ;;  %v5749_v47 = vcombine.high %v1481_v32, %v1485_v33  ;;  %v1488_v48 = vld [vmem:[%s6513_s30 + $0xf80] sm:$0xff]  ;;  %v1014_v14 = vld [vmem:[%s6513_s30 + $0xb0] sm:$0xff]  ;;  %v1011_v32 = vld [vmem:[%s6513_s30 + $0x98] sm:$0xff]  ;;  %v5270_v34 = vcombine.low %v1002_v21, %v1006_v22 }
 0x285   : > { %v1015_v33 = vld [vmem:[%s6513_s30 + $0xb8] sm:$0xff] }
 0x287   : > { %4204 = vmatpush1.bf16.msra.mxu0 %v5706_v60  ;;  %4368 = vmatpush1.bf16.msra.mxu1 %v5708_v62  ;;  %v955_v60 = vrot.slane %v6883_v30, %v6962_v25  ;;  %v924_v62 = vmul.f32 %v905_v38, %v874_v37  ;;  %v5763_v30 = vcombine.high %v1496_v7, %v1500_v9  ;;  %v1018_v37 = vld [vmem:[%s6513_s30 + $0xd0] sm:$0xff] }
 0x288   : > { %4205 = vmatprep.subr.bf16.mxu0 %v5715_v1  ;;  %4369 = vmatprep.subr.bf16.mxu1 %v5717_v6  ;;  %v5755_v1 = vcombine.high %v1488_v48, %v1492_v49  ;;  %v5757_v6 = vcombine.high %v1489_v50, %v1493_v54 }
 0x28b   : > { %4206 = vmatpush1.bf16.msra.mxu0 %v5714_v12  ;;  %4370 = vmatpush1.bf16.msra.mxu1 %v5716_v2  ;;  %v5754_v12 = vcombine.low %v1488_v48, %v1492_v49  ;;  %v5756_v2 = vcombine.low %v1489_v50, %v1493_v54  ;;  %v1023_v48 = vld [vmem:[%s6513_s30 + $0xf8] sm:$0xff]  ;;  %v5278_v49 = vcombine.low %v1010_v31, %v1014_v14 }
 0x28c   : > { %4207 = vmatprep.subr.bf16.mxu0 %v5723_v43  ;;  %4371 = vmatprep.subr.bf16.mxu1 %v5725_v16  ;;  %v5765_v43 = vcombine.high %v1497_v10, %v1501_v11  ;;  %v974_v16 = vadd.f32 %v955_v60, %v924_v62  ;;  %v5280_v50 = vcombine.low %v1011_v32, %v1015_v33  ;;  %v1027_v60 = vld [vmem:[%s6513_s30 + $0x118] sm:$0xff] }
 0x28d   : > { %v1031_v62 = vld [vmem:[%s6513_s30 + $0x138] sm:$0xff] }
 0x28f   : > { %4208 = vmatpush1.bf16.msra.mxu0 %v5722_v44  ;;  %4372 = vmatpush1.bf16.msra.mxu1 %v5724_v40  ;;  %v5762_v44 = vcombine.low %v1496_v7, %v1500_v9  ;;  %v5764_v40 = vcombine.low %v1497_v10, %v1501_v11  ;;  %v5297_v9 = vcombine.high %v1027_v60, %v1031_v62  ;;  %v1034_v10 = vld [vmem:[%s6513_s30 + $0x150] sm:$0xff] }
 0x290   : > { %4209 = vmatprep.subr.bf16.mxu0 %v5731_v19  ;;  %4373 = vmatprep.subr.bf16.mxu1 %v5733_v15  ;;  %v982_v19 = vmax.f32 %v974_v16, 0.0  ;;  %v5263_v15 = vcombine.high %v994_v46, %v998_v17  ;;  %v1038_v11 = vld [vmem:[%s6513_s30 + $0x170] sm:$0xff] }
 0x291   : > { %v5303_v16 = vcombine.high %v1034_v10, %v1038_v11 }
 0x292   : > { %v6989_v4 = vpack.c.bf16 %v982_v19, %v982_v19 }
 0x293   : > { %4210 = vmatpush1.bf16.msra.mxu0 %v5730_v27  ;;  %4374 = vmatpush1.bf16.msra.mxu1 %v5732_v51  ;;  %v1007_v27 = vld [vmem:[%s6513_s30 + $0x78] sm:$0xff]  ;;  %v5262_v51 = vcombine.low %v994_v46, %v998_v17  ;;  %v1042_v17 = vld [vmem:[%s6513_s30 + $0x190] sm:$0xff] }
 0x294   : > { %4211 = vmatprep.subr.bf16.mxu0 %v5739_v28  ;;  %4375 = vmatprep.subr.bf16.mxu1 %v5741_v29  ;;  %v5264_v28 = vcombine.low %v995_v36, %v999_v8  ;;  %v5271_v29 = vcombine.high %v1002_v21, %v1006_v22  ;;  %v5273_v63 = vcombine.high %v1003_v24, %v1007_v27  ;;  %v1046_v36 = vld [vmem:[%s6513_s30 + $0x1b0] sm:$0xff]  ;;  %v1043_v8 = vld [vmem:[%s6513_s30 + $0x198] sm:$0xff] }
 0x295   : > { %v5272_v38 = vcombine.low %v1003_v24, %v1007_v27  ;;  %v1050_v21 = vld [vmem:[%s6513_s30 + $0x1d0] sm:$0xff]  ;;  %v1051_v24 = vld [vmem:[%s6513_s30 + $0x1d8] sm:$0xff] }
 0x296   : > { %v1054_v22 = vld [vmem:[%s6513_s30 + $0x1f0] sm:$0xff]  ;;  %v1055_v27 = vld [vmem:[%s6513_s30 + $0x1f8] sm:$0xff] }
 0x297   : > { %4212 = vmatpush1.bf16.msra.mxu0 %v5738_v42  ;;  %4376 = vmatpush1.bf16.msra.mxu1 %v5740_v5  ;;  %v5279_v42 = vcombine.high %v1010_v31, %v1014_v14  ;;  %v5281_v5 = vcombine.high %v1011_v32, %v1015_v33  ;;  %v1058_v31 = vld [vmem:[%s6513_s30 + $0x210] sm:$0xff]  ;;  %v1059_v32 = vld [vmem:[%s6513_s30 + $0x218] sm:$0xff] }
 0x298   : > { %4213 = vmatprep.subr.bf16.mxu0 %v5747_v55  ;;  %4377 = vmatprep.subr.bf16.mxu1 %v5749_v47  ;;  %v1022_v55 = vld [vmem:[%s6513_s30 + $0xf0] sm:$0xff]  ;;  %v1019_v47 = vld [vmem:[%s6513_s30 + $0xd8] sm:$0xff] }
 0x299   : > { %v5289_v54 = vcombine.high %v1019_v47, %v1023_v48  ;;  %v1062_v14 = vld [vmem:[%s6513_s30 + $0x230] sm:$0xff]  ;;  %v1063_v33 = vld [vmem:[%s6513_s30 + $0x238] sm:$0xff] }
 0x29b   : > { %4214 = vmatpush1.bf16.msra.mxu0 %v5746_v58  ;;  %4378 = vmatpush1.bf16.msra.mxu1 %v5748_v59  ;;  %v1026_v58 = vld [vmem:[%s6513_s30 + $0x110] sm:$0xff] }
 0x29c   : > { %4215 = vmatprep.subr.bf16.mxu0 %v5755_v1  ;;  %4379 = vmatprep.subr.bf16.mxu1 %v5757_v6  ;;  %v1030_v59 = vld [vmem:[%s6513_s30 + $0x130] sm:$0xff]  ;;  %v5286_v1 = vcombine.low %v1018_v37, %v1022_v55  ;;  %v5288_v6 = vcombine.low %v1019_v47, %v1023_v48  ;;  %v1067_v47 = vld [vmem:[%s6513_s30 + $0x258] sm:$0xff] }
 0x29d   : > { %v5295_v7 = vcombine.high %v1026_v58, %v1030_v59  ;;  %v1071_v48 = vld [vmem:[%s6513_s30 + $0x278] sm:$0xff] }
 0x29f   : > { %4216 = vmatpush1.bf16.msra.mxu0 %v5754_v12  ;;  %4380 = vmatpush1.bf16.msra.mxu1 %v5756_v2  ;;  %v1035_v12 = vld [vmem:[%s6513_s30 + $0x158] sm:$0xff] }
 0x2a0   : > { %4217 = vmatprep.subr.bf16.mxu0 %v5763_v30  ;;  %4381 = vmatprep.subr.bf16.mxu1 %v5765_v43  ;;  %v1039_v2 = vld [vmem:[%s6513_s30 + $0x178] sm:$0xff]  ;;  %v5294_v30 = vcombine.low %v1026_v58, %v1030_v59  ;;  %v5296_v43 = vcombine.low %v1027_v60, %v1031_v62  ;;  %v1074_v58 = vld [vmem:[%s6513_s30 + $0x290] sm:$0xff] }
 0x2a1   : > { %v5305_v46 = vcombine.high %v1035_v12, %v1039_v2  ;;  %v5304_v19 = vcombine.low %v1035_v12, %v1039_v2  ;;  %v1078_v59 = vld [vmem:[%s6513_s30 + $0x2b0] sm:$0xff]  ;;  %v1075_v60 = vld [vmem:[%s6513_s30 + $0x298] sm:$0xff] }
 0x2a2   : > { %v1079_v62 = vld [vmem:[%s6513_s30 + $0x2b8] sm:$0xff] }
 0x2a3   : > { %4218 = vmatpush1.bf16.msra.mxu0 %v5762_v44  ;;  %4382 = vmatpush1.bf16.msra.mxu1 %v5764_v40  ;;  %v1047_v44 = vld [vmem:[%s6513_s30 + $0x1b8] sm:$0xff]  ;;  %v5302_v40 = vcombine.low %v1034_v10, %v1038_v11  ;;  %v1082_v10 = vld [vmem:[%s6513_s30 + $0x2d0] sm:$0xff] }
 0x2a4   : > { %4392 = vmatprep.subr.bf16.mxu0 %v5263_v15  ;;  %4556 = vmatprep.subr.bf16.mxu1 %v5265_v56  ;;  %v5311_v15 = vcombine.high %v1042_v17, %v1046_v36  ;;  %v5313_v56 = vcombine.high %v1043_v8, %v1047_v44  ;;  %v1086_v11 = vld [vmem:[%s6513_s30 + $0x2f0] sm:$0xff]  ;;  %v1083_v12 = vld [vmem:[%s6513_s30 + $0x2d8] sm:$0xff] }
 0x2a5   : > { %v1087_v2 = vld [vmem:[%s6513_s30 + $0x2f8] sm:$0xff] }
 0x2a6   : > { %4220 = vmatmul.mubr.bf16.vlgmr.msra.gmra.mrb[8].mxu0 %v6989_v4  ;;  %4384 = vmatmul.mubr.bf16.vlgmr.msra.gmra.mrb[8].mxu1 %v6989_v4 }
 0x2a7   : > { %4393 = vmatpush1.bf16.msra.mxu0 %v5262_v51  ;;  %4424 = vmatprep.mubr.bf16.mxu0 %v6682_v52  ;;  %v5310_v51 = vcombine.low %v1042_v17, %v1046_v36  ;;  %v1090_v17 = vld [vmem:[%s6513_s30 + $0x310] sm:$0xff] }
 0x2a8   : > { %4557 = vmatpush1.bf16.msra.mxu1 %v5264_v28  ;;  %4588 = vmatprep.mubr.bf16.mxu1 %v6682_v52  ;;  %v5287_v52 = vcombine.high %v1018_v37, %v1022_v55  ;;  %v5312_v28 = vcombine.low %v1043_v8, %v1047_v44  ;;  %v1066_v37 = vld [vmem:[%s6513_s30 + $0x250] sm:$0xff]  ;;  %v1091_v8 = vld [vmem:[%s6513_s30 + $0x318] sm:$0xff] }
 0x2a9   : > { %4394 = vmatprep.subr.bf16.mxu0 %v5271_v29  ;;  %4558 = vmatprep.subr.bf16.mxu1 %v5273_v63  ;;  %v5319_v29 = vcombine.high %v1050_v21, %v1054_v22  ;;  %v5321_v63 = vcombine.high %v1051_v24, %v1055_v27  ;;  %v1070_v55 = vld [vmem:[%s6513_s30 + $0x270] sm:$0xff]  ;;  %v1095_v44 = vld [vmem:[%s6513_s30 + $0x338] sm:$0xff] }
 0x2aa   : > { %v1094_v36 = vld [vmem:[%s6513_s30 + $0x330] sm:$0xff] }
 0x2ab   : > { %4395 = vmatpush1.bf16.msra.mxu0 %v5270_v34  ;;  %v5318_v34 = vcombine.low %v1050_v21, %v1054_v22  ;;  %v1098_v21 = vld [vmem:[%s6513_s30 + $0x350] sm:$0xff] }
 0x2ac   : > { %4559 = vmatpush1.bf16.msra.mxu1 %v5272_v38  ;;  %4396 = vmatprep.subr.bf16.mxu0 %v5279_v42  ;;  %v5320_v38 = vcombine.low %v1051_v24, %v1055_v27  ;;  %v5327_v42 = vcombine.high %v1058_v31, %v1062_v14  ;;  %v1102_v22 = vld [vmem:[%s6513_s30 + $0x370] sm:$0xff]  ;;  %v1099_v24 = vld [vmem:[%s6513_s30 + $0x358] sm:$0xff] }
 0x2ad   : > { %4560 = vmatprep.subr.bf16.mxu1 %v5281_v5  ;;  %v5329_v5 = vcombine.high %v1059_v32, %v1063_v33  ;;  %v1103_v27 = vld [vmem:[%s6513_s30 + $0x378] sm:$0xff] }
 0x2af   : > { %4397 = vmatpush1.bf16.msra.mxu0 %v5278_v49  ;;  %v5326_v49 = vcombine.low %v1058_v31, %v1062_v14  ;;  %v1106_v31 = vld [vmem:[%s6513_s30 + $0x390] sm:$0xff] }
 0x2b0   : > { %4561 = vmatpush1.bf16.msra.mxu1 %v5280_v50  ;;  %4398 = vmatprep.subr.bf16.mxu0 %v5287_v52  ;;  %v5328_v50 = vcombine.low %v1059_v32, %v1063_v33  ;;  %v5335_v52 = vcombine.high %v1066_v37, %v1070_v55  ;;  %v1110_v14 = vld [vmem:[%s6513_s30 + $0x3b0] sm:$0xff]  ;;  %v1107_v32 = vld [vmem:[%s6513_s30 + $0x398] sm:$0xff] }
 0x2b1   : > { %4562 = vmatprep.subr.bf16.mxu1 %v5289_v54  ;;  %v5337_v54 = vcombine.high %v1067_v47, %v1071_v48  ;;  %v1111_v33 = vld [vmem:[%s6513_s30 + $0x3b8] sm:$0xff] }
 0x2b3   : > { %4399 = vmatpush1.bf16.msra.mxu0 %v5286_v1  ;;  %v5334_v1 = vcombine.low %v1066_v37, %v1070_v55  ;;  %v1114_v37 = vld [vmem:[%s6513_s30 + $0x3d0] sm:$0xff] }
 0x2b4   : > { %4563 = vmatpush1.bf16.msra.mxu1 %v5288_v6  ;;  %4400 = vmatprep.subr.bf16.mxu0 %v5295_v7  ;;  %v5336_v6 = vcombine.low %v1067_v47, %v1071_v48  ;;  %v5343_v7 = vcombine.high %v1074_v58, %v1078_v59  ;;  %v1118_v55 = vld [vmem:[%s6513_s30 + $0x3f0] sm:$0xff]  ;;  %v1115_v47 = vld [vmem:[%s6513_s30 + $0x3d8] sm:$0xff] }
 0x2b5   : > { %4564 = vmatprep.subr.bf16.mxu1 %v5297_v9  ;;  %v5345_v9 = vcombine.high %v1075_v60, %v1079_v62  ;;  %v1119_v48 = vld [vmem:[%s6513_s30 + $0x3f8] sm:$0xff] }
 0x2b7   : > { %4401 = vmatpush1.bf16.msra.mxu0 %v5294_v30  ;;  %v5342_v30 = vcombine.low %v1074_v58, %v1078_v59  ;;  %v1122_v58 = vld [vmem:[%s6513_s30 + $0x410] sm:$0xff] }
 0x2b8   : > { %4565 = vmatpush1.bf16.msra.mxu1 %v5296_v43  ;;  %4402 = vmatprep.subr.bf16.mxu0 %v5303_v16  ;;  %v5344_v43 = vcombine.low %v1075_v60, %v1079_v62  ;;  %v5351_v16 = vcombine.high %v1082_v10, %v1086_v11  ;;  %v1126_v59 = vld [vmem:[%s6513_s30 + $0x430] sm:$0xff]  ;;  %v1123_v60 = vld [vmem:[%s6513_s30 + $0x418] sm:$0xff] }
 0x2b9   : > { %4566 = vmatprep.subr.bf16.mxu1 %v5305_v46  ;;  %v5353_v46 = vcombine.high %v1083_v12, %v1087_v2  ;;  %v1127_v62 = vld [vmem:[%s6513_s30 + $0x438] sm:$0xff] }
 0x2bb   : > { %4403 = vmatpush1.bf16.msra.mxu0 %v5302_v40  ;;  %v5350_v40 = vcombine.low %v1082_v10, %v1086_v11  ;;  %v1130_v10 = vld [vmem:[%s6513_s30 + $0x450] sm:$0xff] }
 0x2bc   : > { %4567 = vmatpush1.bf16.msra.mxu1 %v5304_v19  ;;  %4404 = vmatprep.subr.bf16.mxu0 %v5311_v15  ;;  %v5352_v19 = vcombine.low %v1083_v12, %v1087_v2  ;;  %v5359_v15 = vcombine.high %v1090_v17, %v1094_v36  ;;  %v1134_v11 = vld [vmem:[%s6513_s30 + $0x470] sm:$0xff]  ;;  %v5390_v12 = vcombine.low %v1122_v58, %v1126_v59  ;;  %v1131_v2 = vld [vmem:[%s6513_s30 + $0x458] sm:$0xff] }
 0x2bd   : > { %4568 = vmatprep.subr.bf16.mxu1 %v5313_v56  ;;  %v5361_v56 = vcombine.high %v1091_v8, %v1095_v44 }
 0x2bf   : > { %4405 = vmatpush1.bf16.msra.mxu0 %v5310_v51  ;;  %v5358_v51 = vcombine.low %v1090_v17, %v1094_v36  ;;  %v1142_v17 = vld [vmem:[%s6513_s30 + $0x4b0] sm:$0xff] }
 0x2c0   : > { %4569 = vmatpush1.bf16.msra.mxu1 %v5312_v28  ;;  %4406 = vmatprep.subr.bf16.mxu0 %v5319_v29  ;;  %v5360_v28 = vcombine.low %v1091_v8, %v1095_v44  ;;  %v5367_v29 = vcombine.high %v1098_v21, %v1102_v22  ;;  %v1139_v8 = vld [vmem:[%s6513_s30 + $0x498] sm:$0xff] }
 0x2c1   : > { %4570 = vmatprep.subr.bf16.mxu1 %v5321_v63  ;;  %v5369_v63 = vcombine.high %v1099_v24, %v1103_v27  ;;  %v1143_v44 = vld [vmem:[%s6513_s30 + $0x4b8] sm:$0xff] }
 0x2c3   : > { %4407 = vmatpush1.bf16.msra.mxu0 %v5318_v34  ;;  %v5366_v34 = vcombine.low %v1098_v21, %v1102_v22  ;;  %v1146_v21 = vld [vmem:[%s6513_s30 + $0x4d0] sm:$0xff] }
 0x2c4   : > { %4571 = vmatpush1.bf16.msra.mxu1 %v5320_v38  ;;  %4408 = vmatprep.subr.bf16.mxu0 %v5327_v42  ;;  %v5368_v38 = vcombine.low %v1099_v24, %v1103_v27  ;;  %v5375_v42 = vcombine.high %v1106_v31, %v1110_v14  ;;  %v1150_v22 = vld [vmem:[%s6513_s30 + $0x4f0] sm:$0xff]  ;;  %v1147_v24 = vld [vmem:[%s6513_s30 + $0x4d8] sm:$0xff] }
 0x2c5   : > { %4572 = vmatprep.subr.bf16.mxu1 %v5329_v5  ;;  %v5377_v5 = vcombine.high %v1107_v32, %v1111_v33 }
 0x2c7   : > { %4409 = vmatpush1.bf16.msra.mxu0 %v5326_v49  ;;  %v5374_v49 = vcombine.low %v1106_v31, %v1110_v14  ;;  %v1155_v31 = vld [vmem:[%s6513_s30 + $0x518] sm:$0xff] }
 0x2c8   : > { %4573 = vmatpush1.bf16.msra.mxu1 %v5328_v50  ;;  %4410 = vmatprep.subr.bf16.mxu0 %v5335_v52  ;;  %v5376_v50 = vcombine.low %v1107_v32, %v1111_v33  ;;  %v5383_v52 = vcombine.high %v1114_v37, %v1118_v55  ;;  %v1159_v14 = vld [vmem:[%s6513_s30 + $0x538] sm:$0xff]  ;;  %v5414_v32 = vcombine.low %v1146_v21, %v1150_v22 }
 0x2c9   : > { %4574 = vmatprep.subr.bf16.mxu1 %v5337_v54  ;;  %v5385_v54 = vcombine.high %v1115_v47, %v1119_v48 }
 0x2cb   : > { %4411 = vmatpush1.bf16.msra.mxu0 %v5334_v1  ;;  %v5382_v1 = vcombine.low %v1114_v37, %v1118_v55  ;;  %v1163_v37 = vld [vmem:[%s6513_s30 + $0x558] sm:$0xff] }
 0x2cc   : > { %4575 = vmatpush1.bf16.msra.mxu1 %v5336_v6  ;;  %4412 = vmatprep.subr.bf16.mxu0 %v5343_v7  ;;  %v5384_v6 = vcombine.low %v1115_v47, %v1119_v48  ;;  %v5391_v7 = vcombine.high %v1122_v58, %v1126_v59  ;;  %v1167_v55 = vld [vmem:[%s6513_s30 + $0x578] sm:$0xff]  ;;  %v5424_v48 = vcombine.low %v1155_v31, %v1159_v14 }
 0x2cd   : > { %4576 = vmatprep.subr.bf16.mxu1 %v5345_v9  ;;  %v5393_v9 = vcombine.high %v1123_v60, %v1127_v62  ;;  %v1171_v58 = vld [vmem:[%s6513_s30 + $0x598] sm:$0xff] }
 0x2ce   : > { %v1175_v59 = vld [vmem:[%s6513_s30 + $0x5b8] sm:$0xff] }
 0x2cf   : > { %4413 = vmatpush1.bf16.msra.mxu0 %v5342_v30  ;;  %v1135_v30 = vld [vmem:[%s6513_s30 + $0x478] sm:$0xff] }
 0x2d0   : > { %4577 = vmatpush1.bf16.msra.mxu1 %v5344_v43  ;;  %4414 = vmatprep.subr.bf16.mxu0 %v5351_v16  ;;  %v5392_v43 = vcombine.low %v1123_v60, %v1127_v62  ;;  %v5399_v16 = vcombine.high %v1130_v10, %v1134_v11  ;;  %v5401_v36 = vcombine.high %v1131_v2, %v1135_v30 }
 0x2d1   : > { %4578 = vmatprep.subr.bf16.mxu1 %v5353_v46  ;;  %v1138_v46 = vld [vmem:[%s6513_s30 + $0x490] sm:$0xff]  ;;  %v5432_v62 = vcombine.low %v1163_v37, %v1167_v55 }
 0x2d2   : > { %v5406_v27 = vcombine.low %v1138_v46, %v1142_v17 }
 0x2d3   : > { %4415 = vmatpush1.bf16.msra.mxu0 %v5350_v40  ;;  %v5398_v40 = vcombine.low %v1130_v10, %v1134_v11  ;;  %v1179_v10 = vld [vmem:[%s6513_s30 + $0x5d8] sm:$0xff] }
 0x2d4   : > { %4579 = vmatpush1.bf16.msra.mxu1 %v5352_v19  ;;  %4416 = vmatprep.subr.bf16.mxu0 %v5359_v15  ;;  %v5400_v19 = vcombine.low %v1131_v2, %v1135_v30  ;;  %v5407_v15 = vcombine.high %v1138_v46, %v1142_v17  ;;  %v1183_v11 = vld [vmem:[%s6513_s30 + $0x5f8] sm:$0xff]  ;;  %v5440_v2 = vcombine.low %v1171_v58, %v1175_v59  ;;  %v1190_v46 = vld [vmem:[%s6513_s30 + $0x630] sm:$0xff] }
 0x2d5   : > { %4580 = vmatprep.subr.bf16.mxu1 %v5361_v56  ;;  %v5409_v56 = vcombine.high %v1139_v8, %v1143_v44  ;;  %v1187_v17 = vld [vmem:[%s6513_s30 + $0x618] sm:$0xff] }
 0x2d7   : > { %4417 = vmatpush1.bf16.msra.mxu0 %v5358_v51  ;;  %v5408_v51 = vcombine.low %v1139_v8, %v1143_v44  ;;  %v5448_v44 = vcombine.low %v1179_v10, %v1183_v11 }
 0x2d8   : > { %4581 = vmatpush1.bf16.msra.mxu1 %v5360_v28  ;;  %4418 = vmatprep.subr.bf16.mxu0 %v5367_v29  ;;  %v5415_v28 = vcombine.high %v1146_v21, %v1150_v22  ;;  %v1154_v29 = vld [vmem:[%s6513_s30 + $0x510] sm:$0xff]  ;;  %v1195_v21 = vld [vmem:[%s6513_s30 + $0x658] sm:$0xff] }
 0x2d9   : > { %4582 = vmatprep.subr.bf16.mxu1 %v5369_v63  ;;  %v1158_v63 = vld [vmem:[%s6513_s30 + $0x530] sm:$0xff]  ;;  %v1199_v22 = vld [vmem:[%s6513_s30 + $0x678] sm:$0xff] }
 0x2da   : > { %v5422_v47 = vcombine.low %v1154_v29, %v1158_v63 }
 0x2db   : > { %4419 = vmatpush1.bf16.msra.mxu0 %v5366_v34  ;;  %v5423_v34 = vcombine.high %v1154_v29, %v1158_v63  ;;  %v1203_v29 = vld [vmem:[%s6513_s30 + $0x698] sm:$0xff] }
 0x2dc   : > { %4583 = vmatpush1.bf16.msra.mxu1 %v5368_v38  ;;  %4420 = vmatprep.subr.bf16.mxu0 %v5375_v42  ;;  %v5425_v38 = vcombine.high %v1155_v31, %v1159_v14  ;;  %v1162_v42 = vld [vmem:[%s6513_s30 + $0x550] sm:$0xff]  ;;  %v1207_v63 = vld [vmem:[%s6513_s30 + $0x6b8] sm:$0xff]  ;;  %v5464_v14 = vcombine.low %v1195_v21, %v1199_v22 }
 0x2dd   : > { %4584 = vmatprep.subr.bf16.mxu1 %v5377_v5  ;;  %v1166_v5 = vld [vmem:[%s6513_s30 + $0x570] sm:$0xff] }
 0x2de   : > { %v5430_v60 = vcombine.low %v1162_v42, %v1166_v5 }
 0x2df   : > { %4421 = vmatpush1.bf16.msra.mxu0 %v5374_v49  ;;  %v5431_v49 = vcombine.high %v1162_v42, %v1166_v5  ;;  %v1211_v42 = vld [vmem:[%s6513_s30 + $0x6d8] sm:$0xff] }
 0x2e0   : > { %4585 = vmatpush1.bf16.msra.mxu1 %v5376_v50  ;;  %4422 = vmatprep.subr.bf16.mxu0 %v5383_v52  ;;  %v5433_v50 = vcombine.high %v1163_v37, %v1167_v55  ;;  %v1170_v52 = vld [vmem:[%s6513_s30 + $0x590] sm:$0xff]  ;;  %v1215_v5 = vld [vmem:[%s6513_s30 + $0x6f8] sm:$0xff]  ;;  %v5472_v55 = vcombine.low %v1203_v29, %v1207_v63 }
 0x2e1   : > { %4586 = vmatprep.subr.bf16.mxu1 %v5385_v54  ;;  %v1174_v54 = vld [vmem:[%s6513_s30 + $0x5b0] sm:$0xff] }
 0x2e3   : > { %4423 = vmatpush1.bf16.msra.mxu0 %v5382_v1  ;;  %v5439_v1 = vcombine.high %v1170_v52, %v1174_v54 }
 0x2e4   : > { %4587 = vmatpush1.bf16.msra.mxu1 %v5384_v6  ;;  %4433 = vmatprep.subr.bf16.mxu0 %v5391_v7  ;;  %v5441_v6 = vcombine.high %v1171_v58, %v1175_v59  ;;  %v1178_v7 = vld [vmem:[%s6513_s30 + $0x5d0] sm:$0xff]  ;;  %v5480_v59 = vcombine.low %v1211_v42, %v1215_v5 }
 0x2e5   : > { %4597 = vmatprep.subr.bf16.mxu1 %v5393_v9  ;;  %v1182_v9 = vld [vmem:[%s6513_s30 + $0x5f0] sm:$0xff] }
 0x2e6   : > { %4425 = vmatmul.mubr.bf16.vlgmr.msra.gmra.mrb[12].mxu0 %v6684_v53  ;;  %v5447_v30 = vcombine.high %v1178_v7, %v1182_v9  ;;  %v5446_v8 = vcombine.low %v1178_v7, %v1182_v9  ;;  %v1227_v7 = vld [vmem:[%s6513_s30 + $0x758] sm:$0xff] }
 0x2e7   : > { %4589 = vmatmul.mubr.bf16.vlgmr.msra.gmra.mrb[12].mxu1 %v6684_v53  ;;  %4434 = vmatpush1.bf16.msra.mxu0 %v5390_v12  ;;  %v1151_v53 = vld [vmem:[%s6513_s30 + $0x4f8] sm:$0xff]  ;;  %v5438_v12 = vcombine.low %v1170_v52, %v1174_v54 }
 0x2e8   : > { %4465 = vmatprep.mubr.bf16.mxu0 %v6704_v41  ;;  %4598 = vmatpush1.bf16.msra.mxu1 %v5392_v43  ;;  %v5416_v33 = vcombine.low %v1147_v24, %v1151_v53  ;;  %v5449_v43 = vcombine.high %v1179_v10, %v1183_v11  ;;  %v1219_v52 = vld [vmem:[%s6513_s30 + $0x718] sm:$0xff] }
 0x2e9   : > { %4629 = vmatprep.mubr.bf16.mxu1 %v6704_v41  ;;  %4435 = vmatprep.subr.bf16.mxu0 %v5399_v16  ;;  %v5417_v41 = vcombine.high %v1147_v24, %v1151_v53  ;;  %v1186_v16 = vld [vmem:[%s6513_s30 + $0x610] sm:$0xff]  ;;  %v1223_v54 = vld [vmem:[%s6513_s30 + $0x738] sm:$0xff] }
 0x2ea   : > { %4599 = vmatprep.subr.bf16.mxu1 %v5401_v36  ;;  %v1191_v36 = vld [vmem:[%s6513_s30 + $0x638] sm:$0xff]  ;;  %v5454_v24 = vcombine.low %v1186_v16, %v1190_v46  ;;  %v5488_v11 = vcombine.low %v1219_v52, %v1223_v54 }
 0x2eb   : > { %4436 = vmatpush1.bf16.msra.mxu0 %v5398_v40  ;;  %v5455_v40 = vcombine.high %v1186_v16, %v1190_v46  ;;  %v5456_v53 = vcombine.low %v1187_v17, %v1191_v36  ;;  %v1231_v9 = vld [vmem:[%s6513_s30 + $0x778] sm:$0xff] }
 0x2ec   : > { %4600 = vmatpush1.bf16.msra.mxu1 %v5400_v19  ;;  %4437 = vmatprep.subr.bf16.mxu0 %v5407_v15  ;;  %v5457_v19 = vcombine.high %v1187_v17, %v1191_v36  ;;  %v1194_v15 = vld [vmem:[%s6513_s30 + $0x650] sm:$0xff]  ;;  %v1235_v16 = vld [vmem:[%s6513_s30 + $0x798] sm:$0xff]  ;;  %v5496_v36 = vcombine.low %v1227_v7, %v1231_v9 }
 0x2ed   : > { %4601 = vmatprep.subr.bf16.mxu1 %v5409_v56  ;;  %v1198_v56 = vld [vmem:[%s6513_s30 + $0x670] sm:$0xff]  ;;  %v1239_v46 = vld [vmem:[%s6513_s30 + $0x7b8] sm:$0xff] }
 0x2ee   : > { %v5462_v31 = vcombine.low %v1194_v15, %v1198_v56 }
 0x2ef   : > { %4438 = vmatpush1.bf16.msra.mxu0 %v5406_v27  ;;  %v5463_v27 = vcombine.high %v1194_v15, %v1198_v56  ;;  %v1243_v15 = vld [vmem:[%s6513_s30 + $0x7d8] sm:$0xff] }
 0x2f0   : > { %4602 = vmatpush1.bf16.msra.mxu1 %v5408_v51  ;;  %4439 = vmatprep.subr.bf16.mxu0 %v5415_v28  ;;  %v5465_v51 = vcombine.high %v1195_v21, %v1199_v22  ;;  %v1202_v28 = vld [vmem:[%s6513_s30 + $0x690] sm:$0xff]  ;;  %v1247_v56 = vld [vmem:[%s6513_s30 + $0x7f8] sm:$0xff]  ;;  %v5504_v22 = vcombine.low %v1235_v16, %v1239_v46 }
 0x2f1   : > { %4603 = vmatprep.subr.bf16.mxu1 %v5417_v41  ;;  %v1206_v41 = vld [vmem:[%s6513_s30 + $0x6b0] sm:$0xff] }
 0x2f2   : > { %v5470_v37 = vcombine.low %v1202_v28, %v1206_v41 }
 0x2f3   : > { %4440 = vmatpush1.bf16.msra.mxu0 %v5414_v32  ;;  %v5471_v32 = vcombine.high %v1202_v28, %v1206_v41  ;;  %v1251_v28 = vld [vmem:[%s6513_s30 + $0x818] sm:$0xff] }
 0x2f4   : > { %4604 = vmatpush1.bf16.msra.mxu1 %v5416_v33  ;;  %4441 = vmatprep.subr.bf16.mxu0 %v5423_v34  ;;  %v5473_v33 = vcombine.high %v1203_v29, %v1207_v63  ;;  %v1210_v34 = vld [vmem:[%s6513_s30 + $0x6d0] sm:$0xff]  ;;  %v1255_v41 = vld [vmem:[%s6513_s30 + $0x838] sm:$0xff]  ;;  %v5512_v63 = vcombine.low %v1243_v15, %v1247_v56 }
 0x2f5   : > { %4605 = vmatprep.subr.bf16.mxu1 %v5425_v38  ;;  %v1214_v38 = vld [vmem:[%s6513_s30 + $0x6f0] sm:$0xff] }
 0x2f6   : > { %v5478_v58 = vcombine.low %v1210_v34, %v1214_v38 }
 0x2f7   : > { %4442 = vmatpush1.bf16.msra.mxu0 %v5422_v47  ;;  %v5479_v47 = vcombine.high %v1210_v34, %v1214_v38  ;;  %v1259_v38 = vld [vmem:[%s6513_s30 + $0x858] sm:$0xff] }
 0x2f8   : > { %4606 = vmatpush1.bf16.msra.mxu1 %v5424_v48  ;;  %4443 = vmatprep.subr.bf16.mxu0 %v5431_v49  ;;  %v5481_v48 = vcombine.high %v1211_v42, %v1215_v5  ;;  %v1218_v49 = vld [vmem:[%s6513_s30 + $0x710] sm:$0xff]  ;;  %v1263_v42 = vld [vmem:[%s6513_s30 + $0x878] sm:$0xff]  ;;  %v5520_v5 = vcombine.low %v1251_v28, %v1255_v41 }
 0x2f9   : > { %4607 = vmatprep.subr.bf16.mxu1 %v5433_v50  ;;  %v1222_v50 = vld [vmem:[%s6513_s30 + $0x730] sm:$0xff] }
 0x2fa   : > { %v5486_v10 = vcombine.low %v1218_v49, %v1222_v50 }
 0x2fb   : > { %4444 = vmatpush1.bf16.msra.mxu0 %v5430_v60  ;;  %v5487_v60 = vcombine.high %v1218_v49, %v1222_v50  ;;  %v1267_v49 = vld [vmem:[%s6513_s30 + $0x898] sm:$0xff] }
 0x2fc   : > { %4608 = vmatpush1.bf16.msra.mxu1 %v5432_v62  ;;  %4445 = vmatprep.subr.bf16.mxu0 %v5439_v1  ;;  %v5489_v62 = vcombine.high %v1219_v52, %v1223_v54  ;;  %v1226_v1 = vld [vmem:[%s6513_s30 + $0x750] sm:$0xff]  ;;  %v1271_v50 = vld [vmem:[%s6513_s30 + $0x8b8] sm:$0xff]  ;;  %v5528_v54 = vcombine.low %v1259_v38, %v1263_v42 }
 0x2fd   : > { %4609 = vmatprep.subr.bf16.mxu1 %v5441_v6  ;;  %v1230_v6 = vld [vmem:[%s6513_s30 + $0x770] sm:$0xff] }
 0x2fe   : > { %v5494_v17 = vcombine.low %v1226_v1, %v1230_v6 }
 0x2ff   : > { %4446 = vmatpush1.bf16.msra.mxu0 %v5438_v12  ;;  %v5495_v12 = vcombine.high %v1226_v1, %v1230_v6  ;;  %v1275_v1 = vld [vmem:[%s6513_s30 + $0x8d8] sm:$0xff] }
 0x300   : > { %4610 = vmatpush1.bf16.msra.mxu1 %v5440_v2  ;;  %4447 = vmatprep.subr.bf16.mxu0 %v5447_v30  ;;  %v5497_v2 = vcombine.high %v1227_v7, %v1231_v9  ;;  %v1234_v30 = vld [vmem:[%s6513_s30 + $0x790] sm:$0xff]  ;;  %v5536_v7 = vcombine.low %v1267_v49, %v1271_v50 }
 0x301   : > { %4611 = vmatprep.subr.bf16.mxu1 %v5449_v43  ;;  %v1238_v43 = vld [vmem:[%s6513_s30 + $0x7b0] sm:$0xff] }
 0x302   : > { %v5502_v21 = vcombine.low %v1234_v30, %v1238_v43 }
 0x303   : > { %4448 = vmatpush1.bf16.msra.mxu0 %v5446_v8  ;;  %v5503_v8 = vcombine.high %v1234_v30, %v1238_v43 }
 0x304   : > { %4612 = vmatpush1.bf16.msra.mxu1 %v5448_v44  ;;  %4449 = vmatprep.subr.bf16.mxu0 %v5455_v40  ;;  %v5505_v44 = vcombine.high %v1235_v16, %v1239_v46  ;;  %v1242_v40 = vld [vmem:[%s6513_s30 + $0x7d0] sm:$0xff] }
 0x305   : > { %4613 = vmatprep.subr.bf16.mxu1 %v5457_v19  ;;  %v1246_v19 = vld [vmem:[%s6513_s30 + $0x7f0] sm:$0xff] }
 0x306   : > { %v5510_v29 = vcombine.low %v1242_v40, %v1246_v19 }
 0x307   : > { %4450 = vmatpush1.bf16.msra.mxu0 %v5454_v24  ;;  %v5511_v24 = vcombine.high %v1242_v40, %v1246_v19 }
 0x308   : > { %4614 = vmatpush1.bf16.msra.mxu1 %v5456_v53  ;;  %4451 = vmatprep.subr.bf16.mxu0 %v5463_v27  ;;  %v5513_v53 = vcombine.high %v1243_v15, %v1247_v56  ;;  %v1250_v27 = vld [vmem:[%s6513_s30 + $0x810] sm:$0xff] }
 0x309   : > { %4615 = vmatprep.subr.bf16.mxu1 %v5465_v51  ;;  %v1254_v51 = vld [vmem:[%s6513_s30 + $0x830] sm:$0xff] }
 0x30a   : > { %v5518_v34 = vcombine.low %v1250_v27, %v1254_v51 }
 0x30b   : > { %4452 = vmatpush1.bf16.msra.mxu0 %v5462_v31  ;;  %v5519_v31 = vcombine.high %v1250_v27, %v1254_v51 }
 0x30c   : > { %4616 = vmatpush1.bf16.msra.mxu1 %v5464_v14  ;;  %4453 = vmatprep.subr.bf16.mxu0 %v5471_v32  ;;  %v5521_v14 = vcombine.high %v1251_v28, %v1255_v41  ;;  %v1258_v32 = vld [vmem:[%s6513_s30 + $0x850] sm:$0xff] }
 0x30d   : > { %4617 = vmatprep.subr.bf16.mxu1 %v5473_v33  ;;  %v1262_v33 = vld [vmem:[%s6513_s30 + $0x870] sm:$0xff] }
 0x30e   : > { %v5526_v52 = vcombine.low %v1258_v32, %v1262_v33 }
 0x30f   : > { %4454 = vmatpush1.bf16.msra.mxu0 %v5470_v37  ;;  %v5527_v37 = vcombine.high %v1258_v32, %v1262_v33 }
 0x310   : > { %4618 = vmatpush1.bf16.msra.mxu1 %v5472_v55  ;;  %4455 = vmatprep.subr.bf16.mxu0 %v5479_v47  ;;  %v1266_v55 = vld [vmem:[%s6513_s30 + $0x890] sm:$0xff] }
 0x311   : > { %4619 = vmatprep.subr.bf16.mxu1 %v5481_v48  ;;  %v1270_v47 = vld [vmem:[%s6513_s30 + $0x8b0] sm:$0xff]  ;;  %v5529_v48 = vcombine.high %v1259_v38, %v1263_v42 }
 0x312   : > { %v5534_v6 = vcombine.low %v1266_v55, %v1270_v47  ;;  %v1314_v42 = vld [vmem:[%s6513_s30 + $0xa10] sm:$0xff] }
 0x313   : > { %4456 = vmatpush1.bf16.msra.mxu0 %v5478_v58  ;;  %v5535_v58 = vcombine.high %v1266_v55, %v1270_v47  ;;  %v1319_v55 = vld [vmem:[%s6513_s30 + $0xa38] sm:$0xff] }
 0x314   : > { %4620 = vmatpush1.bf16.msra.mxu1 %v5480_v59  ;;  %4457 = vmatprep.subr.bf16.mxu0 %v5487_v60  ;;  %v5537_v59 = vcombine.high %v1267_v49, %v1271_v50  ;;  %v1274_v60 = vld [vmem:[%s6513_s30 + $0x8d0] sm:$0xff] }
 0x315   : > { %4621 = vmatprep.subr.bf16.mxu1 %v5489_v62  ;;  %v1278_v62 = vld [vmem:[%s6513_s30 + $0x8f0] sm:$0xff] }
 0x316   : > { %v5543_v9 = vcombine.high %v1274_v60, %v1278_v62  ;;  %v5542_v30 = vcombine.low %v1274_v60, %v1278_v62 }
 0x317   : > { %4458 = vmatpush1.bf16.msra.mxu0 %v5486_v10  ;;  %v1282_v10 = vld [vmem:[%s6513_s30 + $0x910] sm:$0xff] }
 0x318   : > { %4622 = vmatpush1.bf16.msra.mxu1 %v5488_v11  ;;  %4459 = vmatprep.subr.bf16.mxu0 %v5495_v12  ;;  %v1286_v11 = vld [vmem:[%s6513_s30 + $0x930] sm:$0xff]  ;;  %v1283_v12 = vld [vmem:[%s6513_s30 + $0x918] sm:$0xff] }
 0x319   : > { %4623 = vmatprep.subr.bf16.mxu1 %v5497_v2  ;;  %v1287_v2 = vld [vmem:[%s6513_s30 + $0x938] sm:$0xff]  ;;  %v5551_v16 = vcombine.high %v1282_v10, %v1286_v11  ;;  %v5550_v40 = vcombine.low %v1282_v10, %v1286_v11 }
 0x31a   : > { %v5553_v46 = vcombine.high %v1283_v12, %v1287_v2  ;;  %v5552_v19 = vcombine.low %v1283_v12, %v1287_v2 }
 0x31b   : > { %4460 = vmatpush1.bf16.msra.mxu0 %v5494_v17  ;;  %v1290_v17 = vld [vmem:[%s6513_s30 + $0x950] sm:$0xff] }
 0x31c   : > { %4624 = vmatpush1.bf16.msra.mxu1 %v5496_v36  ;;  %4461 = vmatprep.subr.bf16.mxu0 %v5503_v8  ;;  %v1294_v36 = vld [vmem:[%s6513_s30 + $0x970] sm:$0xff]  ;;  %v1291_v8 = vld [vmem:[%s6513_s30 + $0x958] sm:$0xff] }
 0x31d   : > { %4625 = vmatprep.subr.bf16.mxu1 %v5505_v44  ;;  %v1295_v44 = vld [vmem:[%s6513_s30 + $0x978] sm:$0xff]  ;;  %v5559_v15 = vcombine.high %v1290_v17, %v1294_v36  ;;  %v5558_v27 = vcombine.low %v1290_v17, %v1294_v36 }
 0x31e   : > { %v5561_v56 = vcombine.high %v1291_v8, %v1295_v44  ;;  %v5560_v51 = vcombine.low %v1291_v8, %v1295_v44 }
 0x31f   : > { %4462 = vmatpush1.bf16.msra.mxu0 %v5502_v21  ;;  %v1298_v21 = vld [vmem:[%s6513_s30 + $0x990] sm:$0xff] }
 0x320   : > { %4626 = vmatpush1.bf16.msra.mxu1 %v5504_v22  ;;  %4463 = vmatprep.subr.bf16.mxu0 %v5511_v24  ;;  %v1302_v22 = vld [vmem:[%s6513_s30 + $0x9b0] sm:$0xff]  ;;  %v1299_v24 = vld [vmem:[%s6513_s30 + $0x998] sm:$0xff] }
 0x321   : > { %4627 = vmatprep.subr.bf16.mxu1 %v5513_v53  ;;  %v1303_v53 = vld [vmem:[%s6513_s30 + $0x9b8] sm:$0xff]  ;;  %v5567_v28 = vcombine.high %v1298_v21, %v1302_v22  ;;  %v5566_v32 = vcombine.low %v1298_v21, %v1302_v22 }
 0x322   : > { %v5569_v41 = vcombine.high %v1299_v24, %v1303_v53  ;;  %v5568_v33 = vcombine.low %v1299_v24, %v1303_v53 }
 0x323   : > { %4464 = vmatpush1.bf16.msra.mxu0 %v5510_v29  ;;  %v1306_v29 = vld [vmem:[%s6513_s30 + $0x9d0] sm:$0xff] }
 0x324   : > { %4628 = vmatpush1.bf16.msra.mxu1 %v5512_v63  ;;  %4474 = vmatprep.subr.bf16.mxu0 %v5519_v31  ;;  %v1310_v63 = vld [vmem:[%s6513_s30 + $0x9f0] sm:$0xff]  ;;  %v1307_v31 = vld [vmem:[%s6513_s30 + $0x9d8] sm:$0xff] }
 0x325   : > { %4638 = vmatprep.subr.bf16.mxu1 %v5521_v14  ;;  %v1311_v14 = vld [vmem:[%s6513_s30 + $0x9f8] sm:$0xff]  ;;  %v5574_v47 = vcombine.low %v1306_v29, %v1310_v63 }
 0x326   : > { %4466 = vmatmul.mubr.bf16.vlgmr.msra.gmra.mrb[12].mxu0 %v6800_v13  ;;  %v5577_v38 = vcombine.high %v1307_v31, %v1311_v14 }
 0x327   : > { %4630 = vmatmul.mubr.bf16.vlgmr.msra.gmra.mrb[12].mxu1 %v6800_v13  ;;  %4475 = vmatpush1.bf16.msra.mxu0 %v5518_v34  ;;  %v1279_v13 = vld [vmem:[%s6513_s30 + $0x8f8] sm:$0xff]  ;;  %v5575_v34 = vcombine.high %v1306_v29, %v1310_v63 }
 0x328   : > { %4506 = vmatprep.mubr.bf16.mxu0 %v6806_v45  ;;  %4639 = vmatpush1.bf16.msra.mxu1 %v5520_v5  ;;  %v5544_v43 = vcombine.low %v1275_v1, %v1279_v13  ;;  %v1318_v5 = vld [vmem:[%s6513_s30 + $0xa30] sm:$0xff] }
 0x329   : > { %4670 = vmatprep.mubr.bf16.mxu1 %v6806_v45  ;;  %4476 = vmatprep.subr.bf16.mxu0 %v5527_v37  ;;  %v5545_v45 = vcombine.high %v1275_v1, %v1279_v13  ;;  %v1315_v37 = vld [vmem:[%s6513_s30 + $0xa18] sm:$0xff]  ;;  %v5583_v49 = vcombine.high %v1314_v42, %v1318_v5  ;;  %v5582_v60 = vcombine.low %v1314_v42, %v1318_v5 }
 0x32a   : > { %4640 = vmatprep.subr.bf16.mxu1 %v5529_v48  ;;  %v5576_v48 = vcombine.low %v1307_v31, %v1311_v14  ;;  %v5585_v50 = vcombine.high %v1315_v37, %v1319_v55  ;;  %v5584_v62 = vcombine.low %v1315_v37, %v1319_v55 }
 0x32b   : > { %4477 = vmatpush1.bf16.msra.mxu0 %v5526_v52  ;;  %v1322_v52 = vld [vmem:[%s6513_s30 + $0xa50] sm:$0xff] }
 0x32c   : > { %4641 = vmatpush1.bf16.msra.mxu1 %v5528_v54  ;;  %4478 = vmatprep.subr.bf16.mxu0 %v5535_v58  ;;  %v1326_v54 = vld [vmem:[%s6513_s30 + $0xa70] sm:$0xff]  ;;  %v1323_v58 = vld [vmem:[%s6513_s30 + $0xa58] sm:$0xff] }
 0x32d   : > { %4642 = vmatprep.subr.bf16.mxu1 %v5537_v59  ;;  %v1327_v59 = vld [vmem:[%s6513_s30 + $0xa78] sm:$0xff]  ;;  %v5591_v1 = vcombine.high %v1322_v52, %v1326_v54  ;;  %v5590_v10 = vcombine.low %v1322_v52, %v1326_v54 }
 0x32e   : > { %v5593_v13 = vcombine.high %v1323_v58, %v1327_v59  ;;  %v5592_v11 = vcombine.low %v1323_v58, %v1327_v59 }
 0x32f   : > { %4479 = vmatpush1.bf16.msra.mxu0 %v5534_v6  ;;  %v1330_v6 = vld [vmem:[%s6513_s30 + $0xa90] sm:$0xff] }
 0x330   : > { %4643 = vmatpush1.bf16.msra.mxu1 %v5536_v7  ;;  %4480 = vmatprep.subr.bf16.mxu0 %v5543_v9  ;;  %v1334_v7 = vld [vmem:[%s6513_s30 + $0xab0] sm:$0xff]  ;;  %v1331_v9 = vld [vmem:[%s6513_s30 + $0xa98] sm:$0xff] }
 0x331   : > { %4644 = vmatprep.subr.bf16.mxu1 %v5545_v45  ;;  %v1335_v45 = vld [vmem:[%s6513_s30 + $0xab8] sm:$0xff]  ;;  %v5599_v12 = vcombine.high %v1330_v6, %v1334_v7  ;;  %v5598_v17 = vcombine.low %v1330_v6, %v1334_v7 }
 0x332   : > { %v5601_v2 = vcombine.high %v1331_v9, %v1335_v45  ;;  %v5600_v36 = vcombine.low %v1331_v9, %v1335_v45 }
 0x333   : > { %4481 = vmatpush1.bf16.msra.mxu0 %v5542_v30  ;;  %v1338_v30 = vld [vmem:[%s6513_s30 + $0xad0] sm:$0xff] }
 0x334   : > { %4645 = vmatpush1.bf16.msra.mxu1 %v5544_v43  ;;  %4482 = vmatprep.subr.bf16.mxu0 %v5551_v16  ;;  %v1342_v43 = vld [vmem:[%s6513_s30 + $0xaf0] sm:$0xff]  ;;  %v1339_v16 = vld [vmem:[%s6513_s30 + $0xad8] sm:$0xff] }
 0x335   : > { %4646 = vmatprep.subr.bf16.mxu1 %v5553_v46  ;;  %v1343_v46 = vld [vmem:[%s6513_s30 + $0xaf8] sm:$0xff]  ;;  %v5607_v8 = vcombine.high %v1338_v30, %v1342_v43  ;;  %v5606_v21 = vcombine.low %v1338_v30, %v1342_v43 }
 0x336   : > { %v5609_v44 = vcombine.high %v1339_v16, %v1343_v46  ;;  %v5608_v22 = vcombine.low %v1339_v16, %v1343_v46  ;;  %v1391_v30 = vld [vmem:[%s6513_s30 + $0xc78] sm:$0xff]  ;;  %v1394_v46 = vld [vmem:[%s6513_s30 + $0xc90] sm:$0xff] }
 0x337   : > { %4483 = vmatpush1.bf16.msra.mxu0 %v5550_v40  ;;  %v1346_v40 = vld [vmem:[%s6513_s30 + $0xb10] sm:$0xff] }
 0x338   : > { %4647 = vmatpush1.bf16.msra.mxu1 %v5552_v19  ;;  %4484 = vmatprep.subr.bf16.mxu0 %v5559_v15  ;;  %v1350_v19 = vld [vmem:[%s6513_s30 + $0xb30] sm:$0xff]  ;;  %v1347_v15 = vld [vmem:[%s6513_s30 + $0xb18] sm:$0xff] }
 0x339   : > { %4648 = vmatprep.subr.bf16.mxu1 %v5561_v56  ;;  %v1351_v56 = vld [vmem:[%s6513_s30 + $0xb38] sm:$0xff]  ;;  %v5615_v24 = vcombine.high %v1346_v40, %v1350_v19  ;;  %v5614_v29 = vcombine.low %v1346_v40, %v1350_v19 }
 0x33a   : > { %v5617_v53 = vcombine.high %v1347_v15, %v1351_v56  ;;  %v5616_v63 = vcombine.low %v1347_v15, %v1351_v56 }
 0x33b   : > { %4485 = vmatpush1.bf16.msra.mxu0 %v5558_v27  ;;  %v1354_v27 = vld [vmem:[%s6513_s30 + $0xb50] sm:$0xff] }
 0x33c   : > { %4649 = vmatpush1.bf16.msra.mxu1 %v5560_v51  ;;  %4486 = vmatprep.subr.bf16.mxu0 %v5567_v28  ;;  %v1358_v51 = vld [vmem:[%s6513_s30 + $0xb70] sm:$0xff]  ;;  %v1355_v28 = vld [vmem:[%s6513_s30 + $0xb58] sm:$0xff] }
 0x33d   : > { %4650 = vmatprep.subr.bf16.mxu1 %v5569_v41  ;;  %v1359_v41 = vld [vmem:[%s6513_s30 + $0xb78] sm:$0xff]  ;;  %v5623_v31 = vcombine.high %v1354_v27, %v1358_v51  ;;  %v5622_v42 = vcombine.low %v1354_v27, %v1358_v51 }
 0x33e   : > { %v5625_v14 = vcombine.high %v1355_v28, %v1359_v41  ;;  %v5624_v5 = vcombine.low %v1355_v28, %v1359_v41  ;;  %v1410_v28 = vld [vmem:[%s6513_s30 + $0xd10] sm:$0xff] }
 0x33f   : > { %4487 = vmatpush1.bf16.msra.mxu0 %v5566_v32  ;;  %v1362_v32 = vld [vmem:[%s6513_s30 + $0xb90] sm:$0xff] }
 0x340   : > { %4651 = vmatpush1.bf16.msra.mxu1 %v5568_v33  ;;  %4488 = vmatprep.subr.bf16.mxu0 %v5575_v34  ;;  %v1366_v33 = vld [vmem:[%s6513_s30 + $0xbb0] sm:$0xff]  ;;  %v1363_v34 = vld [vmem:[%s6513_s30 + $0xb98] sm:$0xff] }
 0x341   : > { %4652 = vmatprep.subr.bf16.mxu1 %v5577_v38  ;;  %v1367_v38 = vld [vmem:[%s6513_s30 + $0xbb8] sm:$0xff]  ;;  %v5631_v37 = vcombine.high %v1362_v32, %v1366_v33  ;;  %v5630_v52 = vcombine.low %v1362_v32, %v1366_v33  ;;  %v1414_v41 = vld [vmem:[%s6513_s30 + $0xd30] sm:$0xff] }
 0x342   : > { %v5633_v55 = vcombine.high %v1363_v34, %v1367_v38  ;;  %v5632_v54 = vcombine.low %v1363_v34, %v1367_v38  ;;  %v5679_v33 = vcombine.high %v1410_v28, %v1414_v41  ;;  %v7215_v34 = vld [vmem:[%s6513_s30 + $0xd70] sm:$0xff]  ;;  %v7218_v38 = vld [vmem:[%s6513_s30 + $0xd58] sm:$0xff] }
 0x343   : > { %4489 = vmatpush1.bf16.msra.mxu0 %v5574_v47  ;;  %v1370_v47 = vld [vmem:[%s6513_s30 + $0xbd0] sm:$0xff] }
 0x344   : > { %4653 = vmatpush1.bf16.msra.mxu1 %v5576_v48  ;;  %4490 = vmatprep.subr.bf16.mxu0 %v5583_v49  ;;  %v1374_v48 = vld [vmem:[%s6513_s30 + $0xbf0] sm:$0xff]  ;;  %v1371_v49 = vld [vmem:[%s6513_s30 + $0xbd8] sm:$0xff] }
 0x345   : > { %4654 = vmatprep.subr.bf16.mxu1 %v5585_v50  ;;  %v1375_v50 = vld [vmem:[%s6513_s30 + $0xbf8] sm:$0xff]  ;;  %v5639_v58 = vcombine.high %v1370_v47, %v1374_v48  ;;  %v5638_v6 = vcombine.low %v1370_v47, %v1374_v48 }
 0x346   : > { %v5641_v59 = vcombine.high %v1371_v49, %v1375_v50  ;;  %v5640_v7 = vcombine.low %v1371_v49, %v1375_v50  ;;  %v7230_v47 = vld [vmem:[%s6513_s30 + $0xd98] sm:$0xff]  ;;  %v7236_v49 = vld [vmem:[%s6513_s30 + $0xdd0] sm:$0xff] }
 0x347   : > { %4491 = vmatpush1.bf16.msra.mxu0 %v5582_v60  ;;  %v1378_v60 = vld [vmem:[%s6513_s30 + $0xc10] sm:$0xff]  ;;  %v7233_v48 = vld [vmem:[%s6513_s30 + $0xdb8] sm:$0xff] }
 0x348   : > { %4655 = vmatpush1.bf16.msra.mxu1 %v5584_v62  ;;  %4492 = vmatprep.subr.bf16.mxu0 %v5591_v1  ;;  %v1382_v62 = vld [vmem:[%s6513_s30 + $0xc30] sm:$0xff]  ;;  %v1379_v1 = vld [vmem:[%s6513_s30 + $0xc18] sm:$0xff] }
 0x349   : > { %4656 = vmatprep.subr.bf16.mxu1 %v5593_v13  ;;  %v1383_v13 = vld [vmem:[%s6513_s30 + $0xc38] sm:$0xff]  ;;  %v5647_v9 = vcombine.high %v1378_v60, %v1382_v62  ;;  %v7239_v50 = vld [vmem:[%s6513_s30 + $0xdf0] sm:$0xff] }
 0x34a   : > { %v5649_v45 = vcombine.high %v1379_v1, %v1383_v13  ;;  %v5648_v43 = vcombine.low %v1379_v1, %v1383_v13  ;;  %v7255_v13 = vld [vmem:[%s6513_s30 + $0xe30] sm:$0xff] }
 0x34b   : > { %4493 = vmatpush1.bf16.msra.mxu0 %v5590_v10  ;;  %v1386_v10 = vld [vmem:[%s6513_s30 + $0xc50] sm:$0xff] }
 0x34c   : > { %4657 = vmatpush1.bf16.msra.mxu1 %v5592_v11  ;;  %4494 = vmatprep.subr.bf16.mxu0 %v5599_v12  ;;  %v1390_v11 = vld [vmem:[%s6513_s30 + $0xc70] sm:$0xff]  ;;  %v5646_v12 = vcombine.low %v1378_v60, %v1382_v62 }
 0x34d   : > { %4658 = vmatprep.subr.bf16.mxu1 %v5601_v2  ;;  %v1387_v2 = vld [vmem:[%s6513_s30 + $0xc58] sm:$0xff]  ;;  %v5655_v16 = vcombine.high %v1386_v10, %v1390_v11  ;;  %v5654_v40 = vcombine.low %v1386_v10, %v1390_v11 }
 0x34e   : > { %v5656_v19 = vcombine.low %v1387_v2, %v1391_v30 }
 0x34f   : > { %4495 = vmatpush1.bf16.msra.mxu0 %v5598_v17  ;;  %v1398_v17 = vld [vmem:[%s6513_s30 + $0xcb0] sm:$0xff] }
 0x350   : > { %4659 = vmatpush1.bf16.msra.mxu1 %v5600_v36  ;;  %4496 = vmatprep.subr.bf16.mxu0 %v5607_v8  ;;  %v5657_v36 = vcombine.high %v1387_v2, %v1391_v30  ;;  %v1395_v8 = vld [vmem:[%s6513_s30 + $0xc98] sm:$0xff]  ;;  %v5663_v15 = vcombine.high %v1394_v46, %v1398_v17  ;;  %v7275_v2 = vld [vmem:[%s6513_s30 + $0xe70] sm:$0xff] }
 0x351   : > { %4660 = vmatprep.subr.bf16.mxu1 %v5609_v44  ;;  %v1399_v44 = vld [vmem:[%s6513_s30 + $0xcb8] sm:$0xff] }
 0x352   : > { %v5665_v56 = vcombine.high %v1395_v8, %v1399_v44  ;;  %v5664_v27 = vcombine.low %v1395_v8, %v1399_v44  ;;  %v7278_v30 = vld [vmem:[%s6513_s30 + $0xe58] sm:$0xff]  ;;  %v7292_v8 = vld [vmem:[%s6513_s30 + $0xe90] sm:$0xff] }
 0x353   : > { %4497 = vmatpush1.bf16.msra.mxu0 %v5606_v21  ;;  %v1402_v21 = vld [vmem:[%s6513_s30 + $0xcd0] sm:$0xff] }
 0x354   : > { %4661 = vmatpush1.bf16.msra.mxu1 %v5608_v22  ;;  %4498 = vmatprep.subr.bf16.mxu0 %v5615_v24  ;;  %v1406_v22 = vld [vmem:[%s6513_s30 + $0xcf0] sm:$0xff]  ;;  %v1403_v24 = vld [vmem:[%s6513_s30 + $0xcd8] sm:$0xff] }
 0x355   : > { %4662 = vmatprep.subr.bf16.mxu1 %v5617_v53  ;;  %v5662_v53 = vcombine.low %v1394_v46, %v1398_v17  ;;  %v5702_v46 = vcombine.low %v7236_v49, %v7239_v50  ;;  %v5703_v17 = vcombine.high %v7236_v49, %v7239_v50  ;;  %v7295_v44 = vld [vmem:[%s6513_s30 + $0xeb0] sm:$0xff] }
 0x357   : > { %4499 = vmatpush1.bf16.msra.mxu0 %v5614_v29  ;;  %v1411_v29 = vld [vmem:[%s6513_s30 + $0xd18] sm:$0xff] }
 0x358   : > { %4663 = vmatpush1.bf16.msra.mxu1 %v5616_v63  ;;  %4500 = vmatprep.subr.bf16.mxu0 %v5623_v31  ;;  %v1415_v63 = vld [vmem:[%s6513_s30 + $0xd38] sm:$0xff]  ;;  %v5670_v31 = vcombine.low %v1402_v21, %v1406_v22 }
 0x359   : > { %4664 = vmatprep.subr.bf16.mxu1 %v5625_v14  ;;  %v7212_v14 = vld [vmem:[%s6513_s30 + $0xd50] sm:$0xff]  ;;  %v5680_v60 = vcombine.low %v1411_v29, %v1415_v63 }
 0x35a   : > { %v5686_v62 = vcombine.low %v7212_v14, %v7215_v34  ;;  %v5687_v1 = vcombine.high %v7212_v14, %v7215_v34 }
 0x35b   : > { %4501 = vmatpush1.bf16.msra.mxu0 %v5622_v42  ;;  %v7221_v42 = vld [vmem:[%s6513_s30 + $0xd78] sm:$0xff] }
 0x35c   : > { %4665 = vmatpush1.bf16.msra.mxu1 %v5624_v5  ;;  %4502 = vmatprep.subr.bf16.mxu0 %v5631_v37  ;;  %v5681_v5 = vcombine.high %v1411_v29, %v1415_v63  ;;  %v7224_v37 = vld [vmem:[%s6513_s30 + $0xd90] sm:$0xff] }
 0x35d   : > { %4666 = vmatprep.subr.bf16.mxu1 %v5633_v55  ;;  %v7227_v55 = vld [vmem:[%s6513_s30 + $0xdb0] sm:$0xff] }
 0x35e   : > { %v5694_v10 = vcombine.low %v7224_v37, %v7227_v55  ;;  %v5695_v11 = vcombine.high %v7224_v37, %v7227_v55 }
 0x35f   : > { %4503 = vmatpush1.bf16.msra.mxu0 %v5630_v52  ;;  %v5678_v52 = vcombine.low %v1410_v28, %v1414_v41 }
 0x360   : > { %4667 = vmatpush1.bf16.msra.mxu1 %v5632_v54  ;;  %4504 = vmatprep.subr.bf16.mxu0 %v5639_v58  ;;  %v7242_v54 = vld [vmem:[%s6513_s30 + $0xdd8] sm:$0xff] }
 0x361   : > { %4668 = vmatprep.subr.bf16.mxu1 %v5641_v59  ;;  %v7245_v58 = vld [vmem:[%s6513_s30 + $0xdf8] sm:$0xff]  ;;  %v7248_v59 = vld [vmem:[%s6513_s30 + $0xe10] sm:$0xff] }
 0x363   : > { %4505 = vmatpush1.bf16.msra.mxu0 %v5638_v6  ;;  %v7258_v6 = vld [vmem:[%s6513_s30 + $0xe18] sm:$0xff] }
 0x364   : > { %4669 = vmatpush1.bf16.msra.mxu1 %v5640_v7  ;;  %4515 = vmatprep.subr.bf16.mxu0 %v5647_v9  ;;  %v7261_v7 = vld [vmem:[%s6513_s30 + $0xe38] sm:$0xff]  ;;  %v5688_v9 = vcombine.low %v7218_v38, %v7221_v42 }
 0x365   : > { %4679 = vmatprep.subr.bf16.mxu1 %v5649_v45  ;;  %v5689_v45 = vcombine.high %v7218_v38, %v7221_v42  ;;  %v7594_v49 = vcombine.high %v7258_v6, %v7261_v7 }
 0x366   : > { %4507 = vmatmul.mubr.bf16.vlgmr.msra.gmra.mrb[12].mxu0 %v6905_v39 }
 0x367   : > { %4671 = vmatmul.mubr.bf16.vlgmr.msra.gmra.mrb[12].mxu1 %v6905_v39  ;;  %4516 = vmatpush1.bf16.msra.mxu0 %v5646_v12  ;;  %v1407_v39 = vld [vmem:[%s6513_s30 + $0xcf8] sm:$0xff]  ;;  %v7272_v12 = vld [vmem:[%s6513_s30 + $0xe50] sm:$0xff] }
 0x368   : > { %4547 = vmatprep.mubr.bf16.mxu0 %v6911_v23  ;;  %4680 = vmatpush1.bf16.msra.mxu1 %v5648_v43  ;;  %v5673_v51 = vcombine.high %v1403_v24, %v1407_v39  ;;  %v5672_v32 = vcombine.low %v1403_v24, %v1407_v39  ;;  %v5696_v43 = vcombine.low %v7230_v47, %v7233_v48 }
 0x369   : > { %4711 = vmatprep.mubr.bf16.mxu1 %v6911_v23  ;;  %4517 = vmatprep.subr.bf16.mxu0 %v5655_v16  ;;  %v5671_v23 = vcombine.high %v1402_v21, %v1406_v22  ;;  %v5697_v16 = vcombine.high %v7230_v47, %v7233_v48 }
 0x36a   : > { %4681 = vmatprep.subr.bf16.mxu1 %v5657_v36  ;;  %v7289_v36 = vld [vmem:[%s6513_s30 + $0xe78] sm:$0xff] }
 0x36b   : > { %4518 = vmatpush1.bf16.msra.mxu0 %v5654_v40 }
 0x36c   : > { %4682 = vmatpush1.bf16.msra.mxu1 %v5656_v19  ;;  %4519 = vmatprep.subr.bf16.mxu0 %v5663_v15  ;;  %v5705_v19 = vcombine.high %v7242_v54, %v7245_v58 }
 0x36d   : > { %4683 = vmatprep.subr.bf16.mxu1 %v5665_v56 }
 0x36f   : > { %4520 = vmatpush1.bf16.msra.mxu0 %v5662_v53 }
 0x370   : > { %4684 = vmatpush1.bf16.msra.mxu1 %v5664_v27  ;;  %4521 = vmatprep.subr.bf16.mxu0 %v5671_v23 }
 0x371   : > { %4685 = vmatprep.subr.bf16.mxu1 %v5673_v51 }
 0x373   : > { %4522 = vmatpush1.bf16.msra.mxu0 %v5670_v31 }
 0x374   : > { %4686 = vmatpush1.bf16.msra.mxu1 %v5672_v32  ;;  %4523 = vmatprep.subr.bf16.mxu0 %v5679_v33 }
 0x375   : > { %4687 = vmatprep.subr.bf16.mxu1 %v5681_v5 }
 0x377   : > { %4524 = vmatpush1.bf16.msra.mxu0 %v5678_v52 }
 0x378   : > { %4688 = vmatpush1.bf16.msra.mxu1 %v5680_v60  ;;  %4525 = vmatprep.subr.bf16.mxu0 %v5687_v1 }
 0x379   : > { %v7311_v39 = vpop.f32.mrb[8].mxu0  ;;  %v7313_v53 = vpop.f32.mrb[8].mxu1  ;;  %4689 = vmatprep.subr.bf16.mxu1 %v5689_v45 }
 0x37a   : > { %v4720_v41 = vsel %vm690_vm1, %v7311_v39, 0.0  ;;  %v4784_v29 = vmul.f32 %v7311_v39, %v7311_v39  ;;  %v4734_v63 = vsel %vm690_vm1, %v7313_v53, 0.0  ;;  %v4786_v31 = vmul.f32 %v7313_v53, %v7313_v53  ;;  %v7331_v14 = vpop.f32.mrb[9].mxu0  ;;  %v7333_v32 = vpop.f32.mrb[9].mxu1 }
 0x37b   : > { %v4721_v33 = vrot.slane %v4720_v41, 4  ;;  %v4735_v34 = vrot.slane %v4734_v63, 4  ;;  %v4727_v38 = vsel %vm690_vm1, %v7331_v14, 0.0  ;;  %v4785_v42 = vmul.f32 %v7331_v14, %v7331_v14  ;;  %v4225_v5 = vpop.f32.mrb[10].mxu0  ;;  %v4389_v52 = vpop.f32.mrb[10].mxu1  ;;  %4526 = vmatpush1.bf16.msra.mxu0 %v5686_v62 }
 0x37c   : > { %v4792_v60 = vsel %vm690_vm1, %v4784_v29, 0.0  ;;  %v4806_v1 = vsel %vm690_vm1, %v4786_v31, 0.0  ;;  %v4728_v45 = vrot.slane %v4727_v38, 4  ;;  %v4741_v28 = vsel %vm690_vm1, %v7333_v32, 0.0  ;;  %4690 = vmatpush1.bf16.msra.mxu1 %v5688_v9  ;;  %v4226_v23 = vpop.f32.mrb[11].mxu0  ;;  %v4390_v27 = vpop.f32.mrb[11].mxu1  ;;  %4527 = vmatprep.subr.bf16.mxu0 %v5695_v11 }
 0x37d   : > { %v4722_v51 = vadd.f32 %v4721_v33, %v4720_v41  ;;  %v4793_v24 = vrot.slane %v4792_v60, 4  ;;  %v4736_v21 = vadd.f32 %v4735_v34, %v4734_v63  ;;  %v4807_v15 = vrot.slane %v4806_v1, 4  ;;  %4691 = vmatprep.subr.bf16.mxu1 %v5697_v16 }
 0x37e   : > { %v4729_v5 = vadd.f32 %v4728_v45, %v4727_v38  ;;  %v4799_v62 = vsel %vm690_vm1, %v4785_v42, 0.0  ;;  %v4742_v52 = vrot.slane %v4741_v28, 4  ;;  %v4787_v29 = vmul.f32 %v7333_v32, %v7333_v32  ;;  %v1463_v45 = vld [vmem:[%s6513_s30 + $0xeb8] sm:$0xff] }
 0x37f   : > { %v4723_v31 = vrot.slane %v4722_v51, 2  ;;  %v4794_v22 = vadd.f32 %v4793_v24, %v4792_v60  ;;  %v4737_v56 = vrot.slane %v4736_v21, 2  ;;  %v4808_v40 = vadd.f32 %v4807_v15, %v4806_v1  ;;  %4528 = vmatpush1.bf16.msra.mxu0 %v5694_v10  ;;  %v1459_v1 = vld [vmem:[%s6513_s30 + $0xe98] sm:$0xff] }
 0x380   : > { %v4730_v9 = vrot.slane %v4729_v5, 2  ;;  %v4800_v11 = vrot.slane %v4799_v62, 4  ;;  %v4743_v27 = vadd.f32 %v4742_v52, %v4741_v28  ;;  %v4813_v16 = vsel %vm690_vm1, %v4787_v29, 0.0  ;;  %4692 = vmatpush1.bf16.msra.mxu1 %v5696_v43  ;;  %4529 = vmatprep.subr.bf16.mxu0 %v5703_v17 }
 0x381   : > { %v4724_v23 = vadd.f32 %v4723_v31, %v4722_v51  ;;  %v4795_v41 = vrot.slane %v4794_v22, 2  ;;  %v4738_v63 = vadd.f32 %v4737_v56, %v4736_v21  ;;  %v4809_v24 = vrot.slane %v4808_v40, 2  ;;  %4693 = vmatprep.subr.bf16.mxu1 %v5705_v19 }
 0x382   : > { %v4731_v15 = vadd.f32 %v4730_v9, %v4729_v5  ;;  %v4801_v33 = vadd.f32 %v4800_v11, %v4799_v62  ;;  %v4744_v34 = vrot.slane %v4743_v27, 2  ;;  %v4814_v37 = vrot.slane %v4813_v16, 4 }
 0x383   : > { %v4725_v55 = vrot.slane %v4724_v23, 1  ;;  %v4796_v10 = vadd.f32 %v4795_v41, %v4794_v22  ;;  %v4739_v38 = vrot.slane %v4738_v63, 1  ;;  %v4810_v28 = vadd.f32 %v4809_v24, %v4808_v40  ;;  %4530 = vmatpush1.bf16.msra.mxu0 %v5702_v46  ;;  %v1466_v24 = vld [vmem:[%s6513_s30 + $0xed0] sm:$0xff] }
 0x384   : > { %v4732_v47 = vrot.slane %v4731_v15, 1  ;;  %v4802_v48 = vrot.slane %v4801_v33, 2  ;;  %v4745_v43 = vadd.f32 %v4744_v34, %v4743_v27  ;;  %v4815_v17 = vadd.f32 %v4814_v37, %v4813_v16  ;;  %v1467_v34 = vld [vmem:[%s6513_s30 + $0xed8] sm:$0xff] }
 0x385   : > { %v7592_v19 = vcombine.low %v7242_v54, %v7245_v58  ;;  %v7593_v56 = vcombine.high %v7248_v59, %v7255_v13  ;;  %v4726_v21 = vadd.f32 %v4725_v55, %v4724_v23  ;;  %v4797_v40 = vrot.slane %v4796_v10, 1  ;;  %v1471_v37 = vld [vmem:[%s6513_s30 + $0xef8] sm:$0xff] }
 0x386   : > { %v4740_v22 = vadd.f32 %v4739_v38, %v4738_v63  ;;  %v4811_v51 = vrot.slane %v4810_v28, 1  ;;  %v4733_v50 = vadd.f32 %v4732_v47, %v4731_v15  ;;  %v4803_v46 = vadd.f32 %v4802_v48, %v4801_v33  ;;  %v1470_v15 = vld [vmem:[%s6513_s30 + $0xef0] sm:$0xff] }
 0x387   : > { %4694 = vmatpush1.bf16.msra.mxu1 %v7592_v19  ;;  %4531 = vmatprep.subr.bf16.mxu0 %v7593_v56  ;;  %v4746_v42 = vrot.slane %v4745_v43, 1  ;;  %v4816_v60 = vrot.slane %v4815_v17, 2  ;;  %v7367_v54 = vmul.f32 0.25, %v4726_v21  ;;  %v4798_v58 = vadd.f32 %v4797_v40, %v4796_v10 }
 0x388   : > { %4695 = vmatprep.subr.bf16.mxu1 %v7594_v49  ;;  %v7369_v5 = vmul.f32 0.25, %v4740_v22  ;;  %v4812_v62 = vadd.f32 %v4811_v51, %v4810_v28  ;;  %v7595_v52 = vcombine.low %v7248_v59, %v7255_v13  ;;  %v7374_v29 = vmul.f32 0.25, %v4733_v50  ;;  %v1474_v51 = vld [vmem:[%s6513_s30 + $0xf10] sm:$0xff]  ;;  %v1475_v50 = vld [vmem:[%s6513_s30 + $0xf18] sm:$0xff] }
 0x389   : > { %v4804_v31 = vrot.slane %v4803_v46, 1  ;;  %v4747_v9 = vadd.f32 %v4746_v42, %v4745_v43  ;;  %v4817_v11 = vadd.f32 %v4816_v60, %v4815_v17  ;;  %v7596_v27 = vcombine.low %v7258_v6, %v7261_v7  ;;  %v1478_v49 = vld [vmem:[%s6513_s30 + $0xf30] sm:$0xff] }
 0x38a   : > { %4532 = vmatpush1.bf16.msra.mxu0 %v7595_v52  ;;  %v7597_v16 = vcombine.high %v7272_v12, %v7275_v2  ;;  %v4848_v23 = vmul.f32 0.25, %v4798_v58  ;;  %v4856_v59 = vmul.f32 %v7367_v54, %v7367_v54  ;;  %v4850_v13 = vmul.f32 0.25, %v4812_v62  ;;  %v1482_v62 = vld [vmem:[%s6513_s30 + $0xf50] sm:$0xff] }
 0x38b   : > { %4696 = vmatpush1.bf16.msra.mxu1 %v7596_v27  ;;  %v7598_v41 = vcombine.high %v7278_v30, %v7289_v36  ;;  %v5729_v63 = vcombine.high %v1459_v1, %v1463_v45  ;;  %v4858_v6 = vmul.f32 %v7369_v5, %v7369_v5  ;;  %v4805_v7 = vadd.f32 %v4804_v31, %v4803_v46  ;;  %v1486_v52 = vld [vmem:[%s6513_s30 + $0xf70] sm:$0xff]  ;;  %v1483_v31 = vld [vmem:[%s6513_s30 + $0xf58] sm:$0xff] }
 0x38c   : > { %4533 = vmatprep.subr.bf16.mxu0 %v7597_v16  ;;  %v4857_v33 = vmul.f32 %v7374_v29, %v7374_v29  ;;  %v4864_v55 = vsub.f32 %v4848_v23, %v4856_v59  ;;  %v7395_v10 = vmul.f32 0.25, %v4747_v9  ;;  %v4818_v38 = vrot.slane %v4817_v11, 1  ;;  %v1487_v9 = vld [vmem:[%s6513_s30 + $0xf78] sm:$0xff]  ;;  %v7423_v16 = vld [vmem:[%s364_s17] sm:$0xff] }
 0x38d   : > { %4697 = vmatprep.subr.bf16.mxu1 %v7598_v41  ;;  %v7599_v28 = vcombine.low %v7272_v12, %v7275_v2  ;;  %v5726_v47 = vcombine.low %v7292_v8, %v7295_v44  ;;  %v4866_v48 = vsub.f32 %v4850_v13, %v4858_v6  ;;  %v4849_v43 = vmul.f32 0.25, %v4805_v7  ;;  %v1490_v41 = vld [vmem:[%s6513_s30 + $0xf90] sm:$0xff] }
 0x38e   : > { %v7600_v17 = vcombine.low %v7278_v30, %v7289_v36  ;;  %v7601_v19 = vcombine.high %v7292_v8, %v7295_v44  ;;  %v5728_v56 = vcombine.low %v1459_v1, %v1463_v45  ;;  %v5735_v21 = vcombine.high %v1466_v24, %v1470_v15  ;;  %v1479_v8 = vld [vmem:[%s6513_s30 + $0xf38] sm:$0xff] }
 0x38f   : > { %4534 = vmatpush1.bf16.msra.mxu0 %v7599_v28  ;;  %v4880_v12 = vadd.f32 1e-05, %v4864_v55  ;;  %v4819_v2 = vadd.f32 %v4818_v38, %v4817_v11  ;;  %v4859_v40 = vmul.f32 %v7395_v10, %v7395_v10  ;;  %v5737_v22 = vcombine.high %v1467_v34, %v1471_v37  ;;  %v7432_v7 = vld [vmem:[%s373_s22] sm:$0xff] }
 0x390   : > { %4698 = vmatpush1.bf16.msra.mxu1 %v7600_v17  ;;  %4535 = vmatprep.subr.bf16.mxu0 %v7601_v19  ;;  %v4882_v30 = vadd.f32 1e-05, %v4866_v48  ;;  %v4865_v36 = vsub.f32 %v4849_v43, %v4857_v33  ;;  %v5734_v46 = vcombine.low %v1466_v24, %v1470_v15  ;;  %v5736_v60 = vcombine.low %v1467_v34, %v1471_v37  ;;  %v1491_v24 = vld [vmem:[%s6513_s30 + $0xf98] sm:$0xff]  ;;  %v1498_v43 = vld [vmem:[%s6513_s30 + $0xfd0] sm:$0xff] }
 0x391   : > { %4699 = vmatprep.subr.bf16.mxu1 %v5729_v63  ;;  %5938 = vrsqrt.f32 %v4880_v12  ;;  %v4851_v44 = vmul.f32 0.25, %v4819_v2  ;;  %v5743_v1 = vcombine.high %v1474_v51, %v1478_v49  ;;  %v5745_v58 = vcombine.high %v1475_v50, %v1479_v8  ;;  %v1494_v63 = vld [vmem:[%s6513_s30 + $0xfb0] sm:$0xff]  ;;  %v1495_v15 = vld [vmem:[%s6513_s30 + $0xfb8] sm:$0xff] }
 0x392   : > { %5940 = vrsqrt.f32 %v4882_v30  ;;  %v4881_v42 = vadd.f32 1e-05, %v4865_v36  ;;  %v5742_v27 = vcombine.low %v1474_v51, %v1478_v49  ;;  %v5744_v23 = vcombine.low %v1475_v50, %v1479_v8  ;;  %v1502_v17 = vld [vmem:[%s6513_s30 + $0xff0] sm:$0xff]  ;;  %v1503_v12 = vld [vmem:[%s6513_s30 + $0xff8] sm:$0xff] }
 0x393   : > { %4536 = vmatpush1.bf16.msra.mxu0 %v5726_v47  ;;  %v4867_v45 = vsub.f32 %v4851_v44, %v4859_v40  ;;  %v5751_v59 = vcombine.high %v1482_v62, %v1486_v52  ;;  %v5753_v13 = vcombine.high %v1483_v31, %v1487_v9  ;;  %v4909_v6 = vrot.slane %v7423_v16, %v6637_v61 }
 0x394   : > { %4700 = vmatpush1.bf16.msra.mxu1 %v5728_v56  ;;  %4537 = vmatprep.subr.bf16.mxu0 %v5735_v21  ;;  %5942 = vrsqrt.f32 %v4881_v42  ;;  %v5750_v33 = vcombine.low %v1482_v62, %v1486_v52  ;;  %v4872_v34 = vsub.f32 %v7311_v39, %v7367_v54  ;;  %v5752_v37 = vcombine.low %v1483_v31, %v1487_v9  ;;  %v1499_v21 = vld [vmem:[%s6513_s30 + $0xfd8] sm:$0xff] }
 0x395   : > { %4701 = vmatprep.subr.bf16.mxu1 %v5737_v22  ;;  %v4883_v11 = vadd.f32 1e-05, %v4867_v45  ;;  %v5759_v55 = vcombine.high %v1490_v41, %v1494_v63  ;;  %v4874_v28 = vsub.f32 %v7313_v53, %v7369_v5  ;;  %v4917_v47 = vrot.slane %v7423_v16, %v6753_v18 }
 0x396   : > { %v5761_v48 = vcombine.high %v1491_v24, %v1495_v15  ;;  %v4959_v39 = vrot.slane %v7432_v7, %v6637_v61  ;;  %v4913_v54 = vrot.slane %v7423_v16, %v6642_v0  ;;  %v4967_v53 = vrot.slane %v7432_v7, %v6753_v18 }
 0x397   : > { %4538 = vmatpush1.bf16.msra.mxu0 %v5734_v46  ;;  %5944 = vrsqrt.f32 %v4883_v11  ;;  %v4873_v5 = vsub.f32 %v7331_v14, %v7374_v29  ;;  %v5758_v40 = vcombine.low %v1490_v41, %v1494_v63  ;;  %v6217_v49 = vmov 1983009808  }
 0x398   : > { %4702 = vmatpush1.bf16.msra.mxu1 %v5736_v60  ;;  %4539 = vmatprep.subr.bf16.mxu0 %v5743_v1  ;;  %v5031_v30 = vunpack.c.l.s4 %v6217_v49  ;;  %v5760_v61 = vcombine.low %v1491_v24, %v1495_v15  ;;  %v5767_v36 = vcombine.high %v1498_v43, %v1502_v17  ;;  %v4963_v44 = vrot.slane %v7432_v7, %v6642_v0 }
 0x399   : > { %4703 = vmatprep.subr.bf16.mxu1 %v5745_v58  ;;  %v5769_v18 = vcombine.high %v1499_v21, %v1503_v12  ;;  %v4875_v14 = vsub.f32 %v7333_v32, %v7395_v10  ;;  %v4921_v29 = vrot.slane %v7423_v16, %v6665_v20  ;;  %v4971_v1 = vrot.slane %v7432_v7, %v6665_v20 }
 0x39a   : > { %v5766_v45 = vcombine.low %v1498_v43, %v1502_v17  ;;  %v5032_v62 = vunpack.c.0.s8 %v5031_v30  ;;  %v5768_v52 = vcombine.low %v1499_v21, %v1503_v12 }
 0x39b   : > { %4540 = vmatpush1.bf16.msra.mxu0 %v5742_v27  ;;  %v5939_v38 = vpop.eup %5938 }
 0x39c   : > { %4704 = vmatpush1.bf16.msra.mxu1 %v5744_v23  ;;  %4541 = vmatprep.subr.bf16.mxu0 %v5751_v59  ;;  %v5941_v19 = vpop.eup %5940  ;;  %v4896_v56 = vmul.f32 %v5939_v38, %v4872_v34  ;;  %v7462_v27 = vsub.s32 %v5032_v62, %v6634_v57 }
 0x39d   : > { %4705 = vmatprep.subr.bf16.mxu1 %v5753_v13  ;;  %v4898_v2 = vmul.f32 %v5941_v19, %v4874_v28 }
 0x39e   : > { %v5943_v22 = vpop.eup %5942  ;;  %v4946_v51 = vmul.f32 %v4909_v6, %v4896_v56 }
 0x39f   : > { %4542 = vmatpush1.bf16.msra.mxu0 %v5750_v33  ;;  %v4948_v50 = vmul.f32 %v4917_v47, %v4898_v2  ;;  %v4897_v8 = vmul.f32 %v5943_v22, %v4873_v5 }
 0x3a0   : > { %4706 = vmatpush1.bf16.msra.mxu1 %v5752_v37  ;;  %4543 = vmatprep.subr.bf16.mxu0 %v5759_v55  ;;  %v4996_v46 = vadd.f32 %v4959_v39, %v4946_v51 }
 0x3a1   : > { %4707 = vmatprep.subr.bf16.mxu1 %v5761_v48  ;;  %v5945_v42 = vpop.eup %5944  ;;  %v4947_v60 = vmul.f32 %v4913_v54, %v4897_v8  ;;  %v4998_v58 = vadd.f32 %v4967_v53, %v4948_v50 }
 0x3a2   : > { %v4899_v0 = vmul.f32 %v5945_v42, %v4875_v14  ;;  %v5004_v31 = vmax.f32 %v4996_v46, 0.0 }
 0x3a3   : > { %4544 = vmatpush1.bf16.msra.mxu0 %v5758_v40  ;;  %v4997_v9 = vadd.f32 %v4963_v44, %v4947_v60  ;;  %v5006_v11 = vmax.f32 %v4998_v58, 0.0 }
 0x3a4   : > { %4708 = vmatpush1.bf16.msra.mxu1 %v5760_v61  ;;  %4545 = vmatprep.subr.bf16.mxu0 %v5767_v36  ;;  %v4949_v32 = vmul.f32 %v4921_v29, %v4899_v0 }
 0x3a5   : > { %4709 = vmatprep.subr.bf16.mxu1 %v5769_v18  ;;  %v5005_v10 = vmax.f32 %v4997_v9, 0.0 }
 0x3a6   : > { %v4999_v20 = vadd.f32 %v4971_v1, %v4949_v32 }
 0x3a7   : > { %4546 = vmatpush1.bf16.msra.mxu0 %v5766_v45  ;;  %v5770_v23 = vpack.c.bf16 %v5005_v10, %v5004_v31 }
 0x3a8   : > { %4710 = vmatpush1.bf16.msra.mxu1 %v5768_v52  ;;  %v5007_v59 = vmax.f32 %v4999_v20, 0.0 }
 0x3a9   : > { %v5036_v13 = vrot.slane %v5770_v23, %v7462_v27 }
 0x3aa   : > { %4548 = vmatmul.mubr.bf16.vlgmr.msra.gmra.mrb[12].mxu0 %v6989_v4  ;;  %v5771_v41 = vpack.c.bf16 %v5007_v59, %v5006_v11 }
 0x3ab   : > { %4712 = vmatmul.mubr.bf16.vlgmr.msra.gmra.mrb[12].mxu1 %v6989_v4 }
 0x3ac   : > { %v5043_v63 = vrot.slane %v5771_v41, %v7462_v27 }
 0x3ae   : > { %v5044_v57 = vcombine.low %v5036_v13, %v5043_v63 }
 0x3b0   : > { %5064 = vst [vmem:[%s7471_s23] sm:$0xff] %v5044_v57 }
 0x47d   : > { %v7474_v24 = vpop.f32.mrb[12].mxu0 }
 0x47e   : > { %v4748_v15 = vsel %vm690_vm1, %v7474_v24, 0.0  ;;  %v4788_v4 = vmul.f32 %v7474_v24, %v7474_v24  ;;  %v7480_v6 = vpop.f32.mrb[12].mxu1  ;;  %v7482_v33 = vpop.f32.mrb[13].mxu0 }
 0x47f   : > { %v4749_v34 = vrot.slane %v4748_v15, 4  ;;  %v4762_v37 = vsel %vm690_vm1, %v7480_v6, 0.0  ;;  %v4790_v55 = vmul.f32 %v7480_v6, %v7480_v6  ;;  %v4755_v38 = vsel %vm690_vm1, %v7482_v33, 0.0  ;;  %v7490_v28 = vpop.f32.mrb[13].mxu1  ;;  %v4553_v47 = vpop.f32.mrb[14].mxu0 }
 0x480   : > { %v4820_v48 = vsel %vm690_vm1, %v4788_v4, 0.0  ;;  %v4763_v43 = vrot.slane %v4762_v37, 4  ;;  %v4756_v17 = vrot.slane %v4755_v38, 4  ;;  %v4789_v19 = vmul.f32 %v7482_v33, %v7482_v33  ;;  %v4717_v56 = vpop.f32.mrb[14].mxu1  ;;  %v4554_v39 = vpop.f32.mrb[15].mxu0 }
 0x481   : > { %v4750_v54 = vadd.f32 %v4749_v34, %v4748_v15  ;;  %v4821_v21 = vrot.slane %v4820_v48, 4  ;;  %v4834_v12 = vsel %vm690_vm1, %v4790_v55, 0.0  ;;  %v4769_v2 = vsel %vm690_vm1, %v7490_v28, 0.0  ;;  %v4718_v53 = vpop.f32.mrb[15].mxu1 }
 0x482   : > { %v4764_v5 = vadd.f32 %v4763_v43, %v4762_v37  ;;  %v4835_v40 = vrot.slane %v4834_v12, 4  ;;  %v4757_v22 = vadd.f32 %v4756_v17, %v4755_v38  ;;  %v4827_v51 = vsel %vm690_vm1, %v4789_v19, 0.0 }
 0x483   : > { %v4751_v49 = vrot.slane %v4750_v54, 2  ;;  %v4822_v30 = vadd.f32 %v4821_v21, %v4820_v48  ;;  %v4828_v61 = vrot.slane %v4827_v51, 4  ;;  %v4770_v36 = vrot.slane %v4769_v2, 4 }
 0x484   : > { %v4765_v50 = vrot.slane %v4764_v5, 2  ;;  %v4836_v8 = vadd.f32 %v4835_v40, %v4834_v12  ;;  %v4758_v44 = vrot.slane %v4757_v22, 2  ;;  %v4791_v18 = vmul.f32 %v7490_v28, %v7490_v28 }
 0x485   : > { %v4752_v46 = vadd.f32 %v4751_v49, %v4750_v54  ;;  %v4823_v14 = vrot.slane %v4822_v30, 2  ;;  %v4829_v29 = vadd.f32 %v4828_v61, %v4827_v51  ;;  %v4771_v42 = vadd.f32 %v4770_v36, %v4769_v2 }
 0x486   : > { %v4766_v60 = vadd.f32 %v4765_v50, %v4764_v5  ;;  %v4837_v1 = vrot.slane %v4836_v8, 2  ;;  %v4759_v45 = vadd.f32 %v4758_v44, %v4757_v22  ;;  %v4841_v58 = vsel %vm690_vm1, %v4791_v18, 0.0 }
 0x487   : > { %v4753_v62 = vrot.slane %v4752_v46, 1  ;;  %v4824_v0 = vadd.f32 %v4823_v14, %v4822_v30  ;;  %v4830_v52 = vrot.slane %v4829_v29, 2  ;;  %v4772_v31 = vrot.slane %v4771_v42, 2 }
 0x488   : > { %v4767_v9 = vrot.slane %v4766_v60, 1  ;;  %v4838_v32 = vadd.f32 %v4837_v1, %v4836_v8  ;;  %v4760_v10 = vrot.slane %v4759_v45, 1  ;;  %v4842_v11 = vrot.slane %v4841_v58, 4 }
 0x489   : > { %v4754_v20 = vadd.f32 %v4753_v62, %v4752_v46  ;;  %v4825_v23 = vrot.slane %v4824_v0, 1  ;;  %v4831_v59 = vadd.f32 %v4830_v52, %v4829_v29  ;;  %v4773_v13 = vadd.f32 %v4772_v31, %v4771_v42 }
 0x48a   : > { %v4768_v41 = vadd.f32 %v4767_v9, %v4766_v60  ;;  %v4839_v63 = vrot.slane %v4838_v32, 1  ;;  %v4761_v57 = vadd.f32 %v4760_v10, %v4759_v45  ;;  %v4843_v15 = vadd.f32 %v4842_v11, %v4841_v58 }
 0x48b   : > { %v4780_v4 = vmul.f32 0.25, %v4754_v20  ;;  %v4826_v34 = vadd.f32 %v4825_v23, %v4824_v0  ;;  %v4832_v37 = vrot.slane %v4831_v59, 1  ;;  %v4774_v55 = vrot.slane %v4773_v13, 1 }
 0x48c   : > { %v4782_v38 = vmul.f32 0.25, %v4768_v41  ;;  %v4840_v47 = vadd.f32 %v4839_v63, %v4838_v32  ;;  %v4781_v48 = vmul.f32 0.25, %v4761_v57  ;;  %v4844_v43 = vrot.slane %v4843_v15, 2 }
 0x48d   : > { %v4852_v17 = vmul.f32 0.25, %v4826_v34  ;;  %v4860_v19 = vmul.f32 %v4780_v4, %v4780_v4  ;;  %v4833_v56 = vadd.f32 %v4832_v37, %v4831_v59  ;;  %v4775_v53 = vadd.f32 %v4774_v55, %v4773_v13 }
 0x48e   : > { %v4854_v39 = vmul.f32 0.25, %v4840_v47  ;;  %v4862_v54 = vmul.f32 %v4782_v38, %v4782_v38  ;;  %v4861_v21 = vmul.f32 %v4781_v48, %v4781_v48  ;;  %v4845_v40 = vadd.f32 %v4844_v43, %v4843_v15 }
 0x48f   : > { %v4868_v12 = vsub.f32 %v4852_v17, %v4860_v19  ;;  %v4853_v2 = vmul.f32 0.25, %v4833_v56  ;;  %v4783_v49 = vmul.f32 0.25, %v4775_v53  ;;  %v4876_v14 = vsub.f32 %v7474_v24, %v4780_v4 }
 0x490   : > { %v4870_v5 = vsub.f32 %v4854_v39, %v4862_v54  ;;  %v4846_v61 = vrot.slane %v4845_v40, 1  ;;  %v4925_v29 = vrot.slane %v7423_v16, %v6861_v3  ;;  %v4878_v60 = vsub.f32 %v7480_v6, %v4782_v38 }
 0x491   : > { %v4884_v22 = vadd.f32 1e-05, %v4868_v12  ;;  %v4869_v51 = vsub.f32 %v4853_v2, %v4861_v21  ;;  %v4863_v8 = vmul.f32 %v4783_v49, %v4783_v49  ;;  %v4975_v58 = vrot.slane %v7432_v7, %v6861_v3 }
 0x492   : > { %v4886_v30 = vadd.f32 1e-05, %v4870_v5  ;;  %v4847_v50 = vadd.f32 %v4846_v61, %v4845_v40  ;;  %v4877_v62 = vsub.f32 %v7482_v33, %v4781_v48  ;;  %v4929_v0 = vrot.slane %v7423_v16, %v6764_v26 }
 0x493   : > { %5946 = vrsqrt.f32 %v4884_v22  ;;  %v4885_v36 = vadd.f32 1e-05, %v4869_v51  ;;  %v4933_v24 = vrot.slane %v7423_v16, %v6962_v25  ;;  %v4979_v6 = vrot.slane %v7432_v7, %v6764_v26 }
 0x494   : > { %5948 = vrsqrt.f32 %v4886_v30  ;;  %v4855_v44 = vmul.f32 0.25, %v4847_v50  ;;  %v4983_v3 = vrot.slane %v7432_v7, %v6962_v25  ;;  %v4879_v59 = vsub.f32 %v7490_v28, %v4783_v49 }
 0x495   : > { %5950 = vrsqrt.f32 %v4885_v36  ;;  %v4937_v13 = vrot.slane %v7423_v16, %v6872_v35  ;;  %v4987_v26 = vrot.slane %v7432_v7, %v6872_v35 }
 0x496   : > { %v4871_v18 = vsub.f32 %v4855_v44, %v4863_v8 }
 0x498   : > { %v4887_v46 = vadd.f32 1e-05, %v4871_v18 }
 0x49a   : > { %5952 = vrsqrt.f32 %v4887_v46 }
 0x49d   : > { %v5947_v42 = vpop.eup %5946 }
 0x49e   : > { %v5949_v1 = vpop.eup %5948  ;;  %v4900_v45 = vmul.f32 %v5947_v42, %v4876_v14 }
 0x49f   : > { %v5951_v52 = vpop.eup %5950  ;;  %v4902_v31 = vmul.f32 %v5949_v1, %v4878_v60 }
 0x4a0   : > { %v4950_v9 = vmul.f32 %v4925_v29, %v4900_v45  ;;  %v4901_v32 = vmul.f32 %v5951_v52, %v4877_v62 }
 0x4a1   : > { %v4952_v20 = vmul.f32 %v4933_v24, %v4902_v31 }
 0x4a2   : > { %v5000_v10 = vadd.f32 %v4975_v58, %v4950_v9  ;;  %v4951_v11 = vmul.f32 %v4929_v0, %v4901_v32 }
 0x4a3   : > { %v5002_v57 = vadd.f32 %v4983_v3, %v4952_v20 }
 0x4a4   : > { %v5008_v33 = vmax.f32 %v5000_v10, 0.0  ;;  %v5001_v23 = vadd.f32 %v4979_v6, %v4951_v11  ;;  %v5953_v41 = vpop.eup %5952 }
 0x4a5   : > { %v4903_v15 = vmul.f32 %v5953_v41, %v4879_v59  ;;  %v5010_v37 = vmax.f32 %v5002_v57, 0.0 }
 0x4a6   : > { %v5009_v63 = vmax.f32 %v5001_v23, 0.0 }
 0x4a7   : > { %v4953_v34 = vmul.f32 %v4937_v13, %v4903_v15 }
 0x4a8   : > { %v5772_v4 = vpack.c.bf16 %v5009_v63, %v5008_v33 }
 0x4a9   : > { %v5003_v55 = vadd.f32 %v4987_v26, %v4953_v34 }
 0x4aa   : > { %v5053_v38 = vrot.slane %v5772_v4, %v7462_v27 }
 0x4ab   : > { %v5011_v25 = vmax.f32 %v5003_v55, 0.0 }
 0x4ad   : > { %v5773_v47 = vpack.c.bf16 %v5011_v25, %v5010_v37 }
 0x4af   : > { %v5060_v28 = vrot.slane %v5773_v47, %v7462_v27 }
 0x4b1   : > { %v5061_v48 = vcombine.low %v5053_v38, %v5060_v28 }
 0x4b3   : > { %5065 = vst [vmem:[%s7471_s23 + $0x8] sm:$0xff] %v5061_v48 }
 0x4b4 PF: > { %s7603_s27 = sld [smem:[#allocation16_spill]]  ;;  %s7604_s16 = sld [smem:[#allocation17_spill]] }
 0x4b5   : > { %s7605_s24 = smov %s6196_s25  ;;  %s7606_s25 = smov %s6200_s26 }
 0x4ba   : > { %p17_p4 = scmp.ge.s32.totalorder %s7603_s27, 4   ;;  %s7607_s26 = smov %s7604_s16 }
 0x4bc   :  { %19 = sbr.rel (!%p17_p4) target bundleno = 8 (0x8), region = 125 }
 0x4c3   :  { %5088 = vsyncpa [#allocation3], 1 }
 0x4c4   :  { %5090 = vsyncpa [#allocation3 + $0x1], 1 }
 0x4c5   :  { %5091 = vsyncpa [#allocation5], 1 }
 0x4c6   :  { %5092 = vsyncpa [#allocation8], 1 }

// kernel: generator_forward.7
= control target key start
LH: loop header
LB: loop body
LE: loop exit
PB: predicated region body
PF: predicated region fallthrough
CT: control target
= control target key end

     0   :  { %s944_s12 = smov 0   ;;  %s1113_s0 = inlined_call_operand.vmem [shape: bf16[352,256], index: 0, kind: input, shape index: {}]   ;;  %s1114_s1 = inlined_call_operand.vmem [shape: bf16[256,4], index: 1, kind: input, shape index: {}]   ;;  %s1115_s2 = inlined_call_operand.vmem [shape: f32[1,4], index: 2, kind: input, shape index: {}]   ;;  %s1116_s3 = inlined_call_operand.vmem [shape: f32[352,4], index: 3, kind: output, shape index: {}]  }
   0x1 LB: > { %s667_s13 = sadd.s32 4294967295, %s922_s12   ;;  %p671_p0 = scmp.ge.s32.totalorder %s922_s12, 1  ;;  %s922_s12 = sphi %s944_s12, %s13_s12  }
   0x2   : > { %p139_p1 = scmp.lt.s32.totalorder %s922_s12, 3 }
   0x4   : > { %p140_p2 = pnand %p671_p0, %p139_p1 }
   0x5   : > { %v823_v0 = vld [vmem:[%s1114_s1 + $0x40] sm:$0xff] (!%p140_p2)   ;;  %s164_s16 = smul.u32 (!%p140_p2), 22, %s667_s13  ;;  %v825_v2 = vld [vmem:[%s1114_s1 + $0x48] sm:$0xff] (!%p140_p2)   ;;  %v827_v4 = vld [vmem:[%s1114_s1 + $0x50] sm:$0xff] (!%p140_p2)   ;;  %vm588_vm0 = vcmask (!%p140_p2), 31744  }
   0x6   : > { %143 = sbr.rel (%p140_p2) target bundleno = 309 (0x135), region = 32  ;;  %v824_v1 = vld [vmem:[%s1114_s1] sm:$0xff] (!%p140_p2)   ;;  %717 = vmatprep.subr.bf16.mxu0 (!%p140_p2), %v823_v0  ;;  %799 = vmatprep.subr.bf16.mxu1 (!%p140_p2), %v823_v0  ;;  %v826_v3 = vld [vmem:[%s1114_s1 + $0x8] sm:$0xff] (!%p140_p2)   ;;  %v828_v5 = vld [vmem:[%s1114_s1 + $0x10] sm:$0xff] (!%p140_p2)  }
   0x7   : > { %718 = vmatpush3.bf16.msra.mxu0 (!%p140_p2), %v824_v1  ;;  %807 = vmatpush3.bf16.msra.mxu1 (!%p140_p2), %v824_v1  ;;  %p165_p3 = scmp.lt.s32.totalorder (!%p140_p2), %s164_s16, 43  ;;  %v829_v6 = vld [vmem:[%s1114_s1 + $0x58] sm:$0xff] (!%p140_p2)   ;;  %v831_v8 = vld [vmem:[%s1114_s1 + $0x60] sm:$0xff] (!%p140_p2)   ;;  %v833_v10 = vld [vmem:[%s1114_s1 + $0x68] sm:$0xff] (!%p140_p2)  }
   0x8   : > { %719 = vmatprep.subr.bf16.mxu0 (!%p140_p2), %v825_v2  ;;  %800 = vmatprep.subr.bf16.mxu1 (!%p140_p2), %v825_v2  ;;  %v830_v7 = vld [vmem:[%s1114_s1 + $0x18] sm:$0xff] (!%p140_p2)   ;;  %v832_v9 = vld [vmem:[%s1114_s1 + $0x20] sm:$0xff] (!%p140_p2)   ;;  %v834_v13 = vld [vmem:[%s1114_s1 + $0x28] sm:$0xff] (!%p140_p2)  }
   0x9   : > { %v835_v14 = vld [vmem:[%s1114_s1 + $0x70] sm:$0xff] (!%p140_p2)   ;;  %v837_v16 = vld [vmem:[%s1114_s1 + $0x78] sm:$0xff] (!%p140_p2)   ;;  %v1035_v40 = vld [vmem:[%s1115_s2] ss:$0 sm:$0xff] (!%p140_p2) }
   0xa   : > { %v836_v15 = vld [vmem:[%s1114_s1 + $0x30] sm:$0xff] (!%p140_p2)   ;;  %v838_v17 = vld [vmem:[%s1114_s1 + $0x38] sm:$0xff] (!%p140_p2)  }
   0xb   : > { %720 = vmatpush3.bf16.msra.mxu0 (!%p140_p2), %v826_v3  ;;  %808 = vmatpush3.bf16.msra.mxu1 (!%p140_p2), %v826_v3 }
   0xc   : > { %721 = vmatprep.subr.bf16.mxu0 (!%p140_p2), %v827_v4  ;;  %801 = vmatprep.subr.bf16.mxu1 (!%p140_p2), %v827_v4 }
   0xd   : > { %s1118_s16 = smov (!%p165_p3, %s164_s16), 43 }
   0xe   : > { %s716_s4 = sshll.u32 %s1118_s16, 3 }
   0xf   : > { %722 = vmatpush3.bf16.msra.mxu0 %v828_v5  ;;  %809 = vmatpush3.bf16.msra.mxu1 %v828_v5  ;;  %s987_s9 = scalar_lea.vmem %s1113_s0, %s716_s4  ;;  %s1048_s30 = scalar_lea.vmem %s1116_s3, %s716_s4 }
  0x10   : > { %723 = vmatprep.subr.bf16.mxu0 %v829_v6  ;;  %802 = vmatprep.subr.bf16.mxu1 %v829_v6  ;;  %v841_v11 = vld [vmem:[%s987_s9 + $0x4] ss:$8 sps:$4 sm:$0xff]   ;;  %v839_v18 = vld [vmem:[%s987_s9] ss:$8 sps:$4 sm:$0xff]   ;;  %v845_v20 = vld [vmem:[%s987_s9 + $0x14] ss:$8 sps:$4 sm:$0xff]  }
  0x11   : > { %v844_v12 = vld [vmem:[%s987_s9 + $0x64] ss:$8 sps:$4 sm:$0xff]   ;;  %477 = vmatprep.mubr.bf16.mxu0 %v841_v11  ;;  %v842_v19 = vld [vmem:[%s987_s9 + $0x60] ss:$8 sps:$4 sm:$0xff]   ;;  %v848_v21 = vld [vmem:[%s987_s9 + $0x74] ss:$8 sps:$4 sm:$0xff]  }
  0x12   : > { %525 = vmatprep.mubr.bf16.mxu1 %v844_v12  ;;  %v847_v22 = vld [vmem:[%s987_s9 + $0x10] ss:$8 sps:$4 sm:$0xff]   ;;  %v851_v24 = vld [vmem:[%s987_s9 + $0x24] ss:$8 sps:$4 sm:$0xff]   ;;  %v853_v26 = vld [vmem:[%s987_s9 + $0x20] ss:$8 sps:$4 sm:$0xff]  }
  0x13   : > { %724 = vmatpush3.bf16.msra.mxu0 %v830_v7  ;;  %810 = vmatpush3.bf16.msra.mxu1 %v830_v7  ;;  %v850_v23 = vld [vmem:[%s987_s9 + $0x70] ss:$8 sps:$4 sm:$0xff]   ;;  %v854_v25 = vld [vmem:[%s987_s9 + $0x84] ss:$8 sps:$4 sm:$0xff]   ;;  %v856_v27 = vld [vmem:[%s987_s9 + $0x80] ss:$8 sps:$4 sm:$0xff]  }
  0x14   : > { %725 = vmatprep.subr.bf16.mxu0 %v831_v8  ;;  %803 = vmatprep.subr.bf16.mxu1 %v831_v8  ;;  %v857_v28 = vld [vmem:[%s987_s9 + $0x34] ss:$8 sps:$4 sm:$0xff]   ;;  %v859_v30 = vld [vmem:[%s987_s9 + $0x30] ss:$8 sps:$4 sm:$0xff]   ;;  %v863_v32 = vld [vmem:[%s987_s9 + $0x44] ss:$8 sps:$4 sm:$0xff]  }
  0x15   : > { %v860_v29 = vld [vmem:[%s987_s9 + $0x94] ss:$8 sps:$4 sm:$0xff]   ;;  %v862_v31 = vld [vmem:[%s987_s9 + $0x90] ss:$8 sps:$4 sm:$0xff]   ;;  %v866_v33 = vld [vmem:[%s987_s9 + $0xa4] ss:$8 sps:$4 sm:$0xff]  }
  0x16   : > { %v865_v34 = vld [vmem:[%s987_s9 + $0x40] ss:$8 sps:$4 sm:$0xff]   ;;  %v869_v36 = vld [vmem:[%s987_s9 + $0x54] ss:$8 sps:$4 sm:$0xff]   ;;  %v871_v37 = vld [vmem:[%s987_s9 + $0x50] ss:$8 sps:$4 sm:$0xff]  }
  0x17   : > { %726 = vmatpush3.bf16.msra.mxu0 %v832_v9  ;;  %811 = vmatpush3.bf16.msra.mxu1 %v832_v9  ;;  %v868_v35 = vld [vmem:[%s987_s9 + $0xa0] ss:$8 sps:$4 sm:$0xff]  }
  0x18   : > { %727 = vmatprep.subr.bf16.mxu0 %v833_v10  ;;  %804 = vmatprep.subr.bf16.mxu1 %v833_v10 }
  0x1b   : > { %728 = vmatpush3.bf16.msra.mxu0 %v834_v13  ;;  %812 = vmatpush3.bf16.msra.mxu1 %v834_v13 }
  0x1c   : > { %729 = vmatprep.subr.bf16.mxu0 %v835_v14  ;;  %805 = vmatprep.subr.bf16.mxu1 %v835_v14 }
  0x1f   : > { %730 = vmatpush3.bf16.msra.mxu0 %v836_v15  ;;  %813 = vmatpush3.bf16.msra.mxu1 %v836_v15 }
  0x20   : > { %731 = vmatprep.subr.bf16.mxu0 %v837_v16  ;;  %806 = vmatprep.subr.bf16.mxu1 %v837_v16 }
  0x23   : > { %732 = vmatpush3.bf16.msra.mxu0 %v838_v17  ;;  %814 = vmatpush3.bf16.msra.mxu1 %v838_v17 }
  0x26   : > { %478 = vmatmul.mubr.bf16.vlgmr.msra.gmra.mrb[0].mxu0 %v839_v18  ;;  %526 = vmatmul.mubr.bf16.vlgmr.msra.gmra.mrb[0].mxu1 %v842_v19 }
  0x27   : > { %485 = vmatprep.mubr.bf16.mxu0 %v845_v20  ;;  %533 = vmatprep.mubr.bf16.mxu1 %v848_v21 }
  0x2e   : > { %486 = vmatmul.mubr.bf16.gmra.mrb[4].mxu0 %v847_v22  ;;  %534 = vmatmul.mubr.bf16.gmra.mrb[4].mxu1 %v850_v23 }
  0x2f   : > { %493 = vmatprep.mubr.bf16.mxu0 %v851_v24  ;;  %541 = vmatprep.mubr.bf16.mxu1 %v854_v25 }
  0x36   : > { %494 = vmatmul.mubr.bf16.gmra.mrb[8].mxu0 %v853_v26  ;;  %542 = vmatmul.mubr.bf16.gmra.mrb[8].mxu1 %v856_v27 }
  0x37   : > { %501 = vmatprep.mubr.bf16.mxu0 %v857_v28  ;;  %549 = vmatprep.mubr.bf16.mxu1 %v860_v29 }
  0x3e   : > { %502 = vmatmul.mubr.bf16.gmra.mrb[12].mxu0 %v859_v30  ;;  %550 = vmatmul.mubr.bf16.gmra.mrb[12].mxu1 %v862_v31 }
  0x3f   : > { %509 = vmatprep.mubr.bf16.mxu0 %v863_v32  ;;  %557 = vmatprep.mubr.bf16.mxu1 %v866_v33 }
  0x46   : > { %510 = vmatmul.mubr.bf16.gmra.mrb[16].mxu0 %v865_v34  ;;  %558 = vmatmul.mubr.bf16.gmra.mrb[16].mxu1 %v868_v35 }
  0x47   : > { %517 = vmatprep.mubr.bf16.mxu0 %v869_v36 }
  0x4e   : > { %518 = vmatmul.mubr.bf16.gmra.mrb[20].mxu0 %v871_v37 }
  0xf9   : > { %v733_v38 = vpop.f32.mrb[0].mxu0  ;;  %v769_v39 = vpop.f32.mrb[0].mxu1 }
  0xfa   : > { %v734_v41 = vpop.f32.mrb[1].mxu0  ;;  %v770_v42 = vpop.f32.mrb[1].mxu1 }
  0xfb   : > { %v735_v43 = vadd.f32 %v734_v41, %v733_v38  ;;  %v736_v44 = vpop.f32.mrb[2].mxu0  ;;  %v771_v45 = vadd.f32 %v770_v42, %v769_v39  ;;  %v772_v46 = vpop.f32.mrb[2].mxu1 }
  0xfc   : > { %v737_v47 = vpop.f32.mrb[3].mxu0  ;;  %v773_v48 = vpop.f32.mrb[3].mxu1 }
  0xfd   : > { %v480_v49 = vadd.f32 %v735_v43, %v1035_v40  ;;  %v738_v50 = vadd.f32 %v737_v47, %v736_v44  ;;  %v528_v51 = vadd.f32 %v771_v45, %v1035_v40  ;;  %v774_v52 = vadd.f32 %v773_v48, %v772_v46 }
  0xff   : > { %872 = vtanh.f32 %v480_v49  ;;  %v483_v53 = vadd.f32 %v738_v50, %v1035_v40  ;;  %v531_v54 = vadd.f32 %v774_v52, %v1035_v40 }
 0x100   : > { %874 = vtanh.f32 %v528_v51 }
 0x101   : > { %876 = vtanh.f32 %v483_v53  ;;  %v739_v55 = vpop.f32.mrb[4].mxu0  ;;  %v775_v56 = vpop.f32.mrb[4].mxu1 }
 0x102   : > { %878 = vtanh.f32 %v531_v54  ;;  %v740_v57 = vpop.f32.mrb[5].mxu0  ;;  %v776_v58 = vpop.f32.mrb[5].mxu1 }
 0x103   : > { %v741_v59 = vadd.f32 %v740_v57, %v739_v55  ;;  %v742_v60 = vpop.f32.mrb[6].mxu0  ;;  %v777_v61 = vadd.f32 %v776_v58, %v775_v56  ;;  %v778_v62 = vpop.f32.mrb[6].mxu1 }
 0x104   : > { %v743_v63 = vpop.f32.mrb[7].mxu0  ;;  %v779_v0 = vpop.f32.mrb[7].mxu1 }
 0x105   : > { %v488_v1 = vadd.f32 %v741_v59, %v1035_v40  ;;  %v744_v2 = vadd.f32 %v743_v63, %v742_v60  ;;  %v536_v3 = vadd.f32 %v777_v61, %v1035_v40  ;;  %v780_v4 = vadd.f32 %v779_v0, %v778_v62 }
 0x107   : > { %880 = vtanh.f32 %v488_v1  ;;  %v491_v5 = vadd.f32 %v744_v2, %v1035_v40  ;;  %v539_v6 = vadd.f32 %v780_v4, %v1035_v40 }
 0x108   : > { %882 = vtanh.f32 %v536_v3 }
 0x109   : > { %v873_v7 = vpop.eup %872  ;;  %884 = vtanh.f32 %v491_v5  ;;  %v745_v8 = vpop.f32.mrb[8].mxu0 }
 0x10a   : > { %v781_v9 = vpop.f32.mrb[8].mxu1  ;;  %v875_v10 = vpop.eup %874  ;;  %589 = vst.msk [vmem:[%s1048_s30] sm:$0xff] %vm588_vm0, %v873_v7  ;;  %886 = vtanh.f32 %v539_v6 }
 0x10b   : > { %v746_v11 = vpop.f32.mrb[9].mxu0  ;;  %v782_v12 = vpop.f32.mrb[9].mxu1  ;;  %601 = vst.msk [vmem:[%s1048_s30 + $0x60] sm:$0xff] %vm588_vm0, %v875_v10 }
 0x10c   : > { %v877_v13 = vpop.eup %876  ;;  %v747_v14 = vadd.f32 %v746_v11, %v745_v8  ;;  %v748_v15 = vpop.f32.mrb[10].mxu0  ;;  %v783_v16 = vadd.f32 %v782_v12, %v781_v9 }
 0x10d   : > { %v784_v17 = vpop.f32.mrb[10].mxu1  ;;  %v879_v18 = vpop.eup %878  ;;  %590 = vst.msk [vmem:[%s1048_s30 + $0x8] sm:$0xff] %vm588_vm0, %v877_v13 }
 0x10e   : > { %v749_v19 = vpop.f32.mrb[11].mxu0  ;;  %v785_v20 = vpop.f32.mrb[11].mxu1  ;;  %602 = vst.msk [vmem:[%s1048_s30 + $0x68] sm:$0xff] %vm588_vm0, %v879_v18  ;;  %v496_v21 = vadd.f32 %v747_v14, %v1035_v40  ;;  %v544_v23 = vadd.f32 %v783_v16, %v1035_v40 }
 0x10f   : > { %v750_v22 = vadd.f32 %v749_v19, %v748_v15  ;;  %v786_v24 = vadd.f32 %v785_v20, %v784_v17 }
 0x110   : > { %888 = vtanh.f32 %v496_v21 }
 0x111   : > { %v499_v25 = vadd.f32 %v750_v22, %v1035_v40  ;;  %v547_v26 = vadd.f32 %v786_v24, %v1035_v40  ;;  %890 = vtanh.f32 %v544_v23  ;;  %v881_v27 = vpop.eup %880  ;;  %v751_v28 = vpop.f32.mrb[12].mxu0 }
 0x112   : > { %v787_v29 = vpop.f32.mrb[12].mxu1  ;;  %v883_v30 = vpop.eup %882  ;;  %591 = vst.msk [vmem:[%s1048_s30 + $0x10] sm:$0xff] %vm588_vm0, %v881_v27 }
 0x113   : > { %892 = vtanh.f32 %v499_v25  ;;  %v752_v31 = vpop.f32.mrb[13].mxu0  ;;  %v788_v32 = vpop.f32.mrb[13].mxu1  ;;  %603 = vst.msk [vmem:[%s1048_s30 + $0x70] sm:$0xff] %vm588_vm0, %v883_v30 }
 0x114   : > { %894 = vtanh.f32 %v547_v26  ;;  %v885_v33 = vpop.eup %884  ;;  %v753_v34 = vadd.f32 %v752_v31, %v751_v28  ;;  %v754_v35 = vpop.f32.mrb[14].mxu0  ;;  %v789_v36 = vadd.f32 %v788_v32, %v787_v29 }
 0x115   : > { %v790_v37 = vpop.f32.mrb[14].mxu1  ;;  %v887_v38 = vpop.eup %886  ;;  %592 = vst.msk [vmem:[%s1048_s30 + $0x18] sm:$0xff] %vm588_vm0, %v885_v33 }
 0x116   : > { %v755_v39 = vpop.f32.mrb[15].mxu0  ;;  %v791_v41 = vpop.f32.mrb[15].mxu1  ;;  %604 = vst.msk [vmem:[%s1048_s30 + $0x78] sm:$0xff] %vm588_vm0, %v887_v38  ;;  %v504_v42 = vadd.f32 %v753_v34, %v1035_v40  ;;  %v552_v44 = vadd.f32 %v789_v36, %v1035_v40 }
 0x117   : > { %v756_v43 = vadd.f32 %v755_v39, %v754_v35  ;;  %v792_v45 = vadd.f32 %v791_v41, %v790_v37 }
 0x118   : > { %896 = vtanh.f32 %v504_v42 }
 0x119   : > { %v507_v46 = vadd.f32 %v756_v43, %v1035_v40  ;;  %v555_v47 = vadd.f32 %v792_v45, %v1035_v40  ;;  %898 = vtanh.f32 %v552_v44  ;;  %v757_v49 = vpop.f32.mrb[16].mxu0  ;;  %v793_v50 = vpop.f32.mrb[16].mxu1 }
 0x11a   : > { %v889_v48 = vpop.eup %888  ;;  %v758_v52 = vpop.f32.mrb[17].mxu0 }
 0x11b   : > { %900 = vtanh.f32 %v507_v46  ;;  %v891_v51 = vpop.eup %890  ;;  %593 = vst.msk [vmem:[%s1048_s30 + $0x20] sm:$0xff] %vm588_vm0, %v889_v48  ;;  %v794_v53 = vpop.f32.mrb[17].mxu1  ;;  %v759_v55 = vadd.f32 %v758_v52, %v757_v49 }
 0x11c   : > { %902 = vtanh.f32 %v555_v47  ;;  %605 = vst.msk [vmem:[%s1048_s30 + $0x80] sm:$0xff] %vm588_vm0, %v891_v51  ;;  %v760_v56 = vpop.f32.mrb[18].mxu0  ;;  %v795_v57 = vadd.f32 %v794_v53, %v793_v50  ;;  %v796_v58 = vpop.f32.mrb[18].mxu1 }
 0x11d   : > { %v893_v54 = vpop.eup %892  ;;  %v761_v60 = vpop.f32.mrb[19].mxu0  ;;  %v512_v62 = vadd.f32 %v759_v55, %v1035_v40 }
 0x11e   : > { %v895_v59 = vpop.eup %894  ;;  %594 = vst.msk [vmem:[%s1048_s30 + $0x28] sm:$0xff] %vm588_vm0, %v893_v54  ;;  %v797_v61 = vpop.f32.mrb[19].mxu1  ;;  %v762_v63 = vadd.f32 %v761_v60, %v760_v56  ;;  %v560_v0 = vadd.f32 %v795_v57, %v1035_v40 }
 0x11f   : > { %606 = vst.msk [vmem:[%s1048_s30 + $0x88] sm:$0xff] %vm588_vm0, %v895_v59  ;;  %v798_v1 = vadd.f32 %v797_v61, %v796_v58  ;;  %904 = vtanh.f32 %v512_v62 }
 0x120   : > { %v515_v2 = vadd.f32 %v762_v63, %v1035_v40  ;;  %906 = vtanh.f32 %v560_v0 }
 0x121   : > { %v563_v3 = vadd.f32 %v798_v1, %v1035_v40  ;;  %v763_v5 = vpop.f32.mrb[20].mxu0 }
 0x122   : > { %v897_v4 = vpop.eup %896  ;;  %908 = vtanh.f32 %v515_v2  ;;  %v764_v7 = vpop.f32.mrb[21].mxu0 }
 0x123   : > { %v899_v6 = vpop.eup %898  ;;  %595 = vst.msk [vmem:[%s1048_s30 + $0x30] sm:$0xff] %vm588_vm0, %v897_v4  ;;  %910 = vtanh.f32 %v563_v3  ;;  %v765_v9 = vadd.f32 %v764_v7, %v763_v5  ;;  %v766_v10 = vpop.f32.mrb[22].mxu0 }
 0x124   : > { %607 = vst.msk [vmem:[%s1048_s30 + $0x90] sm:$0xff] %vm588_vm0, %v899_v6  ;;  %v767_v12 = vpop.f32.mrb[23].mxu0 }
 0x125   : > { %v901_v8 = vpop.eup %900  ;;  %v520_v13 = vadd.f32 %v765_v9, %v1035_v40  ;;  %v768_v14 = vadd.f32 %v767_v12, %v766_v10 }
 0x126   : > { %v903_v11 = vpop.eup %902  ;;  %596 = vst.msk [vmem:[%s1048_s30 + $0x38] sm:$0xff] %vm588_vm0, %v901_v8 }
 0x127   : > { %608 = vst.msk [vmem:[%s1048_s30 + $0x98] sm:$0xff] %vm588_vm0, %v903_v11  ;;  %912 = vtanh.f32 %v520_v13  ;;  %v523_v15 = vadd.f32 %v768_v14, %v1035_v40 }
 0x129   : > { %v905_v16 = vpop.eup %904  ;;  %914 = vtanh.f32 %v523_v15 }
 0x12a   : > { %v907_v17 = vpop.eup %906  ;;  %597 = vst.msk [vmem:[%s1048_s30 + $0x40] sm:$0xff] %vm588_vm0, %v905_v16 }
 0x12b   : > { %609 = vst.msk [vmem:[%s1048_s30 + $0xa0] sm:$0xff] %vm588_vm0, %v907_v17 }
 0x12c   : > { %v909_v18 = vpop.eup %908 }
 0x12d   : > { %v911_v19 = vpop.eup %910  ;;  %598 = vst.msk [vmem:[%s1048_s30 + $0x48] sm:$0xff] %vm588_vm0, %v909_v18 }
 0x12e   : > { %610 = vst.msk [vmem:[%s1048_s30 + $0xa8] sm:$0xff] %vm588_vm0, %v911_v19 }
 0x131   : > { %v913_v20 = vpop.eup %912 }
 0x132   : > { %599 = vst.msk [vmem:[%s1048_s30 + $0x50] sm:$0xff] %vm588_vm0, %v913_v20 }
 0x133   : > { %v915_v21 = vpop.eup %914 }
 0x134   : > { %600 = vst.msk [vmem:[%s1048_s30 + $0x58] sm:$0xff] %vm588_vm0, %v915_v21 }
 0x135 PF: > { %s13_s12 = sadd.s32 1, %s922_s12  }
 0x136   : > { %p10_p4 = scmp.ge.s32.totalorder %s13_s12, 4  }
 0x138   :  { %12 = sbr.rel (!%p10_p4) target bundleno = 1 (0x1), region = 62 }

</bundles_post_ra>
